<compile_context>
chip_gen: v5e
topology: v5e:2x2
jax: 0.10.0
libtpu: 0.0.40
codegen_flags: <defaults>
</compile_context>

<pallas_src>
import functools

import jax
import jax.numpy as jnp
from jax import lax
from jax.experimental import pallas as pl
from jax.experimental.pallas import tpu as pltpu

NUM_CLASSES = 4
OVERLAP_THRESH = 0.35
NEGPOS_RATIO = 3
VARIANCES = (0.1, 0.2)
SMOOTH_POINT = 0.2
LANES = 128
SUBLANES = 8


# -------------------- JAX glue: SSD prior/GT matching (small, scatter-heavy) ---------
def point_form(priors):
    return jnp.concatenate(
        [priors[:, :2] - priors[:, 2:] / 2.0, priors[:, :2] + priors[:, 2:] / 2.0],
        axis=1,
    )


def jaccard(box_a, box_b):
    max_xy = jnp.minimum(box_a[:, None, 2:], box_b[None, :, 2:])
    min_xy = jnp.maximum(box_a[:, None, :2], box_b[None, :, :2])
    inter_wh = jnp.clip(max_xy - min_xy, 0.0, None)
    inter = inter_wh[..., 0] * inter_wh[..., 1]
    area_a = ((box_a[:, 2] - box_a[:, 0]) * (box_a[:, 3] - box_a[:, 1]))[:, None]
    area_b = ((box_b[:, 2] - box_b[:, 0]) * (box_b[:, 3] - box_b[:, 1]))[None, :]
    return inter / (area_a + area_b - inter)


def encode(matched, priors, variances):
    g_cxcy = (matched[:, :2] + matched[:, 2:]) / 2.0 - priors[:, :2]
    g_cxcy = g_cxcy / (variances[0] * priors[:, 2:])
    g_wh = (matched[:, 2:] - matched[:, :2]) / priors[:, 2:]
    g_wh = jnp.log(g_wh) / variances[1]
    return jnp.concatenate([g_cxcy, g_wh], axis=1)


def match_one(truths, labels, priors):
    overlaps = jaccard(truths, point_form(priors))            # (G, P)
    best_prior_idx = jnp.argmax(overlaps, axis=1)              # (G,)
    best_truth_overlap = jnp.max(overlaps, axis=0)             # (P,)
    best_truth_idx = jnp.argmax(overlaps, axis=0)              # (P,)
    best_truth_overlap = best_truth_overlap.at[best_prior_idx].set(2.0)
    best_truth_idx = best_truth_idx.at[best_prior_idx].set(
        jnp.arange(truths.shape[0], dtype=best_truth_idx.dtype)
    )
    matches = truths[best_truth_idx]                           # (P, 4)
    conf = labels[best_truth_idx].astype(jnp.int32)
    conf = jnp.where(best_truth_overlap < OVERLAP_THRESH, 0, conf)
    loc = encode(matches, priors, VARIANCES)
    # TODO(synk): the repo's `match` source (and exact IoU-target post-processing) is not
    # provided; we return best_truth_overlap as-is (including the forced-match 2.0 fill).
    return loc, conf, best_truth_overlap


# ----------------------------------- Pallas kernel -----------------------------------
def _multibox_loss_kernel(num_priors, num_neg_ref, conf_ref, locp_ref, loct_ref,
                          ioup_ref, iout_ref, conft_ref, out_ref):
    conf = conf_ref[0]        # (C, S, 128) f32   lane-dense class slabs
    locp = locp_ref[0]        # (4, S, 128) f32   loc predictions
    loct = loct_ref[0]        # (4, S, 128) f32   loc targets
    iou_p = ioup_ref[0, 0]    # (S, 128)
    iou_t = iout_ref[0, 0]    # (S, 128)
    conf_t = conft_ref[0, 0]  # (S, 128)  float-coded class targets

    C, S, _ = conf.shape
    num_neg_i = num_neg_ref[pl.program_id(0)]   # int32 scalar (SMEM, prefetched)

    px1, py1, px2, py2 = locp[0], locp[1], locp[2], locp[3]
    tx1, ty1, tx2, ty2 = loct[0], loct[1], loct[2], loct[3]

    # validity mask for padded prior slots, built in-kernel from the lane-dense index.
    prior_idx = (lax.broadcasted_iota(jnp.int32, (S, LANES), 0) * LANES
                 + lax.broadcasted_iota(jnp.int32, (S, LANES), 1))
    validm = prior_idx < num_priors

    pos = conf_t > 0.0                    # pad priors have conf_t == 0 -> negative
    posf = pos.astype(jnp.float32)

    # ---- localization: smooth-point EIoU, positives only -----------------------------
    # TODO(synk): exact upstream eiou_loss (and its use of `variance`) is unavailable;
    # this is the mmdet-style smooth-point EIoU applied to the 4-d regression vectors.
    ex1 = jnp.minimum(px1, tx1)
    ey1 = jnp.minimum(py1, ty1)
    ix1 = jnp.maximum(px1, tx1)
    iy1 = jnp.maximum(py1, ty1)
    ix2 = jnp.minimum(px2, tx2)
    iy2 = jnp.minimum(py2, ty2)
    xmin = jnp.minimum(ix1, ix2)
    ymin = jnp.minimum(iy1, iy2)
    xmax = jnp.maximum(ix1, ix2)
    ymax = jnp.maximum(iy1, iy2)
    inter = ((ix2 - ex1) * (iy2 - ey1) + (xmin - ex1) * (ymin - ey1)
             - (ix1 - ex1) * (ymax - ey1) - (xmax - ex1) * (iy1 - ey1))
    union = (px2 - px1) * (py2 - py1) + (tx2 - tx1) * (ty2 - ty1) - inter + 1e-7
    ious = 1.0 - inter * pl.reciprocal(union, approx=True)
    eiou = jnp.where(ious < SMOOTH_POINT,
                     (0.5 / SMOOTH_POINT) * ious * ious,
                     ious - 0.5 * SMOOTH_POINT)
    lossl_row = jnp.sum(eiou * posf, axis=0, keepdims=True)            # (1, 128)

    # ---- IoU head: smooth-L1 (beta = 1), positives only -------------------------------
    d = iou_p - iou_t
    ad = jnp.abs(d)
    sl1 = jnp.where(ad < 1.0, 0.5 * d * d, ad - 0.5)
    lossiou_row = jnp.sum(sl1 * posf, axis=0, keepdims=True)            # (1, 128)

    # ---- per-prior CE: logsumexp(conf) - conf[target]; unrolled over C dense slabs ----
    m = conf[0]
    for c in range(1, C):
        m = jnp.maximum(m, conf[c])
    ssum = jnp.exp(conf[0] - m)
    gathered = conf[0] * (conf_t == 0.0).astype(jnp.float32)
    for c in range(1, C):
        ssum = ssum + jnp.exp(conf[c] - m)
        gathered = gathered + conf[c] * (conf_t == float(c)).astype(jnp.float32)
    ce = jnp.log(ssum) + m - gathered                                   # (S, 128)

    # ---- hard negative mining: digit-grouped radix-select of the num_neg-th largest ---
    # mine >= 0 by construction (clamped), so for non-negative f32 the bit-pattern order
    # equals the value order.  We select over the top 16 bits only (15 value bits; the
    # sign bit is never set); the tie-group correction below bounds the truncation error
    # to < 2^-8 relative on boundary terms.
    keep = jnp.logical_and(jnp.logical_not(pos), validm)    # true negatives, non-pad
    mine = jnp.where(keep, jnp.maximum(ce, 0.0), 0.0)
    TRUNC_MASK = jnp.int32(-(1 << 16))
    mine_bits = pltpu.bitcast(mine, jnp.int32) & TRUNC_MASK

    prefix = jnp.int32(0)
    # digit plan: 3 bits at 28 (sign bit excluded), then 4-bit digits at 24/20/16.
    for lo, nvals in ((28, 7), (24, 15), (20, 15), (16, 15)):
        # candidate counts within a step are independent -> their cross-lane reduces
        # pipeline; only the 4 prefix updates serialize.
        cnts = [jnp.sum((mine_bits >= (prefix + jnp.int32(v << lo))).astype(jnp.int32))
                for v in range(1, nvals + 1)]
        digit = jnp.int32(0)
        for cnt in cnts:                       # counts are monotone decreasing in v
            digit = digit + (cnt >= num_neg_i).astype(jnp.int32)
        prefix = prefix + digit * jnp.int32(1 << lo)

    gtf = (mine_bits > prefix).astype(jnp.float32)           # strictly above threshold
    tie = mine_bits == prefix                                 # threshold (tie) group
    kth_row = jnp.max(jnp.where(tie, mine, 0.0), axis=0, keepdims=True)   # (1, 128)
    cnt_row = jnp.sum(gtf, axis=0, keepdims=True)                          # (1, 128)
    # conf loss base = positives' CE + CE of negatives strictly above threshold; the
    # (num_neg - count_gt) * kth tie-group correction is applied in the wrapper.
    lossc_row = jnp.sum(ce * posf + mine * gtf, axis=0, keepdims=True)     # (1, 128)

    # ---- lane-dense per-image partial rows (single full-vreg store) -------------------
    out_ref[0] = jnp.concatenate(
        [lossl_row, lossc_row, lossiou_row, cnt_row, kth_row,
         jnp.zeros((3, LANES), jnp.float32)], axis=0)


# ------------------------------------ wrapper -----------------------------------------
def _to_rows(x, S):
    # (B, P_pad, k) -> (B, k, S, LANES): prior index p -> (p // 128, p % 128)
    B, _, k = x.shape
    return jnp.transpose(x, (0, 2, 1)).reshape(B, k, S, LANES)


def multibox_loss(loc_data, conf_data, iou_data, priors, targets):
    B, P, C = conf_data.shape

    truths = targets[:, :, 0:4]
    labels = targets[:, :, -1]
    loc_t, conf_t, iou_t = jax.vmap(lambda t, l: match_one(t, l, priors))(truths, labels)

    # ---- lane-dense packing; pad the prior axis to a multiple of 8*128 = 1024 --------
    SUB = SUBLANES * LANES
    P_pad = ((P + SUB - 1) // SUB) * SUB
    S = P_pad // LANES
    pad = P_pad - P

    def padP(x):
        return jnp.pad(x, ((0, 0), (0, pad)) + ((0, 0),) * (x.ndim - 2))

    # separate lane-dense operands (no big XLA concatenate copy before the kernel)
    conf_r = _to_rows(padP(conf_data), S)                                # (B, C, S, 128)
    locp_r = _to_rows(padP(loc_data), S)                                 # (B, 4, S, 128)
    loct_r = _to_rows(padP(loc_t), S)                                    # (B, 4, S, 128)
    ioup_r = _to_rows(padP(iou_data), S)                                 # (B, 1, S, 128)
    iout_r = _to_rows(padP(iou_t.astype(jnp.float32)[..., None]), S)     # (B, 1, S, 128)
    conft_r = _to_rows(padP(conf_t.astype(jnp.float32)[..., None]), S)   # (B, 1, S, 128)

    # num_neg per image computed here (from the matcher output) and fed via scalar
    # prefetch -> no in-kernel num_pos reduce before the radix-select loop.
    num_pos = jnp.sum((conf_t > 0).astype(jnp.int32), axis=1)            # (B,)
    num_neg = jnp.minimum(NEGPOS_RATIO * num_pos, P - 1).astype(jnp.int32)

    # TODO(synk): with grid=(B,) only the batch axis is parallel; on v7x with B == 1 a
    # second parallel axis over prior tiles (with per-tile mining counts) would be
    # needed to keep both TensorCores busy.
    # NOTE: per-image resident block is (C+11)*S*128*4 B double-buffered; at realistic
    # SSD sizes this is well under the default scoped VMEM; tile S (or raise
    # vmem_limit_bytes) only for P >~ 250k priors.
    grid_spec = pltpu.PrefetchScalarGridSpec(
        num_scalar_prefetch=1,
        grid=(B,),
        in_specs=[
            pl.BlockSpec((1, C, S, LANES), lambda b, nn: (b, 0, 0, 0)),  # conf
            pl.BlockSpec((1, 4, S, LANES), lambda b, nn: (b, 0, 0, 0)),  # loc pred
            pl.BlockSpec((1, 4, S, LANES), lambda b, nn: (b, 0, 0, 0)),  # loc target
            pl.BlockSpec((1, 1, S, LANES), lambda b, nn: (b, 0, 0, 0)),  # iou pred
            pl.BlockSpec((1, 1, S, LANES), lambda b, nn: (b, 0, 0, 0)),  # iou target
            pl.BlockSpec((1, 1, S, LANES), lambda b, nn: (b, 0, 0, 0)),  # conf target
        ],
        out_specs=pl.BlockSpec((1, 8, LANES), lambda b, nn: (b, 0, 0)),  # per-lane rows
    )
    partials = pl.pallas_call(
        functools.partial(_multibox_loss_kernel, P),
        out_shape=jax.ShapeDtypeStruct((B, 8, LANES), jnp.float32),
        grid_spec=grid_spec,
        compiler_params=pltpu.CompilerParams(dimension_semantics=("parallel",)),
    )(num_neg, conf_r, locp_r, loct_r, ioup_r, iout_r, conft_r)

    # ---- final lane/batch reductions + mining tie-group correction (cheap JAX) --------
    loss_l_b = jnp.sum(partials[:, 0, :], axis=1)           # (B,)
    loss_cb_b = jnp.sum(partials[:, 1, :], axis=1)           # (B,) pos CE + strict-neg CE
    loss_iou_b = jnp.sum(partials[:, 2, :], axis=1)          # (B,)
    count_gt_b = jnp.sum(partials[:, 3, :], axis=1)          # (B,)
    kth_b = jnp.max(partials[:, 4, :], axis=1)               # (B,)

    num_neg_f = num_neg.astype(jnp.float32)
    neg_corr = jnp.where(num_neg > 0, (num_neg_f - count_gt_b) * kth_b, 0.0)
    loss_c_b = loss_cb_b + neg_corr

    N = jnp.maximum(jnp.sum(num_pos).astype(jnp.float32), 1.0)
    return jnp.sum(loss_l_b) / N, jnp.sum(loss_c_b) / N, jnp.sum(loss_iou_b) / N


if __name__ == "__main__":
    key = jax.random.PRNGKey(0)
    B, P, C, G = 2, 256, NUM_CLASSES, 3
    k1, k2, k3, k4, k5, k6 = jax.random.split(key, 6)

    # priors: 16x16 grid of centers, fixed 0.2 x 0.2 boxes (cx, cy, w, h)
    g = (jnp.arange(16, dtype=jnp.float32) + 0.5) / 16.0
    cy, cx = jnp.meshgrid(g, g, indexing="ij")
    priors = jnp.stack(
        [cx.reshape(-1), cy.reshape(-1),
         jnp.full((P,), 0.2, jnp.float32), jnp.full((P,), 0.2, jnp.float32)],
        axis=1,
    )

    # targets: (B, G, 15) -> corner-form boxes, landmark padding, label (>=1)
    centers = jax.random.uniform(k1, (B, G, 2), minval=0.25, maxval=0.75)
    sizes = jax.random.uniform(k2, (B, G, 2), minval=0.15, maxval=0.3)
    boxes = jnp.concatenate([centers - sizes / 2.0, centers + sizes / 2.0], axis=-1)
    labels = jax.random.randint(k3, (B, G, 1), 1, C).astype(jnp.float32)
    pad = jnp.zeros((B, G, 10), dtype=jnp.float32)
    targets = jnp.concatenate([boxes, pad, labels], axis=-1)

    loc_data = 0.1 * jax.random.normal(k4, (B, P, 4), dtype=jnp.float32)
    conf_data = jax.random.normal(k5, (B, P, C), dtype=jnp.float32)
    iou_data = jax.nn.sigmoid(jax.random.normal(k6, (B, P, 1), dtype=jnp.float32))

    loss_l, loss_c, loss_iou = multibox_loss(loc_data, conf_data, iou_data, priors, targets)
    jax.block_until_ready((loss_l, loss_c, loss_iou))
    print("KERNEL_OK")
</pallas_src>

<mosaic_0001>
module attributes {stable_mosaic.version = 11 : i64} {
  func.func @_multibox_loss_kernel(%arg0: i32, %arg1: memref<2xi32, #tpu.memory_space<smem>>, %arg2: memref<1x4x8x128xf32, #tpu.memory_space<vmem>>, %arg3: memref<1x4x8x128xf32, #tpu.memory_space<vmem>>, %arg4: memref<1x4x8x128xf32, #tpu.memory_space<vmem>>, %arg5: memref<1x1x8x128xf32, #tpu.memory_space<vmem>>, %arg6: memref<1x1x8x128xf32, #tpu.memory_space<vmem>>, %arg7: memref<1x1x8x128xf32, #tpu.memory_space<vmem>>, %arg8: memref<1x8x128xf32, #tpu.memory_space<vmem>>) attributes {dimension_semantics = [#tpu.dimension_semantics<parallel>], iteration_bounds = array<i64: 2>, scalar_prefetch = 1 : i64, scratch_operands = 0 : i64, tpu.core_type = #tpu.core_type<tc>, window_params = [{transform_indices = @transform_0, window_bounds = array<i64: 1, 4, 8, 128>}, {transform_indices = @transform_1, window_bounds = array<i64: 1, 4, 8, 128>}, {transform_indices = @transform_2, window_bounds = array<i64: 1, 4, 8, 128>}, {transform_indices = @transform_3, window_bounds = array<i64: 1, 1, 8, 128>}, {transform_indices = @transform_4, window_bounds = array<i64: 1, 1, 8, 128>}, {transform_indices = @transform_5, window_bounds = array<i64: 1, 1, 8, 128>}, {transform_indices = @transform_6, window_bounds = array<i64: 1, 8, 128>}]} {
    %c0 = arith.constant 0 : index
    %c0_0 = arith.constant 0 : index
    %c0_1 = arith.constant 0 : index
    %c0_2 = arith.constant 0 : index
    %0 = vector.load %arg2[%c0, %c0_0, %c0_1, %c0_2] : memref<1x4x8x128xf32, #tpu.memory_space<vmem>>, vector<1x4x8x128xf32>
    %1 = vector.shape_cast %0 : vector<1x4x8x128xf32> to vector<4x8x128xf32>
    %c0_3 = arith.constant 0 : index
    %c0_4 = arith.constant 0 : index
    %c0_5 = arith.constant 0 : index
    %c0_6 = arith.constant 0 : index
    %2 = vector.load %arg3[%c0_3, %c0_4, %c0_5, %c0_6] : memref<1x4x8x128xf32, #tpu.memory_space<vmem>>, vector<1x4x8x128xf32>
    %3 = vector.shape_cast %2 : vector<1x4x8x128xf32> to vector<4x8x128xf32>
    %c0_7 = arith.constant 0 : index
    %c0_8 = arith.constant 0 : index
    %c0_9 = arith.constant 0 : index
    %c0_10 = arith.constant 0 : index
    %4 = vector.load %arg4[%c0_7, %c0_8, %c0_9, %c0_10] : memref<1x4x8x128xf32, #tpu.memory_space<vmem>>, vector<1x4x8x128xf32>
    %5 = vector.shape_cast %4 : vector<1x4x8x128xf32> to vector<4x8x128xf32>
    %c0_11 = arith.constant 0 : index
    %c0_12 = arith.constant 0 : index
    %c0_13 = arith.constant 0 : index
    %c0_14 = arith.constant 0 : index
    %6 = vector.load %arg5[%c0_11, %c0_12, %c0_13, %c0_14] : memref<1x1x8x128xf32, #tpu.memory_space<vmem>>, vector<1x1x8x128xf32>
    %7 = vector.shape_cast %6 : vector<1x1x8x128xf32> to vector<8x128xf32>
    %c0_15 = arith.constant 0 : index
    %c0_16 = arith.constant 0 : index
    %c0_17 = arith.constant 0 : index
    %c0_18 = arith.constant 0 : index
    %8 = vector.load %arg6[%c0_15, %c0_16, %c0_17, %c0_18] : memref<1x1x8x128xf32, #tpu.memory_space<vmem>>, vector<1x1x8x128xf32>
    %9 = vector.shape_cast %8 : vector<1x1x8x128xf32> to vector<8x128xf32>
    %c0_19 = arith.constant 0 : index
    %c0_20 = arith.constant 0 : index
    %c0_21 = arith.constant 0 : index
    %c0_22 = arith.constant 0 : index
    %10 = vector.load %arg7[%c0_19, %c0_20, %c0_21, %c0_22] : memref<1x1x8x128xf32, #tpu.memory_space<vmem>>, vector<1x1x8x128xf32>
    %11 = vector.shape_cast %10 : vector<1x1x8x128xf32> to vector<8x128xf32>
    %12 = arith.index_cast %arg0 : i32 to index
    %13 = memref.load %arg1[%12] : memref<2xi32, #tpu.memory_space<smem>>
    %14 = vector.extract_strided_slice %3 {offsets = [0, 0, 0], sizes = [1, 8, 128], strides = [1, 1, 1]} : vector<4x8x128xf32> to vector<1x8x128xf32>
    %15 = vector.shape_cast %14 : vector<1x8x128xf32> to vector<8x128xf32>
    %16 = vector.extract_strided_slice %3 {offsets = [1, 0, 0], sizes = [1, 8, 128], strides = [1, 1, 1]} : vector<4x8x128xf32> to vector<1x8x128xf32>
    %17 = vector.shape_cast %16 : vector<1x8x128xf32> to vector<8x128xf32>
    %18 = vector.extract_strided_slice %3 {offsets = [2, 0, 0], sizes = [1, 8, 128], strides = [1, 1, 1]} : vector<4x8x128xf32> to vector<1x8x128xf32>
    %19 = vector.shape_cast %18 : vector<1x8x128xf32> to vector<8x128xf32>
    %20 = vector.extract_strided_slice %3 {offsets = [3, 0, 0], sizes = [1, 8, 128], strides = [1, 1, 1]} : vector<4x8x128xf32> to vector<1x8x128xf32>
    %21 = vector.shape_cast %20 : vector<1x8x128xf32> to vector<8x128xf32>
    %22 = vector.extract_strided_slice %5 {offsets = [0, 0, 0], sizes = [1, 8, 128], strides = [1, 1, 1]} : vector<4x8x128xf32> to vector<1x8x128xf32>
    %23 = vector.shape_cast %22 : vector<1x8x128xf32> to vector<8x128xf32>
    %24 = vector.extract_strided_slice %5 {offsets = [1, 0, 0], sizes = [1, 8, 128], strides = [1, 1, 1]} : vector<4x8x128xf32> to vector<1x8x128xf32>
    %25 = vector.shape_cast %24 : vector<1x8x128xf32> to vector<8x128xf32>
    %26 = vector.extract_strided_slice %5 {offsets = [2, 0, 0], sizes = [1, 8, 128], strides = [1, 1, 1]} : vector<4x8x128xf32> to vector<1x8x128xf32>
    %27 = vector.shape_cast %26 : vector<1x8x128xf32> to vector<8x128xf32>
    %28 = vector.extract_strided_slice %5 {offsets = [3, 0, 0], sizes = [1, 8, 128], strides = [1, 1, 1]} : vector<4x8x128xf32> to vector<1x8x128xf32>
    %29 = vector.shape_cast %28 : vector<1x8x128xf32> to vector<8x128xf32>
    %30 = tpu.iota {dimensions = array<i32: 0>} : vector<8x128xi32>
    %c128_i32 = arith.constant 128 : i32
    %31 = vector.broadcast %c128_i32 : i32 to vector<8x128xi32>
    %32 = arith.muli %30, %31 : vector<8x128xi32>
    %33 = tpu.iota {dimensions = array<i32: 1>} : vector<8x128xi32>
    %34 = arith.addi %32, %33 : vector<8x128xi32>
    %c256_i32 = arith.constant 256 : i32
    %35 = vector.broadcast %c256_i32 : i32 to vector<8x128xi32>
    %36 = arith.cmpi slt, %34, %35 : vector<8x128xi32>
    %cst = arith.constant 0.000000e+00 : f32
    %37 = vector.broadcast %cst : f32 to vector<8x128xf32>
    %38 = arith.cmpf ogt, %11, %37 : vector<8x128xf32>
    %39 = arith.extui %38 : vector<8x128xi1> to vector<8x128xi32>
    %40 = arith.sitofp %39 : vector<8x128xi32> to vector<8x128xf32>
    %41 = arith.minimumf %15, %23 : vector<8x128xf32>
    %42 = arith.minimumf %17, %25 : vector<8x128xf32>
    %43 = arith.maximumf %15, %23 : vector<8x128xf32>
    %44 = arith.maximumf %17, %25 : vector<8x128xf32>
    %45 = arith.minimumf %19, %27 : vector<8x128xf32>
    %46 = arith.minimumf %21, %29 : vector<8x128xf32>
    %47 = arith.minimumf %43, %45 : vector<8x128xf32>
    %48 = arith.minimumf %44, %46 : vector<8x128xf32>
    %49 = arith.maximumf %43, %45 : vector<8x128xf32>
    %50 = arith.maximumf %44, %46 : vector<8x128xf32>
    %51 = arith.subf %45, %41 : vector<8x128xf32>
    %52 = arith.subf %46, %42 : vector<8x128xf32>
    %53 = arith.mulf %51, %52 : vector<8x128xf32>
    %54 = arith.subf %47, %41 : vector<8x128xf32>
    %55 = arith.subf %48, %42 : vector<8x128xf32>
    %56 = arith.mulf %54, %55 : vector<8x128xf32>
    %57 = arith.addf %53, %56 : vector<8x128xf32>
    %58 = arith.subf %43, %41 : vector<8x128xf32>
    %59 = arith.subf %50, %42 : vector<8x128xf32>
    %60 = arith.mulf %58, %59 : vector<8x128xf32>
    %61 = arith.subf %57, %60 : vector<8x128xf32>
    %62 = arith.subf %49, %41 : vector<8x128xf32>
    %63 = arith.subf %44, %42 : vector<8x128xf32>
    %64 = arith.mulf %62, %63 : vector<8x128xf32>
    %65 = arith.subf %61, %64 : vector<8x128xf32>
    %66 = arith.subf %19, %15 : vector<8x128xf32>
    %67 = arith.subf %21, %17 : vector<8x128xf32>
    %68 = arith.mulf %66, %67 : vector<8x128xf32>
    %69 = arith.subf %27, %23 : vector<8x128xf32>
    %70 = arith.subf %29, %25 : vector<8x128xf32>
    %71 = arith.mulf %69, %70 : vector<8x128xf32>
    %72 = arith.addf %68, %71 : vector<8x128xf32>
    %73 = arith.subf %72, %65 : vector<8x128xf32>
    %cst_23 = arith.constant 1.000000e-07 : f32
    %74 = vector.broadcast %cst_23 : f32 to vector<8x128xf32>
    %75 = arith.addf %73, %74 : vector<8x128xf32>
    %76 = tpu.reciprocal %75 {approx = true} : vector<8x128xf32> -> vector<8x128xf32>
    %77 = arith.mulf %65, %76 : vector<8x128xf32>
    %cst_24 = arith.constant 1.000000e+00 : f32
    %78 = vector.broadcast %cst_24 : f32 to vector<8x128xf32>
    %79 = arith.subf %78, %77 : vector<8x128xf32>
    %cst_25 = arith.constant 2.000000e-01 : f32
    %80 = vector.broadcast %cst_25 : f32 to vector<8x128xf32>
    %81 = arith.cmpf olt, %79, %80 : vector<8x128xf32>
    %cst_26 = arith.constant 2.500000e+00 : f32
    %82 = vector.broadcast %cst_26 : f32 to vector<8x128xf32>
    %83 = arith.mulf %82, %79 : vector<8x128xf32>
    %84 = arith.mulf %83, %79 : vector<8x128xf32>
    %cst_27 = arith.constant 1.000000e-01 : f32
    %85 = vector.broadcast %cst_27 : f32 to vector<8x128xf32>
    %86 = arith.subf %79, %85 : vector<8x128xf32>
    %87 = arith.select %81, %84, %86 : vector<8x128xi1>, vector<8x128xf32>
    %88 = arith.mulf %87, %40 : vector<8x128xf32>
    %cst_28 = arith.constant dense<0.000000e+00> : vector<128xf32>
    %89 = vector.multi_reduction <add>, %88, %cst_28 [0] : vector<8x128xf32> to vector<128xf32>
    %90 = vector.shape_cast %89 : vector<128xf32> to vector<1x128xf32>
    %91 = arith.subf %7, %9 : vector<8x128xf32>
    %92 = math.absf %91 : vector<8x128xf32>
    %cst_29 = arith.constant 1.000000e+00 : f32
    %93 = vector.broadcast %cst_29 : f32 to vector<8x128xf32>
    %94 = arith.cmpf olt, %92, %93 : vector<8x128xf32>
    %cst_30 = arith.constant 5.000000e-01 : f32
    %95 = vector.broadcast %cst_30 : f32 to vector<8x128xf32>
    %96 = arith.mulf %95, %91 : vector<8x128xf32>
    %97 = arith.mulf %96, %91 : vector<8x128xf32>
    %cst_31 = arith.constant 5.000000e-01 : f32
    %98 = vector.broadcast %cst_31 : f32 to vector<8x128xf32>
    %99 = arith.subf %92, %98 : vector<8x128xf32>
    %100 = arith.select %94, %97, %99 : vector<8x128xi1>, vector<8x128xf32>
    %101 = arith.mulf %100, %40 : vector<8x128xf32>
    %cst_32 = arith.constant dense<0.000000e+00> : vector<128xf32>
    %102 = vector.multi_reduction <add>, %101, %cst_32 [0] : vector<8x128xf32> to vector<128xf32>
    %103 = vector.shape_cast %102 : vector<128xf32> to vector<1x128xf32>
    %104 = vector.extract_strided_slice %1 {offsets = [0, 0, 0], sizes = [1, 8, 128], strides = [1, 1, 1]} : vector<4x8x128xf32> to vector<1x8x128xf32>
    %105 = vector.shape_cast %104 : vector<1x8x128xf32> to vector<8x128xf32>
    %106 = vector.extract_strided_slice %1 {offsets = [1, 0, 0], sizes = [1, 8, 128], strides = [1, 1, 1]} : vector<4x8x128xf32> to vector<1x8x128xf32>
    %107 = vector.shape_cast %106 : vector<1x8x128xf32> to vector<8x128xf32>
    %108 = arith.maximumf %105, %107 : vector<8x128xf32>
    %109 = vector.extract_strided_slice %1 {offsets = [2, 0, 0], sizes = [1, 8, 128], strides = [1, 1, 1]} : vector<4x8x128xf32> to vector<1x8x128xf32>
    %110 = vector.shape_cast %109 : vector<1x8x128xf32> to vector<8x128xf32>
    %111 = arith.maximumf %108, %110 : vector<8x128xf32>
    %112 = vector.extract_strided_slice %1 {offsets = [3, 0, 0], sizes = [1, 8, 128], strides = [1, 1, 1]} : vector<4x8x128xf32> to vector<1x8x128xf32>
    %113 = vector.shape_cast %112 : vector<1x8x128xf32> to vector<8x128xf32>
    %114 = arith.maximumf %111, %113 : vector<8x128xf32>
    %115 = vector.extract_strided_slice %1 {offsets = [0, 0, 0], sizes = [1, 8, 128], strides = [1, 1, 1]} : vector<4x8x128xf32> to vector<1x8x128xf32>
    %116 = vector.shape_cast %115 : vector<1x8x128xf32> to vector<8x128xf32>
    %117 = arith.subf %116, %114 : vector<8x128xf32>
    %118 = math.exp %117 : vector<8x128xf32>
    %119 = vector.extract_strided_slice %1 {offsets = [0, 0, 0], sizes = [1, 8, 128], strides = [1, 1, 1]} : vector<4x8x128xf32> to vector<1x8x128xf32>
    %120 = vector.shape_cast %119 : vector<1x8x128xf32> to vector<8x128xf32>
    %cst_33 = arith.constant 0.000000e+00 : f32
    %121 = vector.broadcast %cst_33 : f32 to vector<8x128xf32>
    %122 = arith.cmpf oeq, %11, %121 : vector<8x128xf32>
    %123 = arith.extui %122 : vector<8x128xi1> to vector<8x128xi32>
    %124 = arith.sitofp %123 : vector<8x128xi32> to vector<8x128xf32>
    %125 = arith.mulf %120, %124 : vector<8x128xf32>
    %126 = vector.extract_strided_slice %1 {offsets = [1, 0, 0], sizes = [1, 8, 128], strides = [1, 1, 1]} : vector<4x8x128xf32> to vector<1x8x128xf32>
    %127 = vector.shape_cast %126 : vector<1x8x128xf32> to vector<8x128xf32>
    %128 = arith.subf %127, %114 : vector<8x128xf32>
    %129 = math.exp %128 : vector<8x128xf32>
    %130 = arith.addf %118, %129 : vector<8x128xf32>
    %131 = vector.extract_strided_slice %1 {offsets = [1, 0, 0], sizes = [1, 8, 128], strides = [1, 1, 1]} : vector<4x8x128xf32> to vector<1x8x128xf32>
    %132 = vector.shape_cast %131 : vector<1x8x128xf32> to vector<8x128xf32>
    %cst_34 = arith.constant 1.000000e+00 : f32
    %133 = vector.broadcast %cst_34 : f32 to vector<8x128xf32>
    %134 = arith.cmpf oeq, %11, %133 : vector<8x128xf32>
    %135 = arith.extui %134 : vector<8x128xi1> to vector<8x128xi32>
    %136 = arith.sitofp %135 : vector<8x128xi32> to vector<8x128xf32>
    %137 = arith.mulf %132, %136 : vector<8x128xf32>
    %138 = arith.addf %125, %137 : vector<8x128xf32>
    %139 = vector.extract_strided_slice %1 {offsets = [2, 0, 0], sizes = [1, 8, 128], strides = [1, 1, 1]} : vector<4x8x128xf32> to vector<1x8x128xf32>
    %140 = vector.shape_cast %139 : vector<1x8x128xf32> to vector<8x128xf32>
    %141 = arith.subf %140, %114 : vector<8x128xf32>
    %142 = math.exp %141 : vector<8x128xf32>
    %143 = arith.addf %130, %142 : vector<8x128xf32>
    %144 = vector.extract_strided_slice %1 {offsets = [2, 0, 0], sizes = [1, 8, 128], strides = [1, 1, 1]} : vector<4x8x128xf32> to vector<1x8x128xf32>
    %145 = vector.shape_cast %144 : vector<1x8x128xf32> to vector<8x128xf32>
    %cst_35 = arith.constant 2.000000e+00 : f32
    %146 = vector.broadcast %cst_35 : f32 to vector<8x128xf32>
    %147 = arith.cmpf oeq, %11, %146 : vector<8x128xf32>
    %148 = arith.extui %147 : vector<8x128xi1> to vector<8x128xi32>
    %149 = arith.sitofp %148 : vector<8x128xi32> to vector<8x128xf32>
    %150 = arith.mulf %145, %149 : vector<8x128xf32>
    %151 = arith.addf %138, %150 : vector<8x128xf32>
    %152 = vector.extract_strided_slice %1 {offsets = [3, 0, 0], sizes = [1, 8, 128], strides = [1, 1, 1]} : vector<4x8x128xf32> to vector<1x8x128xf32>
    %153 = vector.shape_cast %152 : vector<1x8x128xf32> to vector<8x128xf32>
    %154 = arith.subf %153, %114 : vector<8x128xf32>
    %155 = math.exp %154 : vector<8x128xf32>
    %156 = arith.addf %143, %155 : vector<8x128xf32>
    %157 = vector.extract_strided_slice %1 {offsets = [3, 0, 0], sizes = [1, 8, 128], strides = [1, 1, 1]} : vector<4x8x128xf32> to vector<1x8x128xf32>
    %158 = vector.shape_cast %157 : vector<1x8x128xf32> to vector<8x128xf32>
    %cst_36 = arith.constant 3.000000e+00 : f32
    %159 = vector.broadcast %cst_36 : f32 to vector<8x128xf32>
    %160 = arith.cmpf oeq, %11, %159 : vector<8x128xf32>
    %161 = arith.extui %160 : vector<8x128xi1> to vector<8x128xi32>
    %162 = arith.sitofp %161 : vector<8x128xi32> to vector<8x128xf32>
    %163 = arith.mulf %158, %162 : vector<8x128xf32>
    %164 = arith.addf %151, %163 : vector<8x128xf32>
    %165 = math.log %156 : vector<8x128xf32>
    %166 = arith.addf %165, %114 : vector<8x128xf32>
    %167 = arith.subf %166, %164 : vector<8x128xf32>
    %cst_37 = arith.constant dense<true> : vector<8x128xi1>
    %168 = arith.xori %38, %cst_37 : vector<8x128xi1>
    %169 = arith.andi %168, %36 : vector<8x128xi1>
    %cst_38 = arith.constant 0.000000e+00 : f32
    %170 = vector.broadcast %cst_38 : f32 to vector<8x128xf32>
    %171 = arith.maximumf %167, %170 : vector<8x128xf32>
    %cst_39 = arith.constant 0.000000e+00 : f32
    %172 = vector.broadcast %cst_39 : f32 to vector<8x128xf32>
    %173 = arith.select %169, %171, %172 : vector<8x128xi1>, vector<8x128xf32>
    %174 = tpu.bitcast %173 : vector<8x128xf32> -> vector<8x128xi32>
    %c-65536_i32 = arith.constant -65536 : i32
    %175 = vector.broadcast %c-65536_i32 : i32 to vector<8x128xi32>
    %176 = arith.andi %174, %175 : vector<8x128xi32>
    %c0_i32 = arith.constant 0 : i32
    %c268435456_i32 = arith.constant 268435456 : i32
    %177 = arith.addi %c0_i32, %c268435456_i32 : i32
    %178 = vector.broadcast %177 : i32 to vector<8x128xi32>
    %179 = arith.cmpi sge, %176, %178 : vector<8x128xi32>
    %180 = arith.extui %179 : vector<8x128xi1> to vector<8x128xi32>
    %181 = vector.shape_cast %180 : vector<8x128xi32> to vector<1x8x128xi32>
    %cst_40 = arith.constant dense<0> : vector<1xi32>
    %182 = vector.multi_reduction <add>, %181, %cst_40 [1, 2] : vector<1x8x128xi32> to vector<1xi32>
    %183 = vector.shape_cast %182 : vector<1xi32> to vector<1x1x1xi32>
    %184 = vector.extract %183[0, 0, 0] : i32 from vector<1x1x1xi32>
    %c0_i32_41 = arith.constant 0 : i32
    %c536870912_i32 = arith.constant 536870912 : i32
    %185 = arith.addi %c0_i32_41, %c536870912_i32 : i32
    %186 = vector.broadcast %185 : i32 to vector<8x128xi32>
    %187 = arith.cmpi sge, %176, %186 : vector<8x128xi32>
    %188 = arith.extui %187 : vector<8x128xi1> to vector<8x128xi32>
    %189 = vector.shape_cast %188 : vector<8x128xi32> to vector<1x8x128xi32>
    %cst_42 = arith.constant dense<0> : vector<1xi32>
    %190 = vector.multi_reduction <add>, %189, %cst_42 [1, 2] : vector<1x8x128xi32> to vector<1xi32>
    %191 = vector.shape_cast %190 : vector<1xi32> to vector<1x1x1xi32>
    %192 = vector.extract %191[0, 0, 0] : i32 from vector<1x1x1xi32>
    %c0_i32_43 = arith.constant 0 : i32
    %c805306368_i32 = arith.constant 805306368 : i32
    %193 = arith.addi %c0_i32_43, %c805306368_i32 : i32
    %194 = vector.broadcast %193 : i32 to vector<8x128xi32>
    %195 = arith.cmpi sge, %176, %194 : vector<8x128xi32>
    %196 = arith.extui %195 : vector<8x128xi1> to vector<8x128xi32>
    %197 = vector.shape_cast %196 : vector<8x128xi32> to vector<1x8x128xi32>
    %cst_44 = arith.constant dense<0> : vector<1xi32>
    %198 = vector.multi_reduction <add>, %197, %cst_44 [1, 2] : vector<1x8x128xi32> to vector<1xi32>
    %199 = vector.shape_cast %198 : vector<1xi32> to vector<1x1x1xi32>
    %200 = vector.extract %199[0, 0, 0] : i32 from vector<1x1x1xi32>
    %c0_i32_45 = arith.constant 0 : i32
    %c1073741824_i32 = arith.constant 1073741824 : i32
    %201 = arith.addi %c0_i32_45, %c1073741824_i32 : i32
    %202 = vector.broadcast %201 : i32 to vector<8x128xi32>
    %203 = arith.cmpi sge, %176, %202 : vector<8x128xi32>
    %204 = arith.extui %203 : vector<8x128xi1> to vector<8x128xi32>
    %205 = vector.shape_cast %204 : vector<8x128xi32> to vector<1x8x128xi32>
    %cst_46 = arith.constant dense<0> : vector<1xi32>
    %206 = vector.multi_reduction <add>, %205, %cst_46 [1, 2] : vector<1x8x128xi32> to vector<1xi32>
    %207 = vector.shape_cast %206 : vector<1xi32> to vector<1x1x1xi32>
    %208 = vector.extract %207[0, 0, 0] : i32 from vector<1x1x1xi32>
    %c0_i32_47 = arith.constant 0 : i32
    %c1342177280_i32 = arith.constant 1342177280 : i32
    %209 = arith.addi %c0_i32_47, %c1342177280_i32 : i32
    %210 = vector.broadcast %209 : i32 to vector<8x128xi32>
    %211 = arith.cmpi sge, %176, %210 : vector<8x128xi32>
    %212 = arith.extui %211 : vector<8x128xi1> to vector<8x128xi32>
    %213 = vector.shape_cast %212 : vector<8x128xi32> to vector<1x8x128xi32>
    %cst_48 = arith.constant dense<0> : vector<1xi32>
    %214 = vector.multi_reduction <add>, %213, %cst_48 [1, 2] : vector<1x8x128xi32> to vector<1xi32>
    %215 = vector.shape_cast %214 : vector<1xi32> to vector<1x1x1xi32>
    %216 = vector.extract %215[0, 0, 0] : i32 from vector<1x1x1xi32>
    %c0_i32_49 = arith.constant 0 : i32
    %c1610612736_i32 = arith.constant 1610612736 : i32
    %217 = arith.addi %c0_i32_49, %c1610612736_i32 : i32
    %218 = vector.broadcast %217 : i32 to vector<8x128xi32>
    %219 = arith.cmpi sge, %176, %218 : vector<8x128xi32>
    %220 = arith.extui %219 : vector<8x128xi1> to vector<8x128xi32>
    %221 = vector.shape_cast %220 : vector<8x128xi32> to vector<1x8x128xi32>
    %cst_50 = arith.constant dense<0> : vector<1xi32>
    %222 = vector.multi_reduction <add>, %221, %cst_50 [1, 2] : vector<1x8x128xi32> to vector<1xi32>
    %223 = vector.shape_cast %222 : vector<1xi32> to vector<1x1x1xi32>
    %224 = vector.extract %223[0, 0, 0] : i32 from vector<1x1x1xi32>
    %c0_i32_51 = arith.constant 0 : i32
    %c1879048192_i32 = arith.constant 1879048192 : i32
    %225 = arith.addi %c0_i32_51, %c1879048192_i32 : i32
    %226 = vector.broadcast %225 : i32 to vector<8x128xi32>
    %227 = arith.cmpi sge, %176, %226 : vector<8x128xi32>
    %228 = arith.extui %227 : vector<8x128xi1> to vector<8x128xi32>
    %229 = vector.shape_cast %228 : vector<8x128xi32> to vector<1x8x128xi32>
    %cst_52 = arith.constant dense<0> : vector<1xi32>
    %230 = vector.multi_reduction <add>, %229, %cst_52 [1, 2] : vector<1x8x128xi32> to vector<1xi32>
    %231 = vector.shape_cast %230 : vector<1xi32> to vector<1x1x1xi32>
    %232 = vector.extract %231[0, 0, 0] : i32 from vector<1x1x1xi32>
    %233 = arith.cmpi sge, %184, %13 : i32
    %234 = arith.extui %233 : i1 to i32
    %c0_i32_53 = arith.constant 0 : i32
    %235 = arith.addi %c0_i32_53, %234 : i32
    %236 = arith.cmpi sge, %192, %13 : i32
    %237 = arith.extui %236 : i1 to i32
    %238 = arith.addi %235, %237 : i32
    %239 = arith.cmpi sge, %200, %13 : i32
    %240 = arith.extui %239 : i1 to i32
    %241 = arith.addi %238, %240 : i32
    %242 = arith.cmpi sge, %208, %13 : i32
    %243 = arith.extui %242 : i1 to i32
    %244 = arith.addi %241, %243 : i32
    %245 = arith.cmpi sge, %216, %13 : i32
    %246 = arith.extui %245 : i1 to i32
    %247 = arith.addi %244, %246 : i32
    %248 = arith.cmpi sge, %224, %13 : i32
    %249 = arith.extui %248 : i1 to i32
    %250 = arith.addi %247, %249 : i32
    %251 = arith.cmpi sge, %232, %13 : i32
    %252 = arith.extui %251 : i1 to i32
    %253 = arith.addi %250, %252 : i32
    %c268435456_i32_54 = arith.constant 268435456 : i32
    %254 = arith.muli %253, %c268435456_i32_54 : i32
    %c0_i32_55 = arith.constant 0 : i32
    %255 = arith.addi %c0_i32_55, %254 : i32
    %c16777216_i32 = arith.constant 16777216 : i32
    %256 = arith.addi %255, %c16777216_i32 : i32
    %257 = vector.broadcast %256 : i32 to vector<8x128xi32>
    %258 = arith.cmpi sge, %176, %257 : vector<8x128xi32>
    %259 = arith.extui %258 : vector<8x128xi1> to vector<8x128xi32>
    %260 = vector.shape_cast %259 : vector<8x128xi32> to vector<1x8x128xi32>
    %cst_56 = arith.constant dense<0> : vector<1xi32>
    %261 = vector.multi_reduction <add>, %260, %cst_56 [1, 2] : vector<1x8x128xi32> to vector<1xi32>
    %262 = vector.shape_cast %261 : vector<1xi32> to vector<1x1x1xi32>
    %263 = vector.extract %262[0, 0, 0] : i32 from vector<1x1x1xi32>
    %c33554432_i32 = arith.constant 33554432 : i32
    %264 = arith.addi %255, %c33554432_i32 : i32
    %265 = vector.broadcast %264 : i32 to vector<8x128xi32>
    %266 = arith.cmpi sge, %176, %265 : vector<8x128xi32>
    %267 = arith.extui %266 : vector<8x128xi1> to vector<8x128xi32>
    %268 = vector.shape_cast %267 : vector<8x128xi32> to vector<1x8x128xi32>
    %cst_57 = arith.constant dense<0> : vector<1xi32>
    %269 = vector.multi_reduction <add>, %268, %cst_57 [1, 2] : vector<1x8x128xi32> to vector<1xi32>
    %270 = vector.shape_cast %269 : vector<1xi32> to vector<1x1x1xi32>
    %271 = vector.extract %270[0, 0, 0] : i32 from vector<1x1x1xi32>
    %c50331648_i32 = arith.constant 50331648 : i32
    %272 = arith.addi %255, %c50331648_i32 : i32
    %273 = vector.broadcast %272 : i32 to vector<8x128xi32>
    %274 = arith.cmpi sge, %176, %273 : vector<8x128xi32>
    %275 = arith.extui %274 : vector<8x128xi1> to vector<8x128xi32>
    %276 = vector.shape_cast %275 : vector<8x128xi32> to vector<1x8x128xi32>
    %cst_58 = arith.constant dense<0> : vector<1xi32>
    %277 = vector.multi_reduction <add>, %276, %cst_58 [1, 2] : vector<1x8x128xi32> to vector<1xi32>
    %278 = vector.shape_cast %277 : vector<1xi32> to vector<1x1x1xi32>
    %279 = vector.extract %278[0, 0, 0] : i32 from vector<1x1x1xi32>
    %c67108864_i32 = arith.constant 67108864 : i32
    %280 = arith.addi %255, %c67108864_i32 : i32
    %281 = vector.broadcast %280 : i32 to vector<8x128xi32>
    %282 = arith.cmpi sge, %176, %281 : vector<8x128xi32>
    %283 = arith.extui %282 : vector<8x128xi1> to vector<8x128xi32>
    %284 = vector.shape_cast %283 : vector<8x128xi32> to vector<1x8x128xi32>
    %cst_59 = arith.constant dense<0> : vector<1xi32>
    %285 = vector.multi_reduction <add>, %284, %cst_59 [1, 2] : vector<1x8x128xi32> to vector<1xi32>
    %286 = vector.shape_cast %285 : vector<1xi32> to vector<1x1x1xi32>
    %287 = vector.extract %286[0, 0, 0] : i32 from vector<1x1x1xi32>
    %c83886080_i32 = arith.constant 83886080 : i32
    %288 = arith.addi %255, %c83886080_i32 : i32
    %289 = vector.broadcast %288 : i32 to vector<8x128xi32>
    %290 = arith.cmpi sge, %176, %289 : vector<8x128xi32>
    %291 = arith.extui %290 : vector<8x128xi1> to vector<8x128xi32>
    %292 = vector.shape_cast %291 : vector<8x128xi32> to vector<1x8x128xi32>
    %cst_60 = arith.constant dense<0> : vector<1xi32>
    %293 = vector.multi_reduction <add>, %292, %cst_60 [1, 2] : vector<1x8x128xi32> to vector<1xi32>
    %294 = vector.shape_cast %293 : vector<1xi32> to vector<1x1x1xi32>
    %295 = vector.extract %294[0, 0, 0] : i32 from vector<1x1x1xi32>
    %c100663296_i32 = arith.constant 100663296 : i32
    %296 = arith.addi %255, %c100663296_i32 : i32
    %297 = vector.broadcast %296 : i32 to vector<8x128xi32>
    %298 = arith.cmpi sge, %176, %297 : vector<8x128xi32>
    %299 = arith.extui %298 : vector<8x128xi1> to vector<8x128xi32>
    %300 = vector.shape_cast %299 : vector<8x128xi32> to vector<1x8x128xi32>
    %cst_61 = arith.constant dense<0> : vector<1xi32>
    %301 = vector.multi_reduction <add>, %300, %cst_61 [1, 2] : vector<1x8x128xi32> to vector<1xi32>
    %302 = vector.shape_cast %301 : vector<1xi32> to vector<1x1x1xi32>
    %303 = vector.extract %302[0, 0, 0] : i32 from vector<1x1x1xi32>
    %c117440512_i32 = arith.constant 117440512 : i32
    %304 = arith.addi %255, %c117440512_i32 : i32
    %305 = vector.broadcast %304 : i32 to vector<8x128xi32>
    %306 = arith.cmpi sge, %176, %305 : vector<8x128xi32>
    %307 = arith.extui %306 : vector<8x128xi1> to vector<8x128xi32>
    %308 = vector.shape_cast %307 : vector<8x128xi32> to vector<1x8x128xi32>
    %cst_62 = arith.constant dense<0> : vector<1xi32>
    %309 = vector.multi_reduction <add>, %308, %cst_62 [1, 2] : vector<1x8x128xi32> to vector<1xi32>
    %310 = vector.shape_cast %309 : vector<1xi32> to vector<1x1x1xi32>
    %311 = vector.extract %310[0, 0, 0] : i32 from vector<1x1x1xi32>
    %c134217728_i32 = arith.constant 134217728 : i32
    %312 = arith.addi %255, %c134217728_i32 : i32
    %313 = vector.broadcast %312 : i32 to vector<8x128xi32>
    %314 = arith.cmpi sge, %176, %313 : vector<8x128xi32>
    %315 = arith.extui %314 : vector<8x128xi1> to vector<8x128xi32>
    %316 = vector.shape_cast %315 : vector<8x128xi32> to vector<1x8x128xi32>
    %cst_63 = arith.constant dense<0> : vector<1xi32>
    %317 = vector.multi_reduction <add>, %316, %cst_63 [1, 2] : vector<1x8x128xi32> to vector<1xi32>
    %318 = vector.shape_cast %317 : vector<1xi32> to vector<1x1x1xi32>
    %319 = vector.extract %318[0, 0, 0] : i32 from vector<1x1x1xi32>
    %c150994944_i32 = arith.constant 150994944 : i32
    %320 = arith.addi %255, %c150994944_i32 : i32
    %321 = vector.broadcast %320 : i32 to vector<8x128xi32>
    %322 = arith.cmpi sge, %176, %321 : vector<8x128xi32>
    %323 = arith.extui %322 : vector<8x128xi1> to vector<8x128xi32>
    %324 = vector.shape_cast %323 : vector<8x128xi32> to vector<1x8x128xi32>
    %cst_64 = arith.constant dense<0> : vector<1xi32>
    %325 = vector.multi_reduction <add>, %324, %cst_64 [1, 2] : vector<1x8x128xi32> to vector<1xi32>
    %326 = vector.shape_cast %325 : vector<1xi32> to vector<1x1x1xi32>
    %327 = vector.extract %326[0, 0, 0] : i32 from vector<1x1x1xi32>
    %c167772160_i32 = arith.constant 167772160 : i32
    %328 = arith.addi %255, %c167772160_i32 : i32
    %329 = vector.broadcast %328 : i32 to vector<8x128xi32>
    %330 = arith.cmpi sge, %176, %329 : vector<8x128xi32>
    %331 = arith.extui %330 : vector<8x128xi1> to vector<8x128xi32>
    %332 = vector.shape_cast %331 : vector<8x128xi32> to vector<1x8x128xi32>
    %cst_65 = arith.constant dense<0> : vector<1xi32>
    %333 = vector.multi_reduction <add>, %332, %cst_65 [1, 2] : vector<1x8x128xi32> to vector<1xi32>
    %334 = vector.shape_cast %333 : vector<1xi32> to vector<1x1x1xi32>
    %335 = vector.extract %334[0, 0, 0] : i32 from vector<1x1x1xi32>
    %c184549376_i32 = arith.constant 184549376 : i32
    %336 = arith.addi %255, %c184549376_i32 : i32
    %337 = vector.broadcast %336 : i32 to vector<8x128xi32>
    %338 = arith.cmpi sge, %176, %337 : vector<8x128xi32>
    %339 = arith.extui %338 : vector<8x128xi1> to vector<8x128xi32>
    %340 = vector.shape_cast %339 : vector<8x128xi32> to vector<1x8x128xi32>
    %cst_66 = arith.constant dense<0> : vector<1xi32>
    %341 = vector.multi_reduction <add>, %340, %cst_66 [1, 2] : vector<1x8x128xi32> to vector<1xi32>
    %342 = vector.shape_cast %341 : vector<1xi32> to vector<1x1x1xi32>
    %343 = vector.extract %342[0, 0, 0] : i32 from vector<1x1x1xi32>
    %c201326592_i32 = arith.constant 201326592 : i32
    %344 = arith.addi %255, %c201326592_i32 : i32
    %345 = vector.broadcast %344 : i32 to vector<8x128xi32>
    %346 = arith.cmpi sge, %176, %345 : vector<8x128xi32>
    %347 = arith.extui %346 : vector<8x128xi1> to vector<8x128xi32>
    %348 = vector.shape_cast %347 : vector<8x128xi32> to vector<1x8x128xi32>
    %cst_67 = arith.constant dense<0> : vector<1xi32>
    %349 = vector.multi_reduction <add>, %348, %cst_67 [1, 2] : vector<1x8x128xi32> to vector<1xi32>
    %350 = vector.shape_cast %349 : vector<1xi32> to vector<1x1x1xi32>
    %351 = vector.extract %350[0, 0, 0] : i32 from vector<1x1x1xi32>
    %c218103808_i32 = arith.constant 218103808 : i32
    %352 = arith.addi %255, %c218103808_i32 : i32
    %353 = vector.broadcast %352 : i32 to vector<8x128xi32>
    %354 = arith.cmpi sge, %176, %353 : vector<8x128xi32>
    %355 = arith.extui %354 : vector<8x128xi1> to vector<8x128xi32>
    %356 = vector.shape_cast %355 : vector<8x128xi32> to vector<1x8x128xi32>
    %cst_68 = arith.constant dense<0> : vector<1xi32>
    %357 = vector.multi_reduction <add>, %356, %cst_68 [1, 2] : vector<1x8x128xi32> to vector<1xi32>
    %358 = vector.shape_cast %357 : vector<1xi32> to vector<1x1x1xi32>
    %359 = vector.extract %358[0, 0, 0] : i32 from vector<1x1x1xi32>
    %c234881024_i32 = arith.constant 234881024 : i32
    %360 = arith.addi %255, %c234881024_i32 : i32
    %361 = vector.broadcast %360 : i32 to vector<8x128xi32>
    %362 = arith.cmpi sge, %176, %361 : vector<8x128xi32>
    %363 = arith.extui %362 : vector<8x128xi1> to vector<8x128xi32>
    %364 = vector.shape_cast %363 : vector<8x128xi32> to vector<1x8x128xi32>
    %cst_69 = arith.constant dense<0> : vector<1xi32>
    %365 = vector.multi_reduction <add>, %364, %cst_69 [1, 2] : vector<1x8x128xi32> to vector<1xi32>
    %366 = vector.shape_cast %365 : vector<1xi32> to vector<1x1x1xi32>
    %367 = vector.extract %366[0, 0, 0] : i32 from vector<1x1x1xi32>
    %c251658240_i32 = arith.constant 251658240 : i32
    %368 = arith.addi %255, %c251658240_i32 : i32
    %369 = vector.broadcast %368 : i32 to vector<8x128xi32>
    %370 = arith.cmpi sge, %176, %369 : vector<8x128xi32>
    %371 = arith.extui %370 : vector<8x128xi1> to vector<8x128xi32>
    %372 = vector.shape_cast %371 : vector<8x128xi32> to vector<1x8x128xi32>
    %cst_70 = arith.constant dense<0> : vector<1xi32>
    %373 = vector.multi_reduction <add>, %372, %cst_70 [1, 2] : vector<1x8x128xi32> to vector<1xi32>
    %374 = vector.shape_cast %373 : vector<1xi32> to vector<1x1x1xi32>
    %375 = vector.extract %374[0, 0, 0] : i32 from vector<1x1x1xi32>
    %376 = arith.cmpi sge, %263, %13 : i32
    %377 = arith.extui %376 : i1 to i32
    %c0_i32_71 = arith.constant 0 : i32
    %378 = arith.addi %c0_i32_71, %377 : i32
    %379 = arith.cmpi sge, %271, %13 : i32
    %380 = arith.extui %379 : i1 to i32
    %381 = arith.addi %378, %380 : i32
    %382 = arith.cmpi sge, %279, %13 : i32
    %383 = arith.extui %382 : i1 to i32
    %384 = arith.addi %381, %383 : i32
    %385 = arith.cmpi sge, %287, %13 : i32
    %386 = arith.extui %385 : i1 to i32
    %387 = arith.addi %384, %386 : i32
    %388 = arith.cmpi sge, %295, %13 : i32
    %389 = arith.extui %388 : i1 to i32
    %390 = arith.addi %387, %389 : i32
    %391 = arith.cmpi sge, %303, %13 : i32
    %392 = arith.extui %391 : i1 to i32
    %393 = arith.addi %390, %392 : i32
    %394 = arith.cmpi sge, %311, %13 : i32
    %395 = arith.extui %394 : i1 to i32
    %396 = arith.addi %393, %395 : i32
    %397 = arith.cmpi sge, %319, %13 : i32
    %398 = arith.extui %397 : i1 to i32
    %399 = arith.addi %396, %398 : i32
    %400 = arith.cmpi sge, %327, %13 : i32
    %401 = arith.extui %400 : i1 to i32
    %402 = arith.addi %399, %401 : i32
    %403 = arith.cmpi sge, %335, %13 : i32
    %404 = arith.extui %403 : i1 to i32
    %405 = arith.addi %402, %404 : i32
    %406 = arith.cmpi sge, %343, %13 : i32
    %407 = arith.extui %406 : i1 to i32
    %408 = arith.addi %405, %407 : i32
    %409 = arith.cmpi sge, %351, %13 : i32
    %410 = arith.extui %409 : i1 to i32
    %411 = arith.addi %408, %410 : i32
    %412 = arith.cmpi sge, %359, %13 : i32
    %413 = arith.extui %412 : i1 to i32
    %414 = arith.addi %411, %413 : i32
    %415 = arith.cmpi sge, %367, %13 : i32
    %416 = arith.extui %415 : i1 to i32
    %417 = arith.addi %414, %416 : i32
    %418 = arith.cmpi sge, %375, %13 : i32
    %419 = arith.extui %418 : i1 to i32
    %420 = arith.addi %417, %419 : i32
    %c16777216_i32_72 = arith.constant 16777216 : i32
    %421 = arith.muli %420, %c16777216_i32_72 : i32
    %422 = arith.addi %255, %421 : i32
    %c1048576_i32 = arith.constant 1048576 : i32
    %423 = arith.addi %422, %c1048576_i32 : i32
    %424 = vector.broadcast %423 : i32 to vector<8x128xi32>
    %425 = arith.cmpi sge, %176, %424 : vector<8x128xi32>
    %426 = arith.extui %425 : vector<8x128xi1> to vector<8x128xi32>
    %427 = vector.shape_cast %426 : vector<8x128xi32> to vector<1x8x128xi32>
    %cst_73 = arith.constant dense<0> : vector<1xi32>
    %428 = vector.multi_reduction <add>, %427, %cst_73 [1, 2] : vector<1x8x128xi32> to vector<1xi32>
    %429 = vector.shape_cast %428 : vector<1xi32> to vector<1x1x1xi32>
    %430 = vector.extract %429[0, 0, 0] : i32 from vector<1x1x1xi32>
    %c2097152_i32 = arith.constant 2097152 : i32
    %431 = arith.addi %422, %c2097152_i32 : i32
    %432 = vector.broadcast %431 : i32 to vector<8x128xi32>
    %433 = arith.cmpi sge, %176, %432 : vector<8x128xi32>
    %434 = arith.extui %433 : vector<8x128xi1> to vector<8x128xi32>
    %435 = vector.shape_cast %434 : vector<8x128xi32> to vector<1x8x128xi32>
    %cst_74 = arith.constant dense<0> : vector<1xi32>
    %436 = vector.multi_reduction <add>, %435, %cst_74 [1, 2] : vector<1x8x128xi32> to vector<1xi32>
    %437 = vector.shape_cast %436 : vector<1xi32> to vector<1x1x1xi32>
    %438 = vector.extract %437[0, 0, 0] : i32 from vector<1x1x1xi32>
    %c3145728_i32 = arith.constant 3145728 : i32
    %439 = arith.addi %422, %c3145728_i32 : i32
    %440 = vector.broadcast %439 : i32 to vector<8x128xi32>
    %441 = arith.cmpi sge, %176, %440 : vector<8x128xi32>
    %442 = arith.extui %441 : vector<8x128xi1> to vector<8x128xi32>
    %443 = vector.shape_cast %442 : vector<8x128xi32> to vector<1x8x128xi32>
    %cst_75 = arith.constant dense<0> : vector<1xi32>
    %444 = vector.multi_reduction <add>, %443, %cst_75 [1, 2] : vector<1x8x128xi32> to vector<1xi32>
    %445 = vector.shape_cast %444 : vector<1xi32> to vector<1x1x1xi32>
    %446 = vector.extract %445[0, 0, 0] : i32 from vector<1x1x1xi32>
    %c4194304_i32 = arith.constant 4194304 : i32
    %447 = arith.addi %422, %c4194304_i32 : i32
    %448 = vector.broadcast %447 : i32 to vector<8x128xi32>
    %449 = arith.cmpi sge, %176, %448 : vector<8x128xi32>
    %450 = arith.extui %449 : vector<8x128xi1> to vector<8x128xi32>
    %451 = vector.shape_cast %450 : vector<8x128xi32> to vector<1x8x128xi32>
    %cst_76 = arith.constant dense<0> : vector<1xi32>
    %452 = vector.multi_reduction <add>, %451, %cst_76 [1, 2] : vector<1x8x128xi32> to vector<1xi32>
    %453 = vector.shape_cast %452 : vector<1xi32> to vector<1x1x1xi32>
    %454 = vector.extract %453[0, 0, 0] : i32 from vector<1x1x1xi32>
    %c5242880_i32 = arith.constant 5242880 : i32
    %455 = arith.addi %422, %c5242880_i32 : i32
    %456 = vector.broadcast %455 : i32 to vector<8x128xi32>
    %457 = arith.cmpi sge, %176, %456 : vector<8x128xi32>
    %458 = arith.extui %457 : vector<8x128xi1> to vector<8x128xi32>
    %459 = vector.shape_cast %458 : vector<8x128xi32> to vector<1x8x128xi32>
    %cst_77 = arith.constant dense<0> : vector<1xi32>
    %460 = vector.multi_reduction <add>, %459, %cst_77 [1, 2] : vector<1x8x128xi32> to vector<1xi32>
    %461 = vector.shape_cast %460 : vector<1xi32> to vector<1x1x1xi32>
    %462 = vector.extract %461[0, 0, 0] : i32 from vector<1x1x1xi32>
    %c6291456_i32 = arith.constant 6291456 : i32
    %463 = arith.addi %422, %c6291456_i32 : i32
    %464 = vector.broadcast %463 : i32 to vector<8x128xi32>
    %465 = arith.cmpi sge, %176, %464 : vector<8x128xi32>
    %466 = arith.extui %465 : vector<8x128xi1> to vector<8x128xi32>
    %467 = vector.shape_cast %466 : vector<8x128xi32> to vector<1x8x128xi32>
    %cst_78 = arith.constant dense<0> : vector<1xi32>
    %468 = vector.multi_reduction <add>, %467, %cst_78 [1, 2] : vector<1x8x128xi32> to vector<1xi32>
    %469 = vector.shape_cast %468 : vector<1xi32> to vector<1x1x1xi32>
    %470 = vector.extract %469[0, 0, 0] : i32 from vector<1x1x1xi32>
    %c7340032_i32 = arith.constant 7340032 : i32
    %471 = arith.addi %422, %c7340032_i32 : i32
    %472 = vector.broadcast %471 : i32 to vector<8x128xi32>
    %473 = arith.cmpi sge, %176, %472 : vector<8x128xi32>
    %474 = arith.extui %473 : vector<8x128xi1> to vector<8x128xi32>
    %475 = vector.shape_cast %474 : vector<8x128xi32> to vector<1x8x128xi32>
    %cst_79 = arith.constant dense<0> : vector<1xi32>
    %476 = vector.multi_reduction <add>, %475, %cst_79 [1, 2] : vector<1x8x128xi32> to vector<1xi32>
    %477 = vector.shape_cast %476 : vector<1xi32> to vector<1x1x1xi32>
    %478 = vector.extract %477[0, 0, 0] : i32 from vector<1x1x1xi32>
    %c8388608_i32 = arith.constant 8388608 : i32
    %479 = arith.addi %422, %c8388608_i32 : i32
    %480 = vector.broadcast %479 : i32 to vector<8x128xi32>
    %481 = arith.cmpi sge, %176, %480 : vector<8x128xi32>
    %482 = arith.extui %481 : vector<8x128xi1> to vector<8x128xi32>
    %483 = vector.shape_cast %482 : vector<8x128xi32> to vector<1x8x128xi32>
    %cst_80 = arith.constant dense<0> : vector<1xi32>
    %484 = vector.multi_reduction <add>, %483, %cst_80 [1, 2] : vector<1x8x128xi32> to vector<1xi32>
    %485 = vector.shape_cast %484 : vector<1xi32> to vector<1x1x1xi32>
    %486 = vector.extract %485[0, 0, 0] : i32 from vector<1x1x1xi32>
    %c9437184_i32 = arith.constant 9437184 : i32
    %487 = arith.addi %422, %c9437184_i32 : i32
    %488 = vector.broadcast %487 : i32 to vector<8x128xi32>
    %489 = arith.cmpi sge, %176, %488 : vector<8x128xi32>
    %490 = arith.extui %489 : vector<8x128xi1> to vector<8x128xi32>
    %491 = vector.shape_cast %490 : vector<8x128xi32> to vector<1x8x128xi32>
    %cst_81 = arith.constant dense<0> : vector<1xi32>
    %492 = vector.multi_reduction <add>, %491, %cst_81 [1, 2] : vector<1x8x128xi32> to vector<1xi32>
    %493 = vector.shape_cast %492 : vector<1xi32> to vector<1x1x1xi32>
    %494 = vector.extract %493[0, 0, 0] : i32 from vector<1x1x1xi32>
    %c10485760_i32 = arith.constant 10485760 : i32
    %495 = arith.addi %422, %c10485760_i32 : i32
    %496 = vector.broadcast %495 : i32 to vector<8x128xi32>
    %497 = arith.cmpi sge, %176, %496 : vector<8x128xi32>
    %498 = arith.extui %497 : vector<8x128xi1> to vector<8x128xi32>
    %499 = vector.shape_cast %498 : vector<8x128xi32> to vector<1x8x128xi32>
    %cst_82 = arith.constant dense<0> : vector<1xi32>
    %500 = vector.multi_reduction <add>, %499, %cst_82 [1, 2] : vector<1x8x128xi32> to vector<1xi32>
    %501 = vector.shape_cast %500 : vector<1xi32> to vector<1x1x1xi32>
    %502 = vector.extract %501[0, 0, 0] : i32 from vector<1x1x1xi32>
    %c11534336_i32 = arith.constant 11534336 : i32
    %503 = arith.addi %422, %c11534336_i32 : i32
    %504 = vector.broadcast %503 : i32 to vector<8x128xi32>
    %505 = arith.cmpi sge, %176, %504 : vector<8x128xi32>
    %506 = arith.extui %505 : vector<8x128xi1> to vector<8x128xi32>
    %507 = vector.shape_cast %506 : vector<8x128xi32> to vector<1x8x128xi32>
    %cst_83 = arith.constant dense<0> : vector<1xi32>
    %508 = vector.multi_reduction <add>, %507, %cst_83 [1, 2] : vector<1x8x128xi32> to vector<1xi32>
    %509 = vector.shape_cast %508 : vector<1xi32> to vector<1x1x1xi32>
    %510 = vector.extract %509[0, 0, 0] : i32 from vector<1x1x1xi32>
    %c12582912_i32 = arith.constant 12582912 : i32
    %511 = arith.addi %422, %c12582912_i32 : i32
    %512 = vector.broadcast %511 : i32 to vector<8x128xi32>
    %513 = arith.cmpi sge, %176, %512 : vector<8x128xi32>
    %514 = arith.extui %513 : vector<8x128xi1> to vector<8x128xi32>
    %515 = vector.shape_cast %514 : vector<8x128xi32> to vector<1x8x128xi32>
    %cst_84 = arith.constant dense<0> : vector<1xi32>
    %516 = vector.multi_reduction <add>, %515, %cst_84 [1, 2] : vector<1x8x128xi32> to vector<1xi32>
    %517 = vector.shape_cast %516 : vector<1xi32> to vector<1x1x1xi32>
    %518 = vector.extract %517[0, 0, 0] : i32 from vector<1x1x1xi32>
    %c13631488_i32 = arith.constant 13631488 : i32
    %519 = arith.addi %422, %c13631488_i32 : i32
    %520 = vector.broadcast %519 : i32 to vector<8x128xi32>
    %521 = arith.cmpi sge, %176, %520 : vector<8x128xi32>
    %522 = arith.extui %521 : vector<8x128xi1> to vector<8x128xi32>
    %523 = vector.shape_cast %522 : vector<8x128xi32> to vector<1x8x128xi32>
    %cst_85 = arith.constant dense<0> : vector<1xi32>
    %524 = vector.multi_reduction <add>, %523, %cst_85 [1, 2] : vector<1x8x128xi32> to vector<1xi32>
    %525 = vector.shape_cast %524 : vector<1xi32> to vector<1x1x1xi32>
    %526 = vector.extract %525[0, 0, 0] : i32 from vector<1x1x1xi32>
    %c14680064_i32 = arith.constant 14680064 : i32
    %527 = arith.addi %422, %c14680064_i32 : i32
    %528 = vector.broadcast %527 : i32 to vector<8x128xi32>
    %529 = arith.cmpi sge, %176, %528 : vector<8x128xi32>
    %530 = arith.extui %529 : vector<8x128xi1> to vector<8x128xi32>
    %531 = vector.shape_cast %530 : vector<8x128xi32> to vector<1x8x128xi32>
    %cst_86 = arith.constant dense<0> : vector<1xi32>
    %532 = vector.multi_reduction <add>, %531, %cst_86 [1, 2] : vector<1x8x128xi32> to vector<1xi32>
    %533 = vector.shape_cast %532 : vector<1xi32> to vector<1x1x1xi32>
    %534 = vector.extract %533[0, 0, 0] : i32 from vector<1x1x1xi32>
    %c15728640_i32 = arith.constant 15728640 : i32
    %535 = arith.addi %422, %c15728640_i32 : i32
    %536 = vector.broadcast %535 : i32 to vector<8x128xi32>
    %537 = arith.cmpi sge, %176, %536 : vector<8x128xi32>
    %538 = arith.extui %537 : vector<8x128xi1> to vector<8x128xi32>
    %539 = vector.shape_cast %538 : vector<8x128xi32> to vector<1x8x128xi32>
    %cst_87 = arith.constant dense<0> : vector<1xi32>
    %540 = vector.multi_reduction <add>, %539, %cst_87 [1, 2] : vector<1x8x128xi32> to vector<1xi32>
    %541 = vector.shape_cast %540 : vector<1xi32> to vector<1x1x1xi32>
    %542 = vector.extract %541[0, 0, 0] : i32 from vector<1x1x1xi32>
    %543 = arith.cmpi sge, %430, %13 : i32
    %544 = arith.extui %543 : i1 to i32
    %c0_i32_88 = arith.constant 0 : i32
    %545 = arith.addi %c0_i32_88, %544 : i32
    %546 = arith.cmpi sge, %438, %13 : i32
    %547 = arith.extui %546 : i1 to i32
    %548 = arith.addi %545, %547 : i32
    %549 = arith.cmpi sge, %446, %13 : i32
    %550 = arith.extui %549 : i1 to i32
    %551 = arith.addi %548, %550 : i32
    %552 = arith.cmpi sge, %454, %13 : i32
    %553 = arith.extui %552 : i1 to i32
    %554 = arith.addi %551, %553 : i32
    %555 = arith.cmpi sge, %462, %13 : i32
    %556 = arith.extui %555 : i1 to i32
    %557 = arith.addi %554, %556 : i32
    %558 = arith.cmpi sge, %470, %13 : i32
    %559 = arith.extui %558 : i1 to i32
    %560 = arith.addi %557, %559 : i32
    %561 = arith.cmpi sge, %478, %13 : i32
    %562 = arith.extui %561 : i1 to i32
    %563 = arith.addi %560, %562 : i32
    %564 = arith.cmpi sge, %486, %13 : i32
    %565 = arith.extui %564 : i1 to i32
    %566 = arith.addi %563, %565 : i32
    %567 = arith.cmpi sge, %494, %13 : i32
    %568 = arith.extui %567 : i1 to i32
    %569 = arith.addi %566, %568 : i32
    %570 = arith.cmpi sge, %502, %13 : i32
    %571 = arith.extui %570 : i1 to i32
    %572 = arith.addi %569, %571 : i32
    %573 = arith.cmpi sge, %510, %13 : i32
    %574 = arith.extui %573 : i1 to i32
    %575 = arith.addi %572, %574 : i32
    %576 = arith.cmpi sge, %518, %13 : i32
    %577 = arith.extui %576 : i1 to i32
    %578 = arith.addi %575, %577 : i32
    %579 = arith.cmpi sge, %526, %13 : i32
    %580 = arith.extui %579 : i1 to i32
    %581 = arith.addi %578, %580 : i32
    %582 = arith.cmpi sge, %534, %13 : i32
    %583 = arith.extui %582 : i1 to i32
    %584 = arith.addi %581, %583 : i32
    %585 = arith.cmpi sge, %542, %13 : i32
    %586 = arith.extui %585 : i1 to i32
    %587 = arith.addi %584, %586 : i32
    %c1048576_i32_89 = arith.constant 1048576 : i32
    %588 = arith.muli %587, %c1048576_i32_89 : i32
    %589 = arith.addi %422, %588 : i32
    %c65536_i32 = arith.constant 65536 : i32
    %590 = arith.addi %589, %c65536_i32 : i32
    %591 = vector.broadcast %590 : i32 to vector<8x128xi32>
    %592 = arith.cmpi sge, %176, %591 : vector<8x128xi32>
    %593 = arith.extui %592 : vector<8x128xi1> to vector<8x128xi32>
    %594 = vector.shape_cast %593 : vector<8x128xi32> to vector<1x8x128xi32>
    %cst_90 = arith.constant dense<0> : vector<1xi32>
    %595 = vector.multi_reduction <add>, %594, %cst_90 [1, 2] : vector<1x8x128xi32> to vector<1xi32>
    %596 = vector.shape_cast %595 : vector<1xi32> to vector<1x1x1xi32>
    %597 = vector.extract %596[0, 0, 0] : i32 from vector<1x1x1xi32>
    %c131072_i32 = arith.constant 131072 : i32
    %598 = arith.addi %589, %c131072_i32 : i32
    %599 = vector.broadcast %598 : i32 to vector<8x128xi32>
    %600 = arith.cmpi sge, %176, %599 : vector<8x128xi32>
    %601 = arith.extui %600 : vector<8x128xi1> to vector<8x128xi32>
    %602 = vector.shape_cast %601 : vector<8x128xi32> to vector<1x8x128xi32>
    %cst_91 = arith.constant dense<0> : vector<1xi32>
    %603 = vector.multi_reduction <add>, %602, %cst_91 [1, 2] : vector<1x8x128xi32> to vector<1xi32>
    %604 = vector.shape_cast %603 : vector<1xi32> to vector<1x1x1xi32>
    %605 = vector.extract %604[0, 0, 0] : i32 from vector<1x1x1xi32>
    %c196608_i32 = arith.constant 196608 : i32
    %606 = arith.addi %589, %c196608_i32 : i32
    %607 = vector.broadcast %606 : i32 to vector<8x128xi32>
    %608 = arith.cmpi sge, %176, %607 : vector<8x128xi32>
    %609 = arith.extui %608 : vector<8x128xi1> to vector<8x128xi32>
    %610 = vector.shape_cast %609 : vector<8x128xi32> to vector<1x8x128xi32>
    %cst_92 = arith.constant dense<0> : vector<1xi32>
    %611 = vector.multi_reduction <add>, %610, %cst_92 [1, 2] : vector<1x8x128xi32> to vector<1xi32>
    %612 = vector.shape_cast %611 : vector<1xi32> to vector<1x1x1xi32>
    %613 = vector.extract %612[0, 0, 0] : i32 from vector<1x1x1xi32>
    %c262144_i32 = arith.constant 262144 : i32
    %614 = arith.addi %589, %c262144_i32 : i32
    %615 = vector.broadcast %614 : i32 to vector<8x128xi32>
    %616 = arith.cmpi sge, %176, %615 : vector<8x128xi32>
    %617 = arith.extui %616 : vector<8x128xi1> to vector<8x128xi32>
    %618 = vector.shape_cast %617 : vector<8x128xi32> to vector<1x8x128xi32>
    %cst_93 = arith.constant dense<0> : vector<1xi32>
    %619 = vector.multi_reduction <add>, %618, %cst_93 [1, 2] : vector<1x8x128xi32> to vector<1xi32>
    %620 = vector.shape_cast %619 : vector<1xi32> to vector<1x1x1xi32>
    %621 = vector.extract %620[0, 0, 0] : i32 from vector<1x1x1xi32>
    %c327680_i32 = arith.constant 327680 : i32
    %622 = arith.addi %589, %c327680_i32 : i32
    %623 = vector.broadcast %622 : i32 to vector<8x128xi32>
    %624 = arith.cmpi sge, %176, %623 : vector<8x128xi32>
    %625 = arith.extui %624 : vector<8x128xi1> to vector<8x128xi32>
    %626 = vector.shape_cast %625 : vector<8x128xi32> to vector<1x8x128xi32>
    %cst_94 = arith.constant dense<0> : vector<1xi32>
    %627 = vector.multi_reduction <add>, %626, %cst_94 [1, 2] : vector<1x8x128xi32> to vector<1xi32>
    %628 = vector.shape_cast %627 : vector<1xi32> to vector<1x1x1xi32>
    %629 = vector.extract %628[0, 0, 0] : i32 from vector<1x1x1xi32>
    %c393216_i32 = arith.constant 393216 : i32
    %630 = arith.addi %589, %c393216_i32 : i32
    %631 = vector.broadcast %630 : i32 to vector<8x128xi32>
    %632 = arith.cmpi sge, %176, %631 : vector<8x128xi32>
    %633 = arith.extui %632 : vector<8x128xi1> to vector<8x128xi32>
    %634 = vector.shape_cast %633 : vector<8x128xi32> to vector<1x8x128xi32>
    %cst_95 = arith.constant dense<0> : vector<1xi32>
    %635 = vector.multi_reduction <add>, %634, %cst_95 [1, 2] : vector<1x8x128xi32> to vector<1xi32>
    %636 = vector.shape_cast %635 : vector<1xi32> to vector<1x1x1xi32>
    %637 = vector.extract %636[0, 0, 0] : i32 from vector<1x1x1xi32>
    %c458752_i32 = arith.constant 458752 : i32
    %638 = arith.addi %589, %c458752_i32 : i32
    %639 = vector.broadcast %638 : i32 to vector<8x128xi32>
    %640 = arith.cmpi sge, %176, %639 : vector<8x128xi32>
    %641 = arith.extui %640 : vector<8x128xi1> to vector<8x128xi32>
    %642 = vector.shape_cast %641 : vector<8x128xi32> to vector<1x8x128xi32>
    %cst_96 = arith.constant dense<0> : vector<1xi32>
    %643 = vector.multi_reduction <add>, %642, %cst_96 [1, 2] : vector<1x8x128xi32> to vector<1xi32>
    %644 = vector.shape_cast %643 : vector<1xi32> to vector<1x1x1xi32>
    %645 = vector.extract %644[0, 0, 0] : i32 from vector<1x1x1xi32>
    %c524288_i32 = arith.constant 524288 : i32
    %646 = arith.addi %589, %c524288_i32 : i32
    %647 = vector.broadcast %646 : i32 to vector<8x128xi32>
    %648 = arith.cmpi sge, %176, %647 : vector<8x128xi32>
    %649 = arith.extui %648 : vector<8x128xi1> to vector<8x128xi32>
    %650 = vector.shape_cast %649 : vector<8x128xi32> to vector<1x8x128xi32>
    %cst_97 = arith.constant dense<0> : vector<1xi32>
    %651 = vector.multi_reduction <add>, %650, %cst_97 [1, 2] : vector<1x8x128xi32> to vector<1xi32>
    %652 = vector.shape_cast %651 : vector<1xi32> to vector<1x1x1xi32>
    %653 = vector.extract %652[0, 0, 0] : i32 from vector<1x1x1xi32>
    %c589824_i32 = arith.constant 589824 : i32
    %654 = arith.addi %589, %c589824_i32 : i32
    %655 = vector.broadcast %654 : i32 to vector<8x128xi32>
    %656 = arith.cmpi sge, %176, %655 : vector<8x128xi32>
    %657 = arith.extui %656 : vector<8x128xi1> to vector<8x128xi32>
    %658 = vector.shape_cast %657 : vector<8x128xi32> to vector<1x8x128xi32>
    %cst_98 = arith.constant dense<0> : vector<1xi32>
    %659 = vector.multi_reduction <add>, %658, %cst_98 [1, 2] : vector<1x8x128xi32> to vector<1xi32>
    %660 = vector.shape_cast %659 : vector<1xi32> to vector<1x1x1xi32>
    %661 = vector.extract %660[0, 0, 0] : i32 from vector<1x1x1xi32>
    %c655360_i32 = arith.constant 655360 : i32
    %662 = arith.addi %589, %c655360_i32 : i32
    %663 = vector.broadcast %662 : i32 to vector<8x128xi32>
    %664 = arith.cmpi sge, %176, %663 : vector<8x128xi32>
    %665 = arith.extui %664 : vector<8x128xi1> to vector<8x128xi32>
    %666 = vector.shape_cast %665 : vector<8x128xi32> to vector<1x8x128xi32>
    %cst_99 = arith.constant dense<0> : vector<1xi32>
    %667 = vector.multi_reduction <add>, %666, %cst_99 [1, 2] : vector<1x8x128xi32> to vector<1xi32>
    %668 = vector.shape_cast %667 : vector<1xi32> to vector<1x1x1xi32>
    %669 = vector.extract %668[0, 0, 0] : i32 from vector<1x1x1xi32>
    %c720896_i32 = arith.constant 720896 : i32
    %670 = arith.addi %589, %c720896_i32 : i32
    %671 = vector.broadcast %670 : i32 to vector<8x128xi32>
    %672 = arith.cmpi sge, %176, %671 : vector<8x128xi32>
    %673 = arith.extui %672 : vector<8x128xi1> to vector<8x128xi32>
    %674 = vector.shape_cast %673 : vector<8x128xi32> to vector<1x8x128xi32>
    %cst_100 = arith.constant dense<0> : vector<1xi32>
    %675 = vector.multi_reduction <add>, %674, %cst_100 [1, 2] : vector<1x8x128xi32> to vector<1xi32>
    %676 = vector.shape_cast %675 : vector<1xi32> to vector<1x1x1xi32>
    %677 = vector.extract %676[0, 0, 0] : i32 from vector<1x1x1xi32>
    %c786432_i32 = arith.constant 786432 : i32
    %678 = arith.addi %589, %c786432_i32 : i32
    %679 = vector.broadcast %678 : i32 to vector<8x128xi32>
    %680 = arith.cmpi sge, %176, %679 : vector<8x128xi32>
    %681 = arith.extui %680 : vector<8x128xi1> to vector<8x128xi32>
    %682 = vector.shape_cast %681 : vector<8x128xi32> to vector<1x8x128xi32>
    %cst_101 = arith.constant dense<0> : vector<1xi32>
    %683 = vector.multi_reduction <add>, %682, %cst_101 [1, 2] : vector<1x8x128xi32> to vector<1xi32>
    %684 = vector.shape_cast %683 : vector<1xi32> to vector<1x1x1xi32>
    %685 = vector.extract %684[0, 0, 0] : i32 from vector<1x1x1xi32>
    %c851968_i32 = arith.constant 851968 : i32
    %686 = arith.addi %589, %c851968_i32 : i32
    %687 = vector.broadcast %686 : i32 to vector<8x128xi32>
    %688 = arith.cmpi sge, %176, %687 : vector<8x128xi32>
    %689 = arith.extui %688 : vector<8x128xi1> to vector<8x128xi32>
    %690 = vector.shape_cast %689 : vector<8x128xi32> to vector<1x8x128xi32>
    %cst_102 = arith.constant dense<0> : vector<1xi32>
    %691 = vector.multi_reduction <add>, %690, %cst_102 [1, 2] : vector<1x8x128xi32> to vector<1xi32>
    %692 = vector.shape_cast %691 : vector<1xi32> to vector<1x1x1xi32>
    %693 = vector.extract %692[0, 0, 0] : i32 from vector<1x1x1xi32>
    %c917504_i32 = arith.constant 917504 : i32
    %694 = arith.addi %589, %c917504_i32 : i32
    %695 = vector.broadcast %694 : i32 to vector<8x128xi32>
    %696 = arith.cmpi sge, %176, %695 : vector<8x128xi32>
    %697 = arith.extui %696 : vector<8x128xi1> to vector<8x128xi32>
    %698 = vector.shape_cast %697 : vector<8x128xi32> to vector<1x8x128xi32>
    %cst_103 = arith.constant dense<0> : vector<1xi32>
    %699 = vector.multi_reduction <add>, %698, %cst_103 [1, 2] : vector<1x8x128xi32> to vector<1xi32>
    %700 = vector.shape_cast %699 : vector<1xi32> to vector<1x1x1xi32>
    %701 = vector.extract %700[0, 0, 0] : i32 from vector<1x1x1xi32>
    %c983040_i32 = arith.constant 983040 : i32
    %702 = arith.addi %589, %c983040_i32 : i32
    %703 = vector.broadcast %702 : i32 to vector<8x128xi32>
    %704 = arith.cmpi sge, %176, %703 : vector<8x128xi32>
    %705 = arith.extui %704 : vector<8x128xi1> to vector<8x128xi32>
    %706 = vector.shape_cast %705 : vector<8x128xi32> to vector<1x8x128xi32>
    %cst_104 = arith.constant dense<0> : vector<1xi32>
    %707 = vector.multi_reduction <add>, %706, %cst_104 [1, 2] : vector<1x8x128xi32> to vector<1xi32>
    %708 = vector.shape_cast %707 : vector<1xi32> to vector<1x1x1xi32>
    %709 = vector.extract %708[0, 0, 0] : i32 from vector<1x1x1xi32>
    %710 = arith.cmpi sge, %597, %13 : i32
    %711 = arith.extui %710 : i1 to i32
    %c0_i32_105 = arith.constant 0 : i32
    %712 = arith.addi %c0_i32_105, %711 : i32
    %713 = arith.cmpi sge, %605, %13 : i32
    %714 = arith.extui %713 : i1 to i32
    %715 = arith.addi %712, %714 : i32
    %716 = arith.cmpi sge, %613, %13 : i32
    %717 = arith.extui %716 : i1 to i32
    %718 = arith.addi %715, %717 : i32
    %719 = arith.cmpi sge, %621, %13 : i32
    %720 = arith.extui %719 : i1 to i32
    %721 = arith.addi %718, %720 : i32
    %722 = arith.cmpi sge, %629, %13 : i32
    %723 = arith.extui %722 : i1 to i32
    %724 = arith.addi %721, %723 : i32
    %725 = arith.cmpi sge, %637, %13 : i32
    %726 = arith.extui %725 : i1 to i32
    %727 = arith.addi %724, %726 : i32
    %728 = arith.cmpi sge, %645, %13 : i32
    %729 = arith.extui %728 : i1 to i32
    %730 = arith.addi %727, %729 : i32
    %731 = arith.cmpi sge, %653, %13 : i32
    %732 = arith.extui %731 : i1 to i32
    %733 = arith.addi %730, %732 : i32
    %734 = arith.cmpi sge, %661, %13 : i32
    %735 = arith.extui %734 : i1 to i32
    %736 = arith.addi %733, %735 : i32
    %737 = arith.cmpi sge, %669, %13 : i32
    %738 = arith.extui %737 : i1 to i32
    %739 = arith.addi %736, %738 : i32
    %740 = arith.cmpi sge, %677, %13 : i32
    %741 = arith.extui %740 : i1 to i32
    %742 = arith.addi %739, %741 : i32
    %743 = arith.cmpi sge, %685, %13 : i32
    %744 = arith.extui %743 : i1 to i32
    %745 = arith.addi %742, %744 : i32
    %746 = arith.cmpi sge, %693, %13 : i32
    %747 = arith.extui %746 : i1 to i32
    %748 = arith.addi %745, %747 : i32
    %749 = arith.cmpi sge, %701, %13 : i32
    %750 = arith.extui %749 : i1 to i32
    %751 = arith.addi %748, %750 : i32
    %752 = arith.cmpi sge, %709, %13 : i32
    %753 = arith.extui %752 : i1 to i32
    %754 = arith.addi %751, %753 : i32
    %c65536_i32_106 = arith.constant 65536 : i32
    %755 = arith.muli %754, %c65536_i32_106 : i32
    %756 = arith.addi %589, %755 : i32
    %757 = vector.broadcast %756 : i32 to vector<8x128xi32>
    %758 = arith.cmpi sgt, %176, %757 : vector<8x128xi32>
    %759 = arith.extui %758 : vector<8x128xi1> to vector<8x128xi32>
    %760 = arith.sitofp %759 : vector<8x128xi32> to vector<8x128xf32>
    %761 = vector.broadcast %756 : i32 to vector<8x128xi32>
    %762 = arith.cmpi eq, %176, %761 : vector<8x128xi32>
    %cst_107 = arith.constant 0.000000e+00 : f32
    %763 = vector.broadcast %cst_107 : f32 to vector<8x128xf32>
    %764 = arith.select %762, %173, %763 : vector<8x128xi1>, vector<8x128xf32>
    %cst_108 = arith.constant dense<0xFF800000> : vector<128xf32>
    %765 = vector.multi_reduction <maximumf>, %764, %cst_108 [0] : vector<8x128xf32> to vector<128xf32>
    %766 = vector.shape_cast %765 : vector<128xf32> to vector<1x128xf32>
    %cst_109 = arith.constant dense<0.000000e+00> : vector<128xf32>
    %767 = vector.multi_reduction <add>, %760, %cst_109 [0] : vector<8x128xf32> to vector<128xf32>
    %768 = vector.shape_cast %767 : vector<128xf32> to vector<1x128xf32>
    %769 = arith.mulf %167, %40 : vector<8x128xf32>
    %770 = arith.mulf %173, %760 : vector<8x128xf32>
    %771 = arith.addf %769, %770 : vector<8x128xf32>
    %cst_110 = arith.constant dense<0.000000e+00> : vector<128xf32>
    %772 = vector.multi_reduction <add>, %771, %cst_110 [0] : vector<8x128xf32> to vector<128xf32>
    %773 = vector.shape_cast %772 : vector<128xf32> to vector<1x128xf32>
    %cst_111 = arith.constant 0.000000e+00 : f32
    %774 = vector.broadcast %cst_111 : f32 to vector<3x128xf32>
    %775 = tpu.concatenate %90, %773, %103, %768, %766, %774 in 0 : vector<1x128xf32>, vector<1x128xf32>, vector<1x128xf32>, vector<1x128xf32>, vector<1x128xf32>, vector<3x128xf32> -> vector<8x128xf32>
    %c0_112 = arith.constant 0 : index
    %c0_113 = arith.constant 0 : index
    %c0_114 = arith.constant 0 : index
    %776 = vector.load %arg8[%c0_112, %c0_113, %c0_114] : memref<1x8x128xf32, #tpu.memory_space<vmem>>, vector<1x8x128xf32>
    %777 = vector.shape_cast %776 : vector<1x8x128xf32> to vector<8x128xf32>
    %778 = vector.shape_cast %775 : vector<8x128xf32> to vector<1x8x128xf32>
    tpu.vector_store %arg8[%c0_112, %c0_113, %c0_114], %778 {strides = array<i32>} : memref<1x8x128xf32, #tpu.memory_space<vmem>>, vector<1x8x128xf32>,
    return
  }
  func.func @transform_0(%arg0: i32, %arg1: memref<2xi32, #tpu.memory_space<smem>>) -> (i32, i32, i32, i32) {
    %c0_i32 = arith.constant 0 : i32
    %c0_i32_0 = arith.constant 0 : i32
    %c0_i32_1 = arith.constant 0 : i32
    %c0_i32_2 = arith.constant 0 : i32
    return %arg0, %c0_i32, %c0_i32_0, %c0_i32_1 : i32, i32, i32, i32
  }
  func.func @transform_1(%arg0: i32, %arg1: memref<2xi32, #tpu.memory_space<smem>>) -> (i32, i32, i32, i32) {
    %c0_i32 = arith.constant 0 : i32
    %c0_i32_0 = arith.constant 0 : i32
    %c0_i32_1 = arith.constant 0 : i32
    %c0_i32_2 = arith.constant 0 : i32
    return %arg0, %c0_i32, %c0_i32_0, %c0_i32_1 : i32, i32, i32, i32
  }
  func.func @transform_2(%arg0: i32, %arg1: memref<2xi32, #tpu.memory_space<smem>>) -> (i32, i32, i32, i32) {
    %c0_i32 = arith.constant 0 : i32
    %c0_i32_0 = arith.constant 0 : i32
    %c0_i32_1 = arith.constant 0 : i32
    %c0_i32_2 = arith.constant 0 : i32
    return %arg0, %c0_i32, %c0_i32_0, %c0_i32_1 : i32, i32, i32, i32
  }
  func.func @transform_3(%arg0: i32, %arg1: memref<2xi32, #tpu.memory_space<smem>>) -> (i32, i32, i32, i32) {
    %c0_i32 = arith.constant 0 : i32
    %c0_i32_0 = arith.constant 0 : i32
    %c0_i32_1 = arith.constant 0 : i32
    %c0_i32_2 = arith.constant 0 : i32
    return %arg0, %c0_i32, %c0_i32_0, %c0_i32_1 : i32, i32, i32, i32
  }
  func.func @transform_4(%arg0: i32, %arg1: memref<2xi32, #tpu.memory_space<smem>>) -> (i32, i32, i32, i32) {
    %c0_i32 = arith.constant 0 : i32
    %c0_i32_0 = arith.constant 0 : i32
    %c0_i32_1 = arith.constant 0 : i32
    %c0_i32_2 = arith.constant 0 : i32
    return %arg0, %c0_i32, %c0_i32_0, %c0_i32_1 : i32, i32, i32, i32
  }
  func.func @transform_5(%arg0: i32, %arg1: memref<2xi32, #tpu.memory_space<smem>>) -> (i32, i32, i32, i32) {
    %c0_i32 = arith.constant 0 : i32
    %c0_i32_0 = arith.constant 0 : i32
    %c0_i32_1 = arith.constant 0 : i32
    %c0_i32_2 = arith.constant 0 : i32
    return %arg0, %c0_i32, %c0_i32_0, %c0_i32_1 : i32, i32, i32, i32
  }
  func.func @transform_6(%arg0: i32, %arg1: memref<2xi32, #tpu.memory_space<smem>>) -> (i32, i32, i32) {
    %c0_i32 = arith.constant 0 : i32
    %c0_i32_0 = arith.constant 0 : i32
    %c0_i32_1 = arith.constant 0 : i32
    return %arg0, %c0_i32, %c0_i32_0 : i32, i32, i32
  }
}

</mosaic_0001>

<bundles_post_ra>
// kernel: tpu_custom_call.1
= control target key start
LH: loop header
LB: loop body
LE: loop exit
PB: predicated region body
PF: predicated region fallthrough
CT: control target
= control target key end

     0   :  { %s2698_s27 = smov [#allocation3]   ;;  %s3298_s0 = inlined_call_operand.hbm [shape: s32[2], index: 0, kind: input, shape index: {}]   ;;  %s3299_s1 = inlined_call_operand.hbm [shape: f32[2,4,8,128], index: 1, kind: input, shape index: {}]   ;;  %s3300_s2 = inlined_call_operand.hbm [shape: f32[2,4,8,128], index: 2, kind: input, shape index: {}]   ;;  %s3301_s3 = inlined_call_operand.hbm [shape: f32[2,4,8,128], index: 3, kind: input, shape index: {}]   ;;  %s3302_s4 = inlined_call_operand.hbm [shape: f32[2,1,8,128], index: 4, kind: input, shape index: {}]   ;;  %s3303_s5 = inlined_call_operand.hbm [shape: f32[2,1,8,128], index: 5, kind: input, shape index: {}]   ;;  %s3304_s6 = inlined_call_operand.hbm [shape: f32[2,1,8,128], index: 6, kind: input, shape index: {}]   ;;  %s3305_s7 = inlined_call_operand.hbm [shape: f32[2,8,128], index: 7, kind: output, shape index: {}]  }
   0x1   :  { %3320 = sst [smem:[#allocation29_spill]] %s3299_s1  ;;  %s13_s26 = sshll.u32 %s3298_s0, 4  ;;  %s14_s26 = int_to_ptr.hbm [resolvable:$true] %s13_s26 }
   0x2   :  { %3321 = sst [smem:[#allocation30_spill]] %s3300_s2 }
   0x3   :  { %3322 = sst [smem:[#allocation31_spill]] %s3301_s3 }
   0x4   :  { %3323 = sst [smem:[#allocation32_spill]] %s3302_s4 }
   0x5   :  { %3324 = sst [smem:[#allocation33_spill]] %s3305_s7 }
   0x6   :  { %16 = dma.hbm_to_smem %s14_s26, 16, %s2698_s27, [#allocation2] }
   0x7   :  { %2660 = dma.done.wait [#allocation2], 16 }
   0x8   :  { %2661 = vsyncadd [#allocation2], 4294967280 }
   0x9   :  { %19 = sfence }
   0xa   :  { %20 = vsyncpa [#allocation5], 0 }
   0xb   :  { %22 = vsyncpa [#allocation5 + $0x1], 0 }
   0xc   :  { %23 = vsyncpa [#allocation8], 0 }
   0xd   :  { %25 = vsyncpa [#allocation8 + $0x1], 0 }
   0xe   :  { %26 = vsyncpa [#allocation11], 0 }
   0xf   :  { %28 = vsyncpa [#allocation11 + $0x1], 0 }
  0x10   :  { %29 = vsyncpa [#allocation14], 0 }
  0x11   :  { %31 = vsyncpa [#allocation14 + $0x1], 0 }
  0x12   :  { %32 = vsyncpa [#allocation6], 0 }
  0x13   :  { %34 = vsyncpa [#allocation6 + $0x1], 0  ;;  %s2747_s28 = smov 0   ;;  %s2749_s29 = smov 0  }
  0x14   :  { %s2751_s0 = smov 0   ;;  %s2753_s30 = smov 0  }
  0x15 LB: > { %3325 = sst [smem:[#allocation22_spill]] %s2684_s28  ;;  %s2768_s8 = sadd.s32 4294967295, %s2696_s30   ;;  %s2696_s30 = sphi %s2753_s30, %s3352_s30   ;;  %s2692_s0 = sphi %s2751_s0, %s3354_s0   ;;  %s2688_s29 = sphi %s2749_s29, %s3356_s29   ;;  %s2684_s28 = sphi %s2747_s28, %s3355_s28  }
  0x16   : > { %3326 = sst [smem:[#allocation23_spill]] %s2692_s0  ;;  %s2186_s9 = sadd.s32 4294967294, %s2696_s30  }
  0x17   : > { %3327 = sst [smem:[#allocation24_spill]] %s2696_s30  ;;  %s2772_s10 = sadd.s32 1, %s2696_s30  }
  0x18   : > { %3328 = sst [smem:[#allocation25_spill]] %s2772_s10  ;;  %s47_s11 = sadd.s32 1, %s2692_s0 }
  0x19   : > { %s44_s12 = ssub.s32 %s2696_s30, %s2772_s10  ;;  %p54_p0 = scmp.ne.s32.totalorder %s2692_s0, %s2688_s29 }
  0x1a   : > { %p45_p1 = scmp.eq.s32.totalorder %s44_s12, 0  ;;  %p55_p2 = scmp.eq.s32.totalorder %s2696_s30, 0 }
  0x1b   : > { %p60_p3 = scmp.ne.s32.totalorder %s2688_s29, %s2684_s28  ;;  %p61_p4 = scmp.eq.s32.totalorder %s2768_s8, 0 }
  0x1c   : > { %s2784_s13 = scalar_select %p45_p1, %s2692_s0, %s47_s11  }
  0x1d   : > { %p56_p5 = por %p55_p2, %p54_p0  ;;  %p2786_p6 = por %p61_p4, %p60_p3 }
  0x1e   : > { %3329 = sst [smem:[#allocation26_spill]] %s2784_s13  ;;  %p214_p7 = scmp.eq.s32.totalorder %s2768_s8, 1 }
  0x1f   : > { %p220_p8 = scmp.eq.s32.totalorder %s2186_s9, 1  ;;  %p2188_p9 = scmp.ge.s32.totalorder %s2696_s30, 2 }
  0x20   : > { %p2372_p10 = scmp.lt.s32.totalorder %s2696_s30, 2  ;;  %p2793_p11 = por %p214_p7, %p54_p0 }
  0x21   : > { %p2797_p12 = por %p220_p8, %p60_p3  ;;  %s2802_s17 = sand.u32 1, %s2692_s0  }
  0x22   : > { %s3331_s15 = scalar_select %p2793_p11, 1, 0 }
  0x23   : > { %s3333_s16 = scalar_select %p2797_p12, 1, 0 }
  0x24   : > { %3332 = sst [smem:[#allocation27_spill]] %s3331_s15  ;;  %s2805_s18 = sshll.u32 %s2696_s30, 5 }
  0x25   : > { %3334 = sst [smem:[#allocation28_spill]] %s3333_s16  ;;  %s2808_s19 = sshll.u32 %s2802_s17, 5 }
  0x26   : > { %p2810_p13 = pnand %p2372_p10, %p56_p5  ;;  %s3306_s21 = sand.u32 1, %s2696_s30  }
  0x27   : > { %s3336_s2 = sld [smem:[#allocation30_spill]]  ;;  %s266_s25 = scalar_lea.vmem [#allocation7], %s2808_s19 }
  0x28   : > { %s274_s26 = sshll.u32 %s266_s25, 4  ;;  %p2204_p0 = scmp.ge.s32.totalorder %s2696_s30, 1  ;;  %s275_s26 = int_to_ptr.vmem [resolvable:$true] %s274_s26 }
  0x29   : > { %s2823_s9 = scalar_lea.sflag [#allocation8], %s3306_s21  ;;  %p2827_p2 = pneg %p2810_p13 }
  0x2d   : > { %s271_s24 = scalar_lea.hbm %s3336_s2, %s2805_s18 }
  0x2e   : > { %s272_s27 = sshll.u32 %s271_s24, 4  ;;  %s2443_s24 = scalar_lea.hbm %s3336_s2, 64  ;;  %s273_s27 = int_to_ptr.hbm [resolvable:$true] %s272_s27 }
  0x2f   : > { %s2436_s11 = sshra.s32 %s273_s27, 4  ;;  %s2437_s11 = int_to_ptr.hbm [resolvable:$true] %s2436_s11 }
  0x30   : > { %s2438_s12 = scalar_lea.hbm %s2437_s11, 32  ;;  %p2444_p5 = scmp.lt.s32.totalorder %s2437_s11, %s3336_s2 }
  0x31   : > { %p2439_p1 = scmp.ne.s32.totalorder %s2437_s11, %s2438_s12  ;;  %p2445_p7 = scmp.lt.s32.totalorder %s2443_s24, %s2438_s12 }
  0x33   : > { %p2441_p3 = pnand %p2827_p2, %p2439_p1  ;;  %p2446_p8 = por %p2445_p7, %p2444_p5 }
  0x35   : > { %p2442_p4 = pneg %p2441_p3 }
  0x37   : > { %p2447_p10 = pnand %p2446_p8, %p2442_p4 }
  0x39   : > { %2450 = shalt.err (!%p2447_p10)
}
  0x3a   : > { %s3310_s0 = smov 128   ;;  %s3312_s10 = smov 8  }
  0x3b   : > { %2355 = dma.hbm_to_vmem [thread:$0]  (!%p2810_p13), %s273_s27, 512, %s275_s26, %s2823_s9, %s3310_s0, %s3310_s0, %s3312_s10  }
  0x3c   : > { %p361_p1 = scmp.lt.s32.totalorder %s2696_s30, 3  ;;  %s2847_s21 = sshll.u32 %s2802_s17, 3 }
  0x3d   : > { %s2850_s11 = sshll.u32 %s2696_s30, 3  ;;  %s3339_s4 = sld [smem:[#allocation32_spill]] }
  0x3e   : > { %p2854_p3 = pnand %p2204_p0, %p361_p1  ;;  %s310_s25 = scalar_lea.vmem [#allocation10], %s2847_s21 }
  0x3f   : > { %s318_s2 = sshll.u32 %s310_s25, 4  ;;  %s3340_s27 = sand.u32 1, %s2696_s30   ;;  %s319_s2 = int_to_ptr.vmem [resolvable:$true] %s318_s2 }
  0x40   : > { %s2865_s0 = scalar_lea.sflag [#allocation11], %s3340_s27 }
  0x43   : > { %s314_s24 = scalar_lea.hbm %s3339_s4, %s2850_s11  ;;  %s2473_s22 = scalar_lea.hbm %s3339_s4, 16 }
  0x44   : > { %s316_s26 = sshll.u32 %s314_s24, 4  ;;  %s317_s26 = int_to_ptr.hbm [resolvable:$true] %s316_s26 }
  0x45   : > { %s2466_s10 = sshra.s32 %s317_s26, 4  ;;  %s2467_s10 = int_to_ptr.hbm [resolvable:$true] %s2466_s10 }
  0x46   : > { %s2468_s16 = scalar_lea.hbm %s2467_s10, 8  ;;  %p2474_p7 = scmp.lt.s32.totalorder %s2467_s10, %s3339_s4 }
  0x47   : > { %p2469_p4 = scmp.ne.s32.totalorder %s2467_s10, %s2468_s16  ;;  %p2475_p8 = scmp.lt.s32.totalorder %s2473_s22, %s2468_s16 }
  0x49   : > { %p2471_p0 = pnand %p2469_p4, %p2827_p2  ;;  %p2476_p10 = por %p2475_p8, %p2474_p7 }
  0x4b   : > { %p2472_p5 = pneg %p2471_p0 }
  0x4d   : > { %p2477_p1 = pnand %p2476_p10, %p2472_p5 }
  0x4f   : > { %2480 = shalt.err (!%p2477_p1)
}
  0x50   : > { %2361 = dma.hbm_to_vmem [thread:$0]  (!%p2810_p13), %s317_s26, 128, %s319_s2, %s2865_s0  }
  0x51   : > { %s3341_s1 = sld [smem:[#allocation29_spill]]  ;;  %s244_s27 = scalar_lea.vmem [#allocation4], %s2808_s19 }
  0x52   : > { %s252_s7 = sshll.u32 %s244_s27, 4  ;;  %s241_s10 = scalar_lea.sflag [#allocation5], %s2802_s17  ;;  %s253_s7 = int_to_ptr.vmem [resolvable:$true] %s252_s7 }
  0x57   : > { %s249_s28 = scalar_lea.hbm %s3341_s1, %s2805_s18  ;;  %s2503_s2 = scalar_lea.hbm %s3341_s1, 64 }
  0x58   : > { %s250_s15 = sshll.u32 %s249_s28, 4  ;;  %s251_s15 = int_to_ptr.hbm [resolvable:$true] %s250_s15 }
  0x59   : > { %s2496_s16 = sshra.s32 %s251_s15, 4  ;;  %s2497_s16 = int_to_ptr.hbm [resolvable:$true] %s2496_s16 }
  0x5a   : > { %s2498_s22 = scalar_lea.hbm %s2497_s16, 32  ;;  %p2504_p7 = scmp.lt.s32.totalorder %s2497_s16, %s3341_s1 }
  0x5b   : > { %p2499_p4 = scmp.ne.s32.totalorder %s2497_s16, %s2498_s22  ;;  %p2505_p8 = scmp.lt.s32.totalorder %s2503_s2, %s2498_s22 }
  0x5d   : > { %p2501_p0 = pnand %p2499_p4, %p2827_p2  ;;  %p2506_p10 = por %p2505_p8, %p2504_p7 }
  0x5f   : > { %p2502_p5 = pneg %p2501_p0 }
  0x61   : > { %p2507_p1 = pnand %p2506_p10, %p2502_p5 }
  0x63   : > { %2510 = shalt.err (!%p2507_p1)
}
  0x64   : > { %s3342_s25 = smov 8   ;;  %s3343_s28 = smov 128  }
  0x65   : > { %2352 = dma.hbm_to_vmem [thread:$0]  (!%p2810_p13), %s251_s15, 512, %s253_s7, %s241_s10, %s3343_s28, %s3343_s28, %s3342_s25  }
  0x66   : > { %s3344_s3 = sld [smem:[#allocation31_spill]]  ;;  %s288_s26 = scalar_lea.vmem [#allocation9], %s2808_s19 }
  0x67   : > { %s296_s16 = sshll.u32 %s288_s26, 4  ;;  %s297_s16 = int_to_ptr.vmem [resolvable:$true] %s296_s16 }
  0x6c   : > { %s293_s23 = scalar_lea.hbm %s3344_s3, %s2805_s18  ;;  %s2533_s15 = scalar_lea.hbm %s3344_s3, 64 }
  0x6d   : > { %s294_s30 = sshll.u32 %s293_s23, 4  ;;  %s295_s30 = int_to_ptr.hbm [resolvable:$true] %s294_s30 }
  0x6e   : > { %s2526_s22 = sshra.s32 %s295_s30, 4  ;;  %s2527_s22 = int_to_ptr.hbm [resolvable:$true] %s2526_s22 }
  0x6f   : > { %s2528_s2 = scalar_lea.hbm %s2527_s22, 32  ;;  %p2534_p7 = scmp.lt.s32.totalorder %s2527_s22, %s3344_s3 }
  0x70   : > { %p2529_p4 = scmp.ne.s32.totalorder %s2527_s22, %s2528_s2  ;;  %p2535_p8 = scmp.lt.s32.totalorder %s2533_s15, %s2528_s2 }
  0x72   : > { %p2531_p0 = pnand %p2529_p4, %p2827_p2  ;;  %p2536_p10 = por %p2535_p8, %p2534_p7 }
  0x74   : > { %p2532_p5 = pneg %p2531_p0 }
  0x76   : > { %p2537_p1 = pnand %p2536_p10, %p2532_p5 }
  0x78   : > { %2540 = shalt.err (!%p2537_p1)
}
  0x79   : > { %2358 = dma.hbm_to_vmem [thread:$0]  (!%p2810_p13), %s295_s30, 512, %s297_s16, %s2823_s9, %s3343_s28, %s3343_s28, %s3342_s25  }
  0x7a   : > { %s333_s19 = scalar_lea.hbm %s3303_s5, %s2850_s11  ;;  %s329_s4 = scalar_lea.vmem [#allocation12], %s2847_s21 }
  0x7b   : > { %s335_s27 = sshll.u32 %s333_s19, 4  ;;  %s337_s23 = sshll.u32 %s329_s4, 4  ;;  %s336_s27 = int_to_ptr.hbm [resolvable:$true] %s335_s27  ;;  %s338_s23 = int_to_ptr.vmem [resolvable:$true] %s337_s23 }
  0x7c   : > { %s2556_s26 = sshra.s32 %s336_s27, 4  ;;  %s2563_s30 = scalar_lea.hbm %s3303_s5, 16  ;;  %s2557_s26 = int_to_ptr.hbm [resolvable:$true] %s2556_s26 }
  0x7d   : > { %s2558_s22 = scalar_lea.hbm %s2557_s26, 8  ;;  %p2564_p7 = scmp.lt.s32.totalorder %s2557_s26, %s3303_s5 }
  0x7e   : > { %p2559_p4 = scmp.ne.s32.totalorder %s2557_s26, %s2558_s22  ;;  %p2565_p8 = scmp.lt.s32.totalorder %s2563_s30, %s2558_s22 }
  0x80   : > { %p2561_p0 = pnand %p2559_p4, %p2827_p2  ;;  %p2566_p10 = por %p2565_p8, %p2564_p7 }
  0x82   : > { %p2562_p5 = pneg %p2561_p0 }
  0x84   : > { %p2567_p1 = pnand %p2566_p10, %p2562_p5 }
  0x86   : > { %2570 = shalt.err (!%p2567_p1)
}
  0x87   : > { %2364 = dma.hbm_to_vmem [thread:$0]  (!%p2810_p13), %s336_s27, 128, %s338_s23, %s2865_s0  }
  0x88   : > { %s352_s15 = scalar_lea.hbm %s3304_s6, %s2850_s11  ;;  %s348_s7 = scalar_lea.vmem [#allocation13], %s2847_s21 }
  0x89   : > { %s356_s10 = sshll.u32 %s348_s7, 4  ;;  %s354_s1 = sshll.u32 %s352_s15, 4  ;;  %s357_s10 = int_to_ptr.vmem [resolvable:$true] %s356_s10  ;;  %s355_s1 = int_to_ptr.hbm [resolvable:$true] %s354_s1 }
  0x8a   : > { %s345_s18 = scalar_lea.sflag [#allocation14], %s2802_s17  ;;  %s2586_s19 = sshra.s32 %s355_s1, 4  ;;  %s2587_s19 = int_to_ptr.hbm [resolvable:$true] %s2586_s19 }
  0x8b   : > { %s2588_s4 = scalar_lea.hbm %s2587_s19, 8  ;;  %s2593_s0 = scalar_lea.hbm %s3304_s6, 16 }
  0x8c   : > { %p2589_p4 = scmp.ne.s32.totalorder %s2587_s19, %s2588_s4  ;;  %p2594_p7 = scmp.lt.s32.totalorder %s2587_s19, %s3304_s6 }
  0x8d   : > { %p2595_p8 = scmp.lt.s32.totalorder %s2593_s0, %s2588_s4 }
  0x8e   : > { %p2591_p0 = pnand %p2589_p4, %p2827_p2 }
  0x8f   : > { %p2596_p10 = por %p2595_p8, %p2594_p7 }
  0x90   : > { %p2592_p5 = pneg %p2591_p0 }
  0x92   : > { %p2597_p1 = pnand %p2596_p10, %p2592_p5 }
  0x94   : > { %2600 = shalt.err (!%p2597_p1)
}
  0x95   : > { %2367 = dma.hbm_to_vmem [thread:$0]  (!%p2810_p13), %s355_s1, 128, %s357_s10, %s345_s18  }
  0x96   : > { %365 = sbr.rel (%p2854_p3) target bundleno = 1281 (0x501), region = 44  ;;  %s2951_s13 = sand.u32 (!%p2854_p3), 1, %s2688_s29  }
  0x97   : > { %s2205_s17 = sshll.u32 (!%p2854_p3), %s2951_s13, 5  ;;  %s368_s21 = scalar_lea.sflag (!%p2854_p3), [#allocation5], %s2951_s13 }
  0x98   : > { %s371_s11 = scalar_lea.vmem (!%p2854_p3), [#allocation4], %s2205_s17 }
  0x9b   : > { %2663 = dma.done.wait (%p2786_p6), %s368_s21, 512  }
  0x9c   : > { %2665 = vsyncadd (%p2786_p6), %s368_s21, 4294966784  ;;  %s377_s20 = sand.u32 1, %s2768_s8   ;;  %s2960_s12 = scalar_lea.vmem [#allocation7], %s2205_s17 }
  0x9d   : > { %s378_s2 = scalar_lea.sflag [#allocation8], %s377_s20 }
  0x9e   : > { %2667 = dma.done.wait (%p2786_p6), %s378_s2, 1024  }
  0x9f   : > { %2669 = vsyncadd (%p2786_p6), %s378_s2, 4294966272  ;;  %s2967_s24 = sshll.u32 %s2951_s13, 3  ;;  %s2969_s30 = scalar_lea.vmem [#allocation9], %s2205_s17 }
  0xa0   : > { %s398_s9 = scalar_lea.sflag [#allocation11], %s377_s20 }
  0xa1   : > { %2671 = dma.done.wait (%p2786_p6), %s398_s9, 256  }
  0xa2   : > { %2673 = vsyncadd (%p2786_p6), %s398_s9, 4294967040  ;;  %s418_s16 = scalar_lea.sflag [#allocation14], %s2951_s13  ;;  %s421_s15 = scalar_lea.vmem [#allocation13], %s2967_s24 }
  0xa3   : > { %2675 = dma.done.wait (%p2786_p6), %s418_s16, 128  }
  0xa4   : > { %2677 = vsyncadd (%p2786_p6), %s418_s16, 4294967168  ;;  %v476_v0 = vld [vmem:[%s371_s11] sm:$0xff]  ;;  %v477_v1 = vld [vmem:[%s371_s11 + $0x8] sm:$0xff]  ;;  %v2701_v17 = vmov 0.0   ;;  %v492_v21 = vlaneseq  ;;  %vm2702_vm6 = vmmov 1   ;;  %v2703_v47 = vmov 0  }
  0xa5   : > { %v478_v2 = vld [vmem:[%s371_s11 + $0x10] sm:$0xff]  ;;  %v565_v3 = vmax.f32 %v476_v0, %v477_v1  ;;  %v479_v4 = vld [vmem:[%s371_s11 + $0x18] sm:$0xff]  ;;  %v2983_v15 = vld [vmem:[%s421_s15] sm:$0xff]  ;;  %s3019_s14 = sld [smem:[#allocation3 + %s2768_s8]] }
  0xa6   : > { %vm571_vm0 = vcmp.eq.f32.partialorder %v2983_v15, 0.0  ;;  %vm579_vm1 = vcmp.eq.f32.partialorder %v2983_v15, 1.0  ;;  %vm588_vm2 = vcmp.eq.f32.partialorder %v2983_v15, 2.0  ;;  %v493_v29 = vshrl.u32 %v492_v21, 7 }
  0xa7   : > { %v566_v5 = vmax.f32 %v565_v3, %v478_v2  ;;  %v2215_v18 = vsel %vm571_vm0, 1.0, %v2701_v17  ;;  %v2216_v19 = vsel %vm579_vm1, 1.0, %v2701_v17  ;;  %v2217_v28 = vsel %vm588_vm2, 1.0, %v2701_v17 }
  0xa8   : > { %v574_v25 = vmul.f32 %v2215_v18, %v476_v0  ;;  %v582_v26 = vmul.f32 %v2216_v19, %v477_v1  ;;  %vm597_vm3 = vcmp.eq.f32.partialorder %v2983_v15, 3.0  ;;  %v591_v32 = vmul.f32 %v2217_v28, %v478_v2 }
  0xa9   : > { %v567_v6 = vmax.f32 %v566_v5, %v479_v4  ;;  %v2218_v33 = vsel %vm597_vm3, 1.0, %v2701_v17  ;;  %v494_v34 = vmul.u32 128, %v493_v29  ;;  %v496_v35 = vand.u32 127, %v492_v21 }
  0xaa   : > { %v583_v31 = vadd.f32 %v582_v26, %v574_v25  ;;  %v600_v37 = vmul.f32 %v2218_v33, %v479_v4  ;;  %vm499_vm4 = vcmp.gt.f32.partialorder %v2983_v15, 0.0 }
  0xab   : > { %v568_v7 = vsub.f32 %v476_v0, %v567_v6  ;;  %v575_v8 = vsub.f32 %v477_v1, %v567_v6  ;;  %v584_v9 = vsub.f32 %v478_v2, %v567_v6  ;;  %v593_v10 = vsub.f32 %v479_v4, %v567_v6  ;;  %vm606_vm7 = vmxor %vm499_vm4, %vm2702_vm6 }
  0xac   : > { %v592_v36 = vadd.f32 %v591_v32, %v583_v31  ;;  %v497_v38 = vadd.s32 %v496_v35, %v494_v34 }
  0xad   : > { %v569_v11 = vmul.f32 1.442695, %v568_v7  ;;  %v576_v12 = vmul.f32 1.442695, %v575_v8  ;;  %v585_v13 = vmul.f32 1.442695, %v584_v9 }
  0xae   : > { %v594_v14 = vmul.f32 1.442695, %v593_v10  ;;  %v601_v40 = vadd.f32 %v600_v37, %v592_v36  ;;  %vm498_vm5 = vcmp.lt.s32.totalorder %v497_v38, 256 }
  0xaf   : > { %2412 = vpow2.f32 %v569_v11  ;;  %vm607_vm8 = vmand %vm606_vm7, %vm498_vm5 }
  0xb0   : > { %2414 = vpow2.f32 %v576_v12 }
  0xb1   : > { %2416 = vpow2.f32 %v585_v13 }
  0xb2   : > { %2418 = vpow2.f32 %v594_v14 }
  0xb5   : > { %v2413_v16 = vpop.eup %2412 }
  0xb6   : > { %v2415_v20 = vpop.eup %2414 }
  0xb7   : > { %v2417_v22 = vpop.eup %2416  ;;  %v578_v23 = vadd.f32 %v2415_v20, %v2413_v16 }
  0xb8   : > { %v2419_v24 = vpop.eup %2418 }
  0xb9   : > { %v587_v27 = vadd.f32 %v2417_v22, %v578_v23 }
  0xbb   : > { %v596_v30 = vadd.f32 %v2419_v24, %v587_v27 }
  0xbd   : > { %2420 = vlog2.f32 %v596_v30 }
  0xc3   : > { %v2421_v39 = vpop.eup %2420 }
  0xc4   : > { %v603_v41 = vmul.f32 0.6931472, %v2421_v39 }
  0xc6   : > { %v604_v42 = vadd.f32 %v603_v41, %v567_v6 }
  0xc8   : > { %v2996_v43 = vsub.f32 %v604_v42, %v601_v40 }
  0xca   : > { %v608_v44 = vmax.f32 %v2996_v43, 0.0 }
  0xcc   : > { %v2999_v45 = vsel %vm607_vm8, %v608_v44, 0.0 }
  0xcd   : > { %v3002_v46 = vand.u32 4294901760, %v2999_v45 }
  0xcf   : > { %vm654_vm9 = vcmp.ge.s32.totalorder %v3002_v46, 805306368  ;;  %vm633_vm10 = vcmp.ge.s32.totalorder %v3002_v46, 536870912  ;;  %vm612_vm11 = vcmp.ge.s32.totalorder %v3002_v46, 268435456  ;;  %vm675_vm12 = vcmp.ge.s32.totalorder %v3002_v46, 1073741824 }
  0xd0   : > { %v655_v48 = vsel %vm654_vm9, 1, %v2703_v47  ;;  %v634_v49 = vsel %vm633_vm10, 1, %v2703_v47  ;;  %v613_v50 = vsel %vm612_vm11, 1, %v2703_v47  ;;  %v676_v54 = vsel %vm675_vm12, 1, %v2703_v47 }
  0xd1   : > { %v657_v51 = vshrl.u32 %v655_v48, 16  ;;  %v635_v52 = vand.u32 65535, %v634_v49  ;;  %v615_v53 = vshrl.u32 %v613_v50, 16  ;;  %v678_v58 = vshrl.u32 %v676_v54, 16 }
  0xd2   : > { %v614_v59 = vand.u32 65535, %v613_v50  ;;  %v636_v60 = vshrl.u32 %v634_v49, 16  ;;  %vm696_vm13 = vcmp.ge.s32.totalorder %v3002_v46, 1342177280  ;;  %v677_v1 = vand.u32 65535, %v676_v54 }
  0xd3   : > { %v659_v55 = vcvt.s32.f32 %v657_v51  ;;  %v637_v56 = vcvt.s32.f32 %v635_v52  ;;  %v617_v57 = vcvt.s32.f32 %v615_v53  ;;  %v680_v61 = vcvt.s32.f32 %v678_v58 }
  0xd4   : > { %v616_v62 = vcvt.s32.f32 %v614_v59  ;;  %v638_v63 = vcvt.s32.f32 %v636_v60  ;;  %v697_v0 = vsel %vm696_vm13, 1, %v2703_v47  ;;  %v656_v3 = vand.u32 65535, %v655_v48 }
  0xd5   : > { %662 = vadd.xlane.f32.xlu1 %v659_v55  ;;  %639 = vadd.xlane.f32.xlu2 %v637_v56  ;;  %v699_v2 = vshrl.u32 %v697_v0, 16  ;;  %vm738_vm14 = vcmp.ge.s32.totalorder %v3002_v46, 1879048192  ;;  %vm717_vm15 = vcmp.ge.s32.totalorder %v3002_v46, 1610612736  ;;  %v679_v4 = vcvt.s32.f32 %v677_v1 }
  0xd6   : > { %620 = vadd.xlane.f32.xlu0 %v617_v57  ;;  %v658_v6 = vcvt.s32.f32 %v656_v3  ;;  %v739_v7 = vsel %vm738_vm14, 1, %v2703_v47  ;;  %v718_v8 = vsel %vm717_vm15, 1, %v2703_v47  ;;  %v698_v9 = vand.u32 65535, %v697_v0 }
  0xd7   : > { %v701_v5 = vcvt.s32.f32 %v699_v2  ;;  %v741_v10 = vshrl.u32 %v739_v7, 16  ;;  %v720_v11 = vshrl.u32 %v718_v8, 16  ;;  %v740_v16 = vand.u32 65535, %v739_v7 }
  0xd8   : > { %v700_v12 = vcvt.s32.f32 %v698_v9  ;;  %v719_v18 = vand.u32 65535, %v718_v8 }
  0xd9   : > { %v743_v13 = vcvt.s32.f32 %v741_v10  ;;  %v722_v14 = vcvt.s32.f32 %v720_v11  ;;  %v742_v19 = vcvt.s32.f32 %v740_v16 }
  0xda   : > { %v721_v20 = vcvt.s32.f32 %v719_v18 }
  0xdd   : > { %683 = vadd.xlane.f32.xlu2 %v680_v61  ;;  %618 = vadd.xlane.f32.xlu1 %v616_v62 }
  0xde   : > { %641 = vadd.xlane.f32.xlu0 %v638_v63 }
  0xe5   : > { %681 = vadd.xlane.f32.xlu2 %v679_v4  ;;  %704 = vadd.xlane.f32.xlu1 %v701_v5 }
  0xe6   : > { %660 = vadd.xlane.f32.xlu0 %v658_v6 }
  0xed   : > { %702 = vadd.xlane.f32.xlu1 %v700_v12  ;;  %746 = vadd.xlane.f32.xlu2 %v743_v13 }
  0xee   : > { %725 = vadd.xlane.f32.xlu0 %v722_v14 }
  0xf5   : > { %744 = vadd.xlane.f32.xlu1 %v742_v19 }
  0xf6   : > { %723 = vadd.xlane.f32.xlu0 %v721_v20 }
 0x148   : > { %v663_v21 = vpop.xlane.xlu1 %662  ;;  %v640_v22 = vpop.xlane.xlu2 %639 }
 0x149   : > { %v621_v23 = vpop.xlane.xlu0 %620  ;;  %v643_v33 = vcvt.f32.s32 %v640_v22  ;;  %v665_v36 = vcvt.f32.s32 %v663_v21 }
 0x14a   : > { %v623_v24 = vcvt.f32.s32 %v621_v23 }
 0x14b   : > { %v666_v50 = vshll.u32 %v665_v36, 16 }
 0x14c   : > { %v624_v27 = vshll.u32 %v623_v24, 16 }
 0x150   : > { %v684_v25 = vpop.xlane.xlu2 %683  ;;  %v619_v26 = vpop.xlane.xlu1 %618 }
 0x151   : > { %v642_v28 = vpop.xlane.xlu0 %641  ;;  %v622_v29 = vcvt.f32.s32 %v619_v26  ;;  %v686_v31 = vcvt.f32.s32 %v684_v25 }
 0x152   : > { %v644_v30 = vcvt.f32.s32 %v642_v28 }
 0x153   : > { %v625_v32 = vadd.s32 %v624_v27, %v622_v29  ;;  %v687_v38 = vshll.u32 %v686_v31, 16 }
 0x154   : > { %v645_v34 = vshll.u32 %v644_v30, 16 }
 0x155   : > { %v626_v35 = vrot.slane %v625_v32, 4 }
 0x156   : > { %v646_v37 = vadd.s32 %v645_v34, %v643_v33 }
 0x157   : > { %v627_v39 = vadd.s32 %v626_v35, %v625_v32 }
 0x158   : > { %v647_v40 = vrot.slane %v646_v37, 4  ;;  %v682_v41 = vpop.xlane.xlu2 %681  ;;  %v705_v42 = vpop.xlane.xlu1 %704 }
 0x159   : > { %v685_v44 = vcvt.f32.s32 %v682_v41  ;;  %v661_v48 = vpop.xlane.xlu0 %660  ;;  %v628_v49 = vrot.slane %v627_v39, 2  ;;  %v707_v58 = vcvt.f32.s32 %v705_v42 }
 0x15a   : > { %v648_v51 = vadd.s32 %v647_v40, %v646_v37  ;;  %v664_v52 = vcvt.f32.s32 %v661_v48 }
 0x15b   : > { %v688_v53 = vadd.s32 %v687_v38, %v685_v44  ;;  %v629_v54 = vadd.s32 %v628_v49, %v627_v39  ;;  %v708_v4 = vshll.u32 %v707_v58, 16 }
 0x15c   : > { %v667_v55 = vadd.s32 %v666_v50, %v664_v52  ;;  %v649_v56 = vrot.slane %v648_v51, 2 }
 0x15d   : > { %v689_v57 = vrot.slane %v688_v53, 4  ;;  %v630_v59 = vrot.slane %v629_v54, 1 }
 0x15e   : > { %v668_v60 = vrot.slane %v667_v55, 4  ;;  %v650_v61 = vadd.s32 %v649_v56, %v648_v51 }
 0x15f   : > { %v690_v62 = vadd.s32 %v689_v57, %v688_v53  ;;  %v631_v63 = vadd.s32 %v630_v59, %v629_v54 }
 0x160   : > { %v669_v0 = vadd.s32 %v668_v60, %v667_v55  ;;  %v703_v1 = vpop.xlane.xlu1 %702  ;;  %v651_v2 = vrot.slane %v650_v61, 1  ;;  %v747_v3 = vpop.xlane.xlu2 %746 }
 0x161   : > { %v726_v5 = vpop.xlane.xlu0 %725  ;;  %v706_v6 = vcvt.f32.s32 %v703_v1  ;;  %2231 = vpush %v631_v63  ;;  %v691_v7 = vrot.slane %v690_v62, 2  ;;  %v749_v11 = vcvt.f32.s32 %v747_v3 }
 0x162   : > { %v652_v8 = vadd.s32 %v651_v2, %v650_v61  ;;  %v670_v9 = vrot.slane %v669_v0, 2  ;;  %v728_v18 = vcvt.f32.s32 %v726_v5 }
 0x163   : > { %v709_v10 = vadd.s32 %v708_v4, %v706_v6  ;;  %v692_v12 = vadd.s32 %v691_v7, %v690_v62  ;;  %v750_v21 = vshll.u32 %v749_v11, 16 }
 0x164   : > { %2233 = vpush %v652_v8  ;;  %v671_v13 = vadd.s32 %v670_v9, %v669_v0  ;;  %v729_v28 = vshll.u32 %v728_v18, 16 }
 0x165   : > { %v710_v14 = vrot.slane %v709_v10, 4  ;;  %v693_v16 = vrot.slane %v692_v12, 1 }
 0x166   : > { %v672_v19 = vrot.slane %v671_v13, 1 }
 0x167   : > { %v711_v20 = vadd.s32 %v710_v14, %v709_v10  ;;  %v694_v22 = vadd.s32 %v693_v16, %v692_v12 }
 0x168   : > { %v745_v23 = vpop.xlane.xlu1 %744  ;;  %v673_v24 = vadd.s32 %v672_v19, %v671_v13 }
 0x169   : > { %v724_v25 = vpop.xlane.xlu0 %723  ;;  %v748_v26 = vcvt.f32.s32 %v745_v23  ;;  %v712_v27 = vrot.slane %v711_v20, 2 }
 0x16a   : > { %v727_v29 = vcvt.f32.s32 %v724_v25  ;;  %2235 = vpush %v673_v24 }
 0x16b   : > { %v751_v30 = vadd.s32 %v750_v21, %v748_v26  ;;  %2237 = vpush %v694_v22  ;;  %v713_v31 = vadd.s32 %v712_v27, %v711_v20 }
 0x16c   : > { %v730_v32 = vadd.s32 %v729_v28, %v727_v29 }
 0x16d   : > { %v752_v33 = vrot.slane %v751_v30, 4  ;;  %v714_v34 = vrot.slane %v713_v31, 1 }
 0x16e   : > { %v731_v35 = vrot.slane %v730_v32, 4 }
 0x16f   : > { %v753_v36 = vadd.s32 %v752_v33, %v751_v30  ;;  %v715_v37 = vadd.s32 %v714_v34, %v713_v31 }
 0x170   : > { %v732_v38 = vadd.s32 %v731_v35, %v730_v32 }
 0x171   : > { %2239 = vpush %v715_v37  ;;  %v754_v39 = vrot.slane %v753_v36, 2 }
 0x172   : > { %v733_v40 = vrot.slane %v732_v38, 2 }
 0x173   : > { %v755_v41 = vadd.s32 %v754_v39, %v753_v36 }
 0x174   : > { %v734_v42 = vadd.s32 %v733_v40, %v732_v38 }
 0x175   : > { %v756_v44 = vrot.slane %v755_v41, 1 }
 0x176   : > { %v735_v48 = vrot.slane %v734_v42, 1 }
 0x177   : > { %v757_v49 = vadd.s32 %v756_v44, %v755_v41 }
 0x178   : > { %v736_v50 = vadd.s32 %v735_v48, %v734_v42 }
 0x17a   : > { %2241 = vpush %v736_v50 }
 0x17b   : > { %2243 = vpush %v757_v49 }
 0x192   : > { %s2232_s7 = spop %2231 }
 0x193   : > { %p759_p6 = scmp.ge.s32.totalorder %s2232_s7, %s3019_s14 }
 0x195   : > { %s2234_s10 = spop %2233 }
 0x196   : > { %p761_p13 = scmp.ge.s32.totalorder %s2234_s10, %s3019_s14 }
 0x197   : > { %s760_s18 = scalar_select %p759_p6, 1, 0 }
 0x198   : > { %s762_s4 = scalar_select %p761_p13, 1, 0 }
 0x19a   : > { %s763_s0 = sadd.s32 %s762_s4, %s760_s18 }
 0x19b   : > { %s2236_s1 = spop %2235 }
 0x19c   : > { %p764_p2 = scmp.ge.s32.totalorder %s2236_s1, %s3019_s14  ;;  %s2238_s19 = spop %2237 }
 0x19d   : > { %p767_p3 = scmp.ge.s32.totalorder %s2238_s19, %s3019_s14 }
 0x19e   : > { %s765_s22 = scalar_select %p764_p2, 1, 0 }
 0x19f   : > { %s768_s27 = scalar_select %p767_p3, 1, 0 }
 0x1a0   : > { %s766_s23 = sadd.s32 %s765_s22, %s763_s0 }
 0x1a1   : > { %s769_s21 = sadd.s32 %s768_s27, %s766_s23 }
 0x1a2   : > { %s2240_s26 = spop %2239 }
 0x1a3   : > { %p770_p4 = scmp.ge.s32.totalorder %s2240_s26, %s3019_s14 }
 0x1a5   : > { %s771_s17 = scalar_select %p770_p4, 1, 0 }
 0x1a7   : > { %s772_s2 = sadd.s32 %s771_s17, %s769_s21 }
 0x1ab   : > { %s2242_s11 = spop %2241 }
 0x1ac   : > { %p773_p0 = scmp.ge.s32.totalorder %s2242_s11, %s3019_s14  ;;  %s2244_s20 = spop %2243 }
 0x1ad   : > { %p776_p5 = scmp.ge.s32.totalorder %s2244_s20, %s3019_s14 }
 0x1ae   : > { %s774_s9 = scalar_select %p773_p0, 1, 0 }
 0x1af   : > { %s777_s16 = scalar_select %p776_p5, 1, 0 }
 0x1b0   : > { %s775_s15 = sadd.s32 %s774_s9, %s772_s2 }
 0x1b1   : > { %s778_s7 = sadd.s32 %s777_s16, %s775_s15 }
 0x1b2   : > { %s3028_s10 = sshll.u32 %s778_s7, 28 }
 0x1b3   : > { %s826_s1 = sadd.s32 50331648, %s3028_s10  ;;  %s803_s18 = sadd.s32 33554432, %s3028_s10 }
 0x1b4   : > { %v827_v51 = vstv %s826_s1  ;;  %v804_v52 = vstv %s803_s18  ;;  %s780_s19 = sadd.s32 16777216, %s3028_s10  ;;  %s849_s4 = sadd.s32 67108864, %s3028_s10 }
 0x1b5   : > { %vm828_vm0 = vcmp.ge.s32.totalorder %v3002_v46, %v827_v51  ;;  %vm805_vm1 = vcmp.ge.s32.totalorder %v3002_v46, %v804_v52  ;;  %v781_v53 = vstv %s780_s19  ;;  %v850_v54 = vstv %s849_s4  ;;  %s872_s26 = sadd.s32 83886080, %s3028_s10  ;;  %s918_s22 = sadd.s32 117440512, %s3028_s10 }
 0x1b6   : > { %v829_v55 = vsel %vm828_vm0, 1, %v2703_v47  ;;  %v806_v56 = vsel %vm805_vm1, 1, %v2703_v47  ;;  %vm782_vm2 = vcmp.ge.s32.totalorder %v3002_v46, %v781_v53  ;;  %vm851_vm3 = vcmp.ge.s32.totalorder %v3002_v46, %v850_v54  ;;  %s895_s0 = sadd.s32 100663296, %s3028_s10  ;;  %s941_s27 = sadd.s32 134217728, %s3028_s10 }
 0x1b7   : > { %v831_v57 = vshrl.u32 %v829_v55, 16  ;;  %v808_v58 = vshrl.u32 %v806_v56, 16  ;;  %v783_v59 = vsel %vm782_vm2, 1, %v2703_v47  ;;  %v852_v0 = vsel %vm851_vm3, 1, %v2703_v47  ;;  %s987_s23 = sadd.s32 167772160, %s3028_s10  ;;  %s964_s17 = sadd.s32 150994944, %s3028_s10 }
 0x1b8   : > { %v785_v60 = vshrl.u32 %v783_v59, 16  ;;  %v873_v1 = vstv %s872_s26  ;;  %v854_v2 = vshrl.u32 %v852_v0, 16  ;;  %v807_v3 = vand.u32 65535, %v806_v56  ;;  %s1010_s21 = sadd.s32 184549376, %s3028_s10  ;;  %s1056_s11 = sadd.s32 218103808, %s3028_s10 }
 0x1b9   : > { %v833_v61 = vcvt.s32.f32 %v831_v57  ;;  %v810_v62 = vcvt.s32.f32 %v808_v58  ;;  %v784_v4 = vand.u32 65535, %v783_v59  ;;  %vm874_vm5 = vcmp.ge.s32.totalorder %v3002_v46, %v873_v1  ;;  %s1033_s20 = sadd.s32 201326592, %s3028_s10  ;;  %s1079_s2 = sadd.s32 234881024, %s3028_s10 }
 0x1ba   : > { %v787_v63 = vcvt.s32.f32 %v785_v60  ;;  %v856_v5 = vcvt.s32.f32 %v854_v2  ;;  %v809_v6 = vcvt.s32.f32 %v807_v3  ;;  %v875_v8 = vsel %vm874_vm5, 1, %v2703_v47  ;;  %s1102_s9 = sadd.s32 251658240, %s3028_s10 }
 0x1bb   : > { %836 = vadd.xlane.f32.xlu1 %v833_v61  ;;  %813 = vadd.xlane.f32.xlu0 %v810_v62  ;;  %v786_v7 = vcvt.s32.f32 %v784_v4  ;;  %v919_v9 = vstv %s918_s22  ;;  %v853_v10 = vand.u32 65535, %v852_v0  ;;  %v877_v11 = vshrl.u32 %v875_v8, 16 }
 0x1bc   : > { %790 = vadd.xlane.f32.xlu2 %v787_v63  ;;  %v896_v12 = vstv %s895_s0  ;;  %v830_v13 = vand.u32 65535, %v829_v55  ;;  %vm920_vm6 = vcmp.ge.s32.totalorder %v3002_v46, %v919_v9  ;;  %v942_v21 = vstv %s941_s27 }
 0x1bd   : > { %vm897_vm7 = vcmp.ge.s32.totalorder %v3002_v46, %v896_v12  ;;  %v855_v14 = vcvt.s32.f32 %v853_v10  ;;  %v879_v16 = vcvt.s32.f32 %v877_v11  ;;  %v921_v19 = vsel %vm920_vm6, 1, %v2703_v47 }
 0x1be   : > { %v832_v18 = vcvt.s32.f32 %v830_v13  ;;  %v898_v20 = vsel %vm897_vm7, 1, %v2703_v47  ;;  %v923_v22 = vshrl.u32 %v921_v19, 16  ;;  %v876_v23 = vand.u32 65535, %v875_v8 }
 0x1bf   : > { %v900_v24 = vshrl.u32 %v898_v20, 16  ;;  %vm943_vm8 = vcmp.ge.s32.totalorder %v3002_v46, %v942_v21  ;;  %v988_v29 = vstv %s987_s23  ;;  %v922_v30 = vand.u32 65535, %v921_v19 }
 0x1c0   : > { %v925_v25 = vcvt.s32.f32 %v923_v22  ;;  %v878_v26 = vcvt.s32.f32 %v876_v23  ;;  %v944_v28 = vsel %vm943_vm8, 1, %v2703_v47  ;;  %v965_v32 = vstv %s964_s17 }
 0x1c1   : > { %v902_v27 = vcvt.s32.f32 %v900_v24  ;;  %v946_v31 = vshrl.u32 %v944_v28, 16  ;;  %v899_v33 = vand.u32 65535, %v898_v20  ;;  %vm989_vm9 = vcmp.ge.s32.totalorder %v3002_v46, %v988_v29 }
 0x1c2   : > { %vm966_vm10 = vcmp.ge.s32.totalorder %v3002_v46, %v965_v32  ;;  %v924_v34 = vcvt.s32.f32 %v922_v30  ;;  %v990_v37 = vsel %vm989_vm9, 1, %v2703_v47  ;;  %v1011_v39 = vstv %s1010_s21 }
 0x1c3   : > { %859 = vadd.xlane.f32.xlu1 %v856_v5  ;;  %811 = vadd.xlane.f32.xlu0 %v809_v6  ;;  %v948_v35 = vcvt.s32.f32 %v946_v31  ;;  %v901_v36 = vcvt.s32.f32 %v899_v33  ;;  %v967_v38 = vsel %vm966_vm10, 1, %v2703_v47  ;;  %v992_v40 = vshrl.u32 %v990_v37, 16 }
 0x1c4   : > { %788 = vadd.xlane.f32.xlu2 %v786_v7  ;;  %v945_v41 = vand.u32 65535, %v944_v28  ;;  %v969_v42 = vshrl.u32 %v967_v38, 16  ;;  %vm1012_vm11 = vcmp.ge.s32.totalorder %v3002_v46, %v1011_v39  ;;  %v1057_v51 = vstv %s1056_s11 }
 0x1c5   : > { %v994_v44 = vcvt.s32.f32 %v992_v40  ;;  %v1013_v50 = vsel %vm1012_vm11, 1, %v2703_v47  ;;  %v991_v52 = vand.u32 65535, %v990_v37  ;;  %v1034_v54 = vstv %s1033_s20 }
 0x1c6   : > { %v947_v48 = vcvt.s32.f32 %v945_v41  ;;  %v971_v49 = vcvt.s32.f32 %v969_v42  ;;  %v1015_v53 = vshrl.u32 %v1013_v50, 16  ;;  %v968_v55 = vand.u32 65535, %v967_v38 }
 0x1c7   : > { %vm1058_vm12 = vcmp.ge.s32.totalorder %v3002_v46, %v1057_v51  ;;  %vm1035_vm13 = vcmp.ge.s32.totalorder %v3002_v46, %v1034_v54  ;;  %v993_v56 = vcvt.s32.f32 %v991_v52  ;;  %v1080_v61 = vstv %s1079_s2 }
 0x1c8   : > { %v1017_v57 = vcvt.s32.f32 %v1015_v53  ;;  %v970_v58 = vcvt.s32.f32 %v968_v55  ;;  %v1059_v59 = vsel %vm1058_vm12, 1, %v2703_v47  ;;  %v1036_v60 = vsel %vm1035_vm13, 1, %v2703_v47 }
 0x1c9   : > { %v1061_v62 = vshrl.u32 %v1059_v59, 16  ;;  %v1014_v63 = vand.u32 65535, %v1013_v50  ;;  %v1038_v0 = vshrl.u32 %v1036_v60, 16  ;;  %vm1081_vm14 = vcmp.ge.s32.totalorder %v3002_v46, %v1080_v61 }
 0x1ca   : > { %v1082_v4 = vsel %vm1081_vm14, 1, %v2703_v47  ;;  %v1103_v5 = vstv %s1102_s9  ;;  %v1060_v6 = vand.u32 65535, %v1059_v59  ;;  %v1037_v8 = vand.u32 65535, %v1036_v60 }
 0x1cb   : > { %857 = vadd.xlane.f32.xlu1 %v855_v14  ;;  %882 = vadd.xlane.f32.xlu0 %v879_v16  ;;  %v1063_v1 = vcvt.s32.f32 %v1061_v62  ;;  %v1016_v2 = vcvt.s32.f32 %v1014_v63  ;;  %v1040_v3 = vcvt.s32.f32 %v1038_v0  ;;  %v1084_v7 = vshrl.u32 %v1082_v4, 16 }
 0x1cc   : > { %834 = vadd.xlane.f32.xlu2 %v832_v18  ;;  %vm1104_vm15 = vcmp.ge.s32.totalorder %v3002_v46, %v1103_v5  ;;  %v1062_v9 = vcvt.s32.f32 %v1060_v6  ;;  %v1039_v11 = vcvt.s32.f32 %v1037_v8  ;;  %v1083_v14 = vand.u32 65535, %v1082_v4 }
 0x1cd   : > { %v1086_v10 = vcvt.s32.f32 %v1084_v7  ;;  %v1105_v12 = vsel %vm1104_vm15, 1, %v2703_v47 }
 0x1ce   : > { %v1106_v13 = vand.u32 65535, %v1105_v12  ;;  %v1107_v16 = vshrl.u32 %v1105_v12, 16  ;;  %v1085_v19 = vcvt.s32.f32 %v1083_v14 }
 0x1d0   : > { %v1108_v18 = vcvt.s32.f32 %v1106_v13  ;;  %v1109_v20 = vcvt.s32.f32 %v1107_v16 }
 0x1d3   : > { %928 = vadd.xlane.f32.xlu1 %v925_v25  ;;  %880 = vadd.xlane.f32.xlu0 %v878_v26 }
 0x1d4   : > { %905 = vadd.xlane.f32.xlu2 %v902_v27 }
 0x1db   : > { %926 = vadd.xlane.f32.xlu1 %v924_v34  ;;  %951 = vadd.xlane.f32.xlu0 %v948_v35 }
 0x1dc   : > { %903 = vadd.xlane.f32.xlu2 %v901_v36 }
 0x1e3   : > { %997 = vadd.xlane.f32.xlu1 %v994_v44  ;;  %949 = vadd.xlane.f32.xlu0 %v947_v48 }
 0x1e4   : > { %974 = vadd.xlane.f32.xlu2 %v971_v49 }
 0x1eb   : > { %995 = vadd.xlane.f32.xlu1 %v993_v56  ;;  %1020 = vadd.xlane.f32.xlu0 %v1017_v57 }
 0x1ec   : > { %972 = vadd.xlane.f32.xlu2 %v970_v58 }
 0x1f3   : > { %1066 = vadd.xlane.f32.xlu1 %v1063_v1  ;;  %1018 = vadd.xlane.f32.xlu0 %v1016_v2 }
 0x1f4   : > { %1043 = vadd.xlane.f32.xlu2 %v1040_v3 }
 0x1fb   : > { %1064 = vadd.xlane.f32.xlu1 %v1062_v9  ;;  %1089 = vadd.xlane.f32.xlu0 %v1086_v10 }
 0x1fc   : > { %1041 = vadd.xlane.f32.xlu2 %v1039_v11 }
 0x203   : > { %1110 = vadd.xlane.f32.xlu1 %v1108_v18  ;;  %1087 = vadd.xlane.f32.xlu0 %v1085_v19 }
 0x204   : > { %1112 = vadd.xlane.f32.xlu2 %v1109_v20 }
 0x22e   : > { %v837_v21 = vpop.xlane.xlu1 %836  ;;  %v814_v22 = vpop.xlane.xlu0 %813 }
 0x22f   : > { %v791_v23 = vpop.xlane.xlu2 %790  ;;  %v816_v24 = vcvt.f32.s32 %v814_v22  ;;  %v839_v37 = vcvt.f32.s32 %v837_v21 }
 0x230   : > { %v793_v25 = vcvt.f32.s32 %v791_v23 }
 0x231   : > { %v817_v28 = vshll.u32 %v816_v24, 16  ;;  %v840_v51 = vshll.u32 %v839_v37, 16 }
 0x232   : > { %v794_v31 = vshll.u32 %v793_v25, 16 }
 0x236   : > { %v860_v26 = vpop.xlane.xlu1 %859  ;;  %v812_v27 = vpop.xlane.xlu0 %811 }
 0x237   : > { %v815_v29 = vcvt.f32.s32 %v812_v27  ;;  %v789_v30 = vpop.xlane.xlu2 %788  ;;  %v862_v35 = vcvt.f32.s32 %v860_v26 }
 0x238   : > { %v792_v32 = vcvt.f32.s32 %v789_v30 }
 0x239   : > { %v818_v33 = vadd.s32 %v817_v28, %v815_v29  ;;  %v863_v44 = vshll.u32 %v862_v35, 16 }
 0x23a   : > { %v795_v34 = vadd.s32 %v794_v31, %v792_v32 }
 0x23b   : > { %v819_v36 = vrot.slane %v818_v33, 4 }
 0x23c   : > { %v796_v38 = vrot.slane %v795_v34, 4 }
 0x23d   : > { %v820_v39 = vadd.s32 %v819_v36, %v818_v33 }
 0x23e   : > { %v797_v40 = vadd.s32 %v796_v38, %v795_v34  ;;  %v858_v41 = vpop.xlane.xlu1 %857  ;;  %v883_v42 = vpop.xlane.xlu0 %882 }
 0x23f   : > { %v861_v48 = vcvt.f32.s32 %v858_v41  ;;  %v835_v49 = vpop.xlane.xlu2 %834  ;;  %v821_v50 = vrot.slane %v820_v39, 2  ;;  %v885_v59 = vcvt.f32.s32 %v883_v42 }
 0x240   : > { %v838_v52 = vcvt.f32.s32 %v835_v49  ;;  %v798_v53 = vrot.slane %v797_v40, 2 }
 0x241   : > { %v864_v54 = vadd.s32 %v863_v44, %v861_v48  ;;  %v822_v55 = vadd.s32 %v821_v50, %v820_v39  ;;  %v886_v5 = vshll.u32 %v885_v59, 16 }
 0x242   : > { %v841_v56 = vadd.s32 %v840_v51, %v838_v52  ;;  %v799_v57 = vadd.s32 %v798_v53, %v797_v40 }
 0x243   : > { %v865_v58 = vrot.slane %v864_v54, 4  ;;  %v823_v60 = vrot.slane %v822_v55, 1 }
 0x244   : > { %v842_v61 = vrot.slane %v841_v56, 4  ;;  %v800_v62 = vrot.slane %v799_v57, 1 }
 0x245   : > { %v866_v63 = vadd.s32 %v865_v58, %v864_v54  ;;  %v824_v0 = vadd.s32 %v823_v60, %v822_v55 }
 0x246   : > { %v843_v1 = vadd.s32 %v842_v61, %v841_v56  ;;  %v929_v2 = vpop.xlane.xlu1 %928  ;;  %v881_v3 = vpop.xlane.xlu0 %880  ;;  %v801_v4 = vadd.s32 %v800_v62, %v799_v57 }
 0x247   : > { %v884_v6 = vcvt.f32.s32 %v881_v3  ;;  %v906_v7 = vpop.xlane.xlu2 %905  ;;  %v867_v8 = vrot.slane %v866_v63, 2  ;;  %v931_v13 = vcvt.f32.s32 %v929_v2 }
 0x248   : > { %2245 = vpush %v801_v4  ;;  %v844_v9 = vrot.slane %v843_v1, 2  ;;  %v908_v18 = vcvt.f32.s32 %v906_v7 }
 0x249   : > { %v887_v10 = vadd.s32 %v886_v5, %v884_v6  ;;  %2247 = vpush %v824_v0  ;;  %v868_v11 = vadd.s32 %v867_v8, %v866_v63  ;;  %v932_v25 = vshll.u32 %v931_v13, 16 }
 0x24a   : > { %v845_v12 = vadd.s32 %v844_v9, %v843_v1  ;;  %v909_v29 = vshll.u32 %v908_v18, 16 }
 0x24b   : > { %v888_v14 = vrot.slane %v887_v10, 4  ;;  %v869_v16 = vrot.slane %v868_v11, 1 }
 0x24c   : > { %v846_v19 = vrot.slane %v845_v12, 1 }
 0x24d   : > { %v889_v20 = vadd.s32 %v888_v14, %v887_v10  ;;  %v870_v21 = vadd.s32 %v869_v16, %v868_v11 }
 0x24e   : > { %v927_v22 = vpop.xlane.xlu1 %926  ;;  %v952_v23 = vpop.xlane.xlu0 %951  ;;  %v847_v24 = vadd.s32 %v846_v19, %v845_v12 }
 0x24f   : > { %v930_v26 = vcvt.f32.s32 %v927_v22  ;;  %v904_v27 = vpop.xlane.xlu2 %903  ;;  %v890_v28 = vrot.slane %v889_v20, 2  ;;  %v954_v35 = vcvt.f32.s32 %v952_v23 }
 0x250   : > { %v907_v30 = vcvt.f32.s32 %v904_v27  ;;  %2249 = vpush %v847_v24 }
 0x251   : > { %v933_v31 = vadd.s32 %v932_v25, %v930_v26  ;;  %2251 = vpush %v870_v21  ;;  %v891_v32 = vadd.s32 %v890_v28, %v889_v20  ;;  %v955_v44 = vshll.u32 %v954_v35, 16 }
 0x252   : > { %v910_v33 = vadd.s32 %v909_v29, %v907_v30 }
 0x253   : > { %v934_v34 = vrot.slane %v933_v31, 4  ;;  %v892_v36 = vrot.slane %v891_v32, 1 }
 0x254   : > { %v911_v37 = vrot.slane %v910_v33, 4 }
 0x255   : > { %v935_v38 = vadd.s32 %v934_v34, %v933_v31  ;;  %v893_v39 = vadd.s32 %v892_v36, %v891_v32 }
 0x256   : > { %v912_v40 = vadd.s32 %v911_v37, %v910_v33  ;;  %v998_v41 = vpop.xlane.xlu1 %997  ;;  %v950_v42 = vpop.xlane.xlu0 %949 }
 0x257   : > { %v953_v48 = vcvt.f32.s32 %v950_v42  ;;  %v975_v49 = vpop.xlane.xlu2 %974  ;;  %2253 = vpush %v893_v39  ;;  %v936_v50 = vrot.slane %v935_v38, 2  ;;  %v1000_v55 = vcvt.f32.s32 %v998_v41 }
 0x258   : > { %v913_v51 = vrot.slane %v912_v40, 2  ;;  %v977_v58 = vcvt.f32.s32 %v975_v49 }
 0x259   : > { %v956_v52 = vadd.s32 %v955_v44, %v953_v48  ;;  %v937_v53 = vadd.s32 %v936_v50, %v935_v38  ;;  %v1001_v1 = vshll.u32 %v1000_v55, 16 }
 0x25a   : > { %v914_v54 = vadd.s32 %v913_v51, %v912_v40  ;;  %v978_v5 = vshll.u32 %v977_v58, 16 }
 0x25b   : > { %v957_v56 = vrot.slane %v956_v52, 4  ;;  %v938_v57 = vrot.slane %v937_v53, 1 }
 0x25c   : > { %v915_v59 = vrot.slane %v914_v54, 1 }
 0x25d   : > { %v958_v60 = vadd.s32 %v957_v56, %v956_v52  ;;  %v939_v61 = vadd.s32 %v938_v57, %v937_v53 }
 0x25e   : > { %v996_v62 = vpop.xlane.xlu1 %995  ;;  %v1021_v63 = vpop.xlane.xlu0 %1020  ;;  %v916_v0 = vadd.s32 %v915_v59, %v914_v54 }
 0x25f   : > { %v999_v2 = vcvt.f32.s32 %v996_v62  ;;  %v973_v3 = vpop.xlane.xlu2 %972  ;;  %v959_v4 = vrot.slane %v958_v60, 2  ;;  %v1023_v11 = vcvt.f32.s32 %v1021_v63 }
 0x260   : > { %v976_v6 = vcvt.f32.s32 %v973_v3  ;;  %2255 = vpush %v916_v0 }
 0x261   : > { %v1002_v7 = vadd.s32 %v1001_v1, %v999_v2  ;;  %2257 = vpush %v939_v61  ;;  %v960_v8 = vadd.s32 %v959_v4, %v958_v60  ;;  %v1024_v21 = vshll.u32 %v1023_v11, 16 }
 0x262   : > { %v979_v9 = vadd.s32 %v978_v5, %v976_v6 }
 0x263   : > { %v1003_v10 = vrot.slane %v1002_v7, 4  ;;  %v961_v12 = vrot.slane %v960_v8, 1 }
 0x264   : > { %v980_v13 = vrot.slane %v979_v9, 4 }
 0x265   : > { %v1004_v14 = vadd.s32 %v1003_v10, %v1002_v7  ;;  %v962_v16 = vadd.s32 %v961_v12, %v960_v8 }
 0x266   : > { %v981_v18 = vadd.s32 %v980_v13, %v979_v9  ;;  %v1067_v19 = vpop.xlane.xlu1 %1066  ;;  %v1019_v20 = vpop.xlane.xlu0 %1018 }
 0x267   : > { %v1022_v22 = vcvt.f32.s32 %v1019_v20  ;;  %v1044_v23 = vpop.xlane.xlu2 %1043  ;;  %2259 = vpush %v962_v16  ;;  %v1005_v24 = vrot.slane %v1004_v14, 2  ;;  %v1069_v29 = vcvt.f32.s32 %v1067_v19 }
 0x268   : > { %v982_v25 = vrot.slane %v981_v18, 2  ;;  %v1046_v32 = vcvt.f32.s32 %v1044_v23 }
 0x269   : > { %v1025_v26 = vadd.s32 %v1024_v21, %v1022_v22  ;;  %v1006_v27 = vadd.s32 %v1005_v24, %v1004_v14  ;;  %v1070_v39 = vshll.u32 %v1069_v29, 16 }
 0x26a   : > { %v983_v28 = vadd.s32 %v982_v25, %v981_v18  ;;  %v1047_v44 = vshll.u32 %v1046_v32, 16 }
 0x26b   : > { %v1026_v30 = vrot.slane %v1025_v26, 4  ;;  %v1007_v31 = vrot.slane %v1006_v27, 1 }
 0x26c   : > { %v984_v33 = vrot.slane %v983_v28, 1 }
 0x26d   : > { %v1027_v34 = vadd.s32 %v1026_v30, %v1025_v26  ;;  %v1008_v35 = vadd.s32 %v1007_v31, %v1006_v27 }
 0x26e   : > { %v1065_v36 = vpop.xlane.xlu1 %1064  ;;  %v1090_v37 = vpop.xlane.xlu0 %1089  ;;  %v985_v38 = vadd.s32 %v984_v33, %v983_v28 }
 0x26f   : > { %v1068_v40 = vcvt.f32.s32 %v1065_v36  ;;  %v1042_v41 = vpop.xlane.xlu2 %1041  ;;  %v1028_v42 = vrot.slane %v1027_v34, 2  ;;  %v1092_v53 = vcvt.f32.s32 %v1090_v37 }
 0x270   : > { %v1045_v48 = vcvt.f32.s32 %v1042_v41  ;;  %2261 = vpush %v985_v38 }
 0x271   : > { %v1071_v49 = vadd.s32 %v1070_v39, %v1068_v40  ;;  %2263 = vpush %v1008_v35  ;;  %v1029_v50 = vadd.s32 %v1028_v42, %v1027_v34  ;;  %v1093_v60 = vshll.u32 %v1092_v53, 16 }
 0x272   : > { %v1048_v51 = vadd.s32 %v1047_v44, %v1045_v48 }
 0x273   : > { %v1072_v52 = vrot.slane %v1071_v49, 4  ;;  %v1030_v54 = vrot.slane %v1029_v50, 1 }
 0x274   : > { %v1049_v55 = vrot.slane %v1048_v51, 4 }
 0x275   : > { %v1073_v56 = vadd.s32 %v1072_v52, %v1071_v49  ;;  %v1031_v57 = vadd.s32 %v1030_v54, %v1029_v50 }
 0x276   : > { %v1050_v58 = vadd.s32 %v1049_v55, %v1048_v51  ;;  %v1088_v59 = vpop.xlane.xlu0 %1087  ;;  %v1111_v61 = vpop.xlane.xlu1 %1110 }
 0x277   : > { %v1091_v62 = vcvt.f32.s32 %v1088_v59  ;;  %v1113_v63 = vpop.xlane.xlu2 %1112  ;;  %2265 = vpush %v1031_v57  ;;  %v1074_v0 = vrot.slane %v1073_v56, 2  ;;  %v1114_v5 = vcvt.f32.s32 %v1111_v61 }
 0x278   : > { %v1115_v1 = vcvt.f32.s32 %v1113_v63  ;;  %v1051_v2 = vrot.slane %v1050_v58, 2 }
 0x279   : > { %v1094_v3 = vadd.s32 %v1093_v60, %v1091_v62  ;;  %v1075_v4 = vadd.s32 %v1074_v0, %v1073_v56  ;;  %s2246_s16 = spop %2245 }
 0x27a   : > { %v1116_v6 = vshll.u32 %v1115_v1, 16  ;;  %v1052_v7 = vadd.s32 %v1051_v2, %v1050_v58  ;;  %s2248_s15 = spop %2247  ;;  %p1125_p7 = scmp.ge.s32.totalorder %s2246_s16, %s3019_s14 }
 0x27b   : > { %v1095_v8 = vrot.slane %v1094_v3, 4  ;;  %v1076_v9 = vrot.slane %v1075_v4, 1  ;;  %p1127_p8 = scmp.ge.s32.totalorder %s2248_s15, %s3019_s14 }
 0x27c   : > { %v1117_v10 = vadd.s32 %v1116_v6, %v1114_v5  ;;  %v1053_v11 = vrot.slane %v1052_v7, 1  ;;  %s1126_s1 = scalar_select %p1125_p7, 1, 0 }
 0x27d   : > { %v1096_v12 = vadd.s32 %v1095_v8, %v1094_v3  ;;  %v1077_v13 = vadd.s32 %v1076_v9, %v1075_v4  ;;  %s1128_s19 = scalar_select %p1127_p8, 1, 0 }
 0x27e   : > { %v1118_v14 = vrot.slane %v1117_v10, 4  ;;  %v1054_v16 = vadd.s32 %v1053_v11, %v1052_v7 }
 0x27f   : > { %v1097_v18 = vrot.slane %v1096_v12, 2  ;;  %s1129_s0 = sadd.s32 %s1128_s19, %s1126_s1 }
 0x280   : > { %v1119_v19 = vadd.s32 %v1118_v14, %v1117_v10  ;;  %2267 = vpush %v1054_v16 }
 0x281   : > { %2269 = vpush %v1077_v13  ;;  %v1098_v20 = vadd.s32 %v1097_v18, %v1096_v12  ;;  %s2250_s7 = spop %2249 }
 0x282   : > { %v1120_v21 = vrot.slane %v1119_v19, 2  ;;  %p1130_p10 = scmp.ge.s32.totalorder %s2250_s7, %s3019_s14  ;;  %s2252_s18 = spop %2251 }
 0x283   : > { %v1099_v22 = vrot.slane %v1098_v20, 1  ;;  %p1133_p1 = scmp.ge.s32.totalorder %s2252_s18, %s3019_s14 }
 0x284   : > { %v1121_v23 = vadd.s32 %v1120_v21, %v1119_v19  ;;  %s1131_s22 = scalar_select %p1130_p10, 1, 0 }
 0x285   : > { %v1100_v24 = vadd.s32 %v1099_v22, %v1098_v20  ;;  %s1134_s27 = scalar_select %p1133_p1, 1, 0 }
 0x286   : > { %v1122_v25 = vrot.slane %v1121_v23, 1  ;;  %s1132_s23 = sadd.s32 %s1131_s22, %s1129_s0 }
 0x287   : > { %2271 = vpush %v1100_v24  ;;  %s1135_s2 = sadd.s32 %s1134_s27, %s1132_s23 }
 0x288   : > { %v1123_v26 = vadd.s32 %v1122_v25, %v1121_v23  ;;  %s2254_s4 = spop %2253 }
 0x289   : > { %p1136_p6 = scmp.ge.s32.totalorder %s2254_s4, %s3019_s14 }
 0x28a   : > { %2273 = vpush %v1123_v26 }
 0x28b   : > { %s1137_s21 = scalar_select %p1136_p6, 1, 0 }
 0x28d   : > { %s1138_s16 = sadd.s32 %s1137_s21, %s1135_s2 }
 0x291   : > { %s2256_s26 = spop %2255 }
 0x292   : > { %p1139_p13 = scmp.ge.s32.totalorder %s2256_s26, %s3019_s14  ;;  %s2258_s17 = spop %2257 }
 0x293   : > { %p1142_p2 = scmp.ge.s32.totalorder %s2258_s17, %s3019_s14 }
 0x294   : > { %s1140_s11 = scalar_select %p1139_p13, 1, 0 }
 0x295   : > { %s1143_s7 = scalar_select %p1142_p2, 1, 0 }
 0x296   : > { %s1141_s1 = sadd.s32 %s1140_s11, %s1138_s16 }
 0x297   : > { %s1144_s19 = sadd.s32 %s1143_s7, %s1141_s1 }
 0x298   : > { %s2260_s20 = spop %2259 }
 0x299   : > { %p1145_p3 = scmp.ge.s32.totalorder %s2260_s20, %s3019_s14 }
 0x29b   : > { %s1146_s18 = scalar_select %p1145_p3, 1, 0 }
 0x29d   : > { %s1147_s23 = sadd.s32 %s1146_s18, %s1144_s19 }
 0x2a1   : > { %s2262_s9 = spop %2261 }
 0x2a2   : > { %s2264_s15 = spop %2263  ;;  %p1148_p4 = scmp.ge.s32.totalorder %s2262_s9, %s3019_s14 }
 0x2a3   : > { %p1151_p0 = scmp.ge.s32.totalorder %s2264_s15, %s3019_s14 }
 0x2a4   : > { %s1149_s26 = scalar_select %p1148_p4, 1, 0 }
 0x2a5   : > { %s1152_s22 = scalar_select %p1151_p0, 1, 0 }
 0x2a6   : > { %s1150_s17 = sadd.s32 %s1149_s26, %s1147_s23 }
 0x2a7   : > { %s1153_s2 = sadd.s32 %s1152_s22, %s1150_s17 }
 0x2a8   : > { %s2266_s4 = spop %2265 }
 0x2a9   : > { %p1154_p5 = scmp.ge.s32.totalorder %s2266_s4, %s3019_s14 }
 0x2ab   : > { %s1155_s21 = scalar_select %p1154_p5, 1, 0 }
 0x2ad   : > { %s1156_s16 = sadd.s32 %s1155_s21, %s1153_s2 }
 0x2b1   : > { %s2268_s0 = spop %2267 }
 0x2b2   : > { %p1157_p7 = scmp.ge.s32.totalorder %s2268_s0, %s3019_s14  ;;  %s2270_s27 = spop %2269 }
 0x2b3   : > { %p1160_p8 = scmp.ge.s32.totalorder %s2270_s27, %s3019_s14 }
 0x2b4   : > { %s1158_s20 = scalar_select %p1157_p7, 1, 0 }
 0x2b5   : > { %s1161_s11 = scalar_select %p1160_p8, 1, 0 }
 0x2b6   : > { %s1159_s15 = sadd.s32 %s1158_s20, %s1156_s16 }
 0x2b7   : > { %s1162_s28 = sadd.s32 %s1161_s11, %s1159_s15 }
 0x2b8   : > { %s2272_s9 = spop %2271 }
 0x2b9   : > { %p1163_p10 = scmp.ge.s32.totalorder %s2272_s9, %s3019_s14 }
 0x2bb   : > { %s1164_s7 = scalar_select %p1163_p10, 1, 0 }
 0x2bc   : > { %s2274_s1 = spop %2273 }
 0x2bd   : > { %p1166_p1 = scmp.ge.s32.totalorder %s2274_s1, %s3019_s14  ;;  %s1165_s4 = sadd.s32 %s1164_s7, %s1162_s28 }
 0x2bf   : > { %s1167_s0 = scalar_select %p1166_p1, 1, 0 }
 0x2c1   : > { %s1168_s25 = sadd.s32 %s1167_s0, %s1165_s4 }
 0x2c2   : > { %s2220_s3 = sshll.u32 %s1168_s25, 24 }
 0x2c3   : > { %s3091_s18 = sadd.s32 %s2220_s3, %s3028_s10 }
 0x2c4   : > { %s1217_s19 = sadd.s32 3145728, %s3091_s18  ;;  %s1194_s26 = sadd.s32 2097152, %s3091_s18 }
 0x2c5   : > { %v1218_v27 = vstv %s1217_s19  ;;  %v1195_v28 = vstv %s1194_s26  ;;  %s1171_s22 = sadd.s32 1048576, %s3091_s18  ;;  %s1240_s27 = sadd.s32 4194304, %s3091_s18 }
 0x2c6   : > { %vm1219_vm0 = vcmp.ge.s32.totalorder %v3002_v46, %v1218_v27  ;;  %vm1196_vm1 = vcmp.ge.s32.totalorder %v3002_v46, %v1195_v28  ;;  %v1172_v29 = vstv %s1171_s22  ;;  %v1241_v30 = vstv %s1240_s27  ;;  %s1263_s3 = sadd.s32 5242880, %s3091_s18  ;;  %s1309_s25 = sadd.s32 7340032, %s3091_s18 }
 0x2c7   : > { %v1220_v31 = vsel %vm1219_vm0, 1, %v2703_v47  ;;  %v1197_v32 = vsel %vm1196_vm1, 1, %v2703_v47  ;;  %vm1173_vm2 = vcmp.ge.s32.totalorder %v3002_v46, %v1172_v29  ;;  %vm1242_vm3 = vcmp.ge.s32.totalorder %v3002_v46, %v1241_v30  ;;  %s1286_s28 = sadd.s32 6291456, %s3091_s18  ;;  %s1332_s10 = sadd.s32 8388608, %s3091_s18 }
 0x2c8   : > { %v1222_v33 = vshrl.u32 %v1220_v31, 16  ;;  %v1199_v34 = vshrl.u32 %v1197_v32, 16  ;;  %v1174_v35 = vsel %vm1173_vm2, 1, %v2703_v47  ;;  %v1243_v40 = vsel %vm1242_vm3, 1, %v2703_v47  ;;  %s1378_s23 = sadd.s32 10485760, %s3091_s18  ;;  %s1355_s17 = sadd.s32 9437184, %s3091_s18 }
 0x2c9   : > { %v1176_v36 = vshrl.u32 %v1174_v35, 16  ;;  %v1264_v41 = vstv %s1263_s3  ;;  %v1245_v42 = vshrl.u32 %v1243_v40, 16  ;;  %v1198_v44 = vand.u32 65535, %v1197_v32  ;;  %s1401_s21 = sadd.s32 11534336, %s3091_s18  ;;  %s1447_s20 = sadd.s32 13631488, %s3091_s18 }
 0x2ca   : > { %v1224_v37 = vcvt.s32.f32 %v1222_v33  ;;  %v1201_v38 = vcvt.s32.f32 %v1199_v34  ;;  %v1175_v48 = vand.u32 65535, %v1174_v35  ;;  %vm1265_vm5 = vcmp.ge.s32.totalorder %v3002_v46, %v1264_v41  ;;  %s1424_s11 = sadd.s32 12582912, %s3091_s18  ;;  %s1470_s2 = sadd.s32 14680064, %s3091_s18 }
 0x2cb   : > { %v1178_v39 = vcvt.s32.f32 %v1176_v36  ;;  %v1247_v49 = vcvt.s32.f32 %v1245_v42  ;;  %v1200_v50 = vcvt.s32.f32 %v1198_v44  ;;  %v1266_v52 = vsel %vm1265_vm5, 1, %v2703_v47  ;;  %s1493_s9 = sadd.s32 15728640, %s3091_s18 }
 0x2cc   : > { %1227 = vadd.xlane.f32.xlu1 %v1224_v37  ;;  %1204 = vadd.xlane.f32.xlu0 %v1201_v38  ;;  %v1177_v51 = vcvt.s32.f32 %v1175_v48  ;;  %v1310_v53 = vstv %s1309_s25  ;;  %v1244_v54 = vand.u32 65535, %v1243_v40  ;;  %v1268_v55 = vshrl.u32 %v1266_v52, 16 }
 0x2cd   : > { %1181 = vadd.xlane.f32.xlu2 %v1178_v39  ;;  %v1287_v56 = vstv %s1286_s28  ;;  %v1221_v57 = vand.u32 65535, %v1220_v31  ;;  %vm1311_vm6 = vcmp.ge.s32.totalorder %v3002_v46, %v1310_v53  ;;  %v1333_v63 = vstv %s1332_s10 }
 0x2ce   : > { %vm1288_vm7 = vcmp.ge.s32.totalorder %v3002_v46, %v1287_v56  ;;  %v1246_v58 = vcvt.s32.f32 %v1244_v54  ;;  %v1270_v59 = vcvt.s32.f32 %v1268_v55  ;;  %v1312_v61 = vsel %vm1311_vm6, 1, %v2703_v47 }
 0x2cf   : > { %v1223_v60 = vcvt.s32.f32 %v1221_v57  ;;  %v1289_v62 = vsel %vm1288_vm7, 1, %v2703_v47  ;;  %v1314_v0 = vshrl.u32 %v1312_v61, 16  ;;  %v1267_v1 = vand.u32 65535, %v1266_v52 }
 0x2d0   : > { %v1291_v2 = vshrl.u32 %v1289_v62, 16  ;;  %vm1334_vm8 = vcmp.ge.s32.totalorder %v3002_v46, %v1333_v63  ;;  %v1379_v7 = vstv %s1378_s23  ;;  %v1313_v8 = vand.u32 65535, %v1312_v61 }
 0x2d1   : > { %v1316_v3 = vcvt.s32.f32 %v1314_v0  ;;  %v1269_v4 = vcvt.s32.f32 %v1267_v1  ;;  %v1335_v6 = vsel %vm1334_vm8, 1, %v2703_v47  ;;  %v1356_v10 = vstv %s1355_s17 }
 0x2d2   : > { %v1293_v5 = vcvt.s32.f32 %v1291_v2  ;;  %v1337_v9 = vshrl.u32 %v1335_v6, 16  ;;  %v1290_v11 = vand.u32 65535, %v1289_v62  ;;  %vm1380_vm9 = vcmp.ge.s32.totalorder %v3002_v46, %v1379_v7 }
 0x2d3   : > { %vm1357_vm10 = vcmp.ge.s32.totalorder %v3002_v46, %v1356_v10  ;;  %v1315_v12 = vcvt.s32.f32 %v1313_v8  ;;  %v1381_v16 = vsel %vm1380_vm9, 1, %v2703_v47  ;;  %v1402_v19 = vstv %s1401_s21 }
 0x2d4   : > { %1250 = vadd.xlane.f32.xlu1 %v1247_v49  ;;  %1202 = vadd.xlane.f32.xlu0 %v1200_v50  ;;  %v1339_v13 = vcvt.s32.f32 %v1337_v9  ;;  %v1292_v14 = vcvt.s32.f32 %v1290_v11  ;;  %v1358_v18 = vsel %vm1357_vm10, 1, %v2703_v47  ;;  %v1383_v20 = vshrl.u32 %v1381_v16, 16 }
 0x2d5   : > { %1179 = vadd.xlane.f32.xlu2 %v1177_v51  ;;  %v1336_v21 = vand.u32 65535, %v1335_v6  ;;  %v1360_v22 = vshrl.u32 %v1358_v18, 16  ;;  %vm1403_vm11 = vcmp.ge.s32.totalorder %v3002_v46, %v1402_v19  ;;  %v1448_v27 = vstv %s1447_s20 }
 0x2d6   : > { %v1385_v23 = vcvt.s32.f32 %v1383_v20  ;;  %v1404_v26 = vsel %vm1403_vm11, 1, %v2703_v47  ;;  %v1382_v28 = vand.u32 65535, %v1381_v16  ;;  %v1425_v30 = vstv %s1424_s11 }
 0x2d7   : > { %v1338_v24 = vcvt.s32.f32 %v1336_v21  ;;  %v1362_v25 = vcvt.s32.f32 %v1360_v22  ;;  %v1406_v29 = vshrl.u32 %v1404_v26, 16  ;;  %v1359_v31 = vand.u32 65535, %v1358_v18 }
 0x2d8   : > { %vm1449_vm12 = vcmp.ge.s32.totalorder %v3002_v46, %v1448_v27  ;;  %vm1426_vm13 = vcmp.ge.s32.totalorder %v3002_v46, %v1425_v30  ;;  %v1384_v32 = vcvt.s32.f32 %v1382_v28  ;;  %v1471_v37 = vstv %s1470_s2 }
 0x2d9   : > { %v1408_v33 = vcvt.s32.f32 %v1406_v29  ;;  %v1361_v34 = vcvt.s32.f32 %v1359_v31  ;;  %v1450_v35 = vsel %vm1449_vm12, 1, %v2703_v47  ;;  %v1427_v36 = vsel %vm1426_vm13, 1, %v2703_v47 }
 0x2da   : > { %v1452_v38 = vshrl.u32 %v1450_v35, 16  ;;  %v1405_v39 = vand.u32 65535, %v1404_v26  ;;  %v1429_v40 = vshrl.u32 %v1427_v36, 16  ;;  %vm1472_vm14 = vcmp.ge.s32.totalorder %v3002_v46, %v1471_v37 }
 0x2db   : > { %v1473_v48 = vsel %vm1472_vm14, 1, %v2703_v47  ;;  %v1494_v49 = vstv %s1493_s9  ;;  %v1451_v50 = vand.u32 65535, %v1450_v35  ;;  %v1428_v52 = vand.u32 65535, %v1427_v36 }
 0x2dc   : > { %1248 = vadd.xlane.f32.xlu1 %v1246_v58  ;;  %1273 = vadd.xlane.f32.xlu0 %v1270_v59  ;;  %v1454_v41 = vcvt.s32.f32 %v1452_v38  ;;  %v1407_v42 = vcvt.s32.f32 %v1405_v39  ;;  %v1431_v44 = vcvt.s32.f32 %v1429_v40  ;;  %v1475_v51 = vshrl.u32 %v1473_v48, 16 }
 0x2dd   : > { %1225 = vadd.xlane.f32.xlu2 %v1223_v60  ;;  %vm1495_vm15 = vcmp.ge.s32.totalorder %v3002_v46, %v1494_v49  ;;  %v1453_v53 = vcvt.s32.f32 %v1451_v50  ;;  %v1430_v55 = vcvt.s32.f32 %v1428_v52  ;;  %v1474_v58 = vand.u32 65535, %v1473_v48 }
 0x2de   : > { %v1477_v54 = vcvt.s32.f32 %v1475_v51  ;;  %v1496_v56 = vsel %vm1495_vm15, 1, %v2703_v47 }
 0x2df   : > { %v1497_v57 = vand.u32 65535, %v1496_v56  ;;  %v1498_v59 = vshrl.u32 %v1496_v56, 16  ;;  %v1476_v61 = vcvt.s32.f32 %v1474_v58 }
 0x2e1   : > { %v1499_v60 = vcvt.s32.f32 %v1497_v57  ;;  %v1500_v62 = vcvt.s32.f32 %v1498_v59 }
 0x2e4   : > { %1319 = vadd.xlane.f32.xlu1 %v1316_v3  ;;  %1271 = vadd.xlane.f32.xlu0 %v1269_v4 }
 0x2e5   : > { %1296 = vadd.xlane.f32.xlu2 %v1293_v5 }
 0x2ec   : > { %1317 = vadd.xlane.f32.xlu1 %v1315_v12  ;;  %1342 = vadd.xlane.f32.xlu0 %v1339_v13 }
 0x2ed   : > { %1294 = vadd.xlane.f32.xlu2 %v1292_v14 }
 0x2f4   : > { %1388 = vadd.xlane.f32.xlu1 %v1385_v23  ;;  %1340 = vadd.xlane.f32.xlu0 %v1338_v24 }
 0x2f5   : > { %1365 = vadd.xlane.f32.xlu2 %v1362_v25 }
 0x2fc   : > { %1386 = vadd.xlane.f32.xlu1 %v1384_v32  ;;  %1411 = vadd.xlane.f32.xlu0 %v1408_v33 }
 0x2fd   : > { %1363 = vadd.xlane.f32.xlu2 %v1361_v34 }
 0x304   : > { %1457 = vadd.xlane.f32.xlu1 %v1454_v41  ;;  %1409 = vadd.xlane.f32.xlu0 %v1407_v42 }
 0x305   : > { %1434 = vadd.xlane.f32.xlu2 %v1431_v44 }
 0x30c   : > { %1455 = vadd.xlane.f32.xlu1 %v1453_v53  ;;  %1480 = vadd.xlane.f32.xlu0 %v1477_v54 }
 0x30d   : > { %1432 = vadd.xlane.f32.xlu2 %v1430_v55 }
 0x314   : > { %1501 = vadd.xlane.f32.xlu1 %v1499_v60  ;;  %1478 = vadd.xlane.f32.xlu0 %v1476_v61 }
 0x315   : > { %1503 = vadd.xlane.f32.xlu2 %v1500_v62 }
 0x33f   : > { %v1228_v63 = vpop.xlane.xlu1 %1227  ;;  %v1205_v0 = vpop.xlane.xlu0 %1204 }
 0x340   : > { %v1182_v1 = vpop.xlane.xlu2 %1181  ;;  %v1207_v2 = vcvt.f32.s32 %v1205_v0  ;;  %v1230_v16 = vcvt.f32.s32 %v1228_v63 }
 0x341   : > { %v1184_v3 = vcvt.f32.s32 %v1182_v1 }
 0x342   : > { %v1208_v6 = vshll.u32 %v1207_v2, 16  ;;  %v1231_v27 = vshll.u32 %v1230_v16, 16 }
 0x343   : > { %v1185_v9 = vshll.u32 %v1184_v3, 16 }
 0x347   : > { %v1251_v4 = vpop.xlane.xlu1 %1250  ;;  %v1203_v5 = vpop.xlane.xlu0 %1202 }
 0x348   : > { %v1206_v7 = vcvt.f32.s32 %v1203_v5  ;;  %v1180_v8 = vpop.xlane.xlu2 %1179  ;;  %v1253_v13 = vcvt.f32.s32 %v1251_v4 }
 0x349   : > { %v1183_v10 = vcvt.f32.s32 %v1180_v8 }
 0x34a   : > { %v1209_v11 = vadd.s32 %v1208_v6, %v1206_v7  ;;  %v1254_v23 = vshll.u32 %v1253_v13, 16 }
 0x34b   : > { %v1186_v12 = vadd.s32 %v1185_v9, %v1183_v10 }
 0x34c   : > { %v1210_v14 = vrot.slane %v1209_v11, 4 }
 0x34d   : > { %v1187_v18 = vrot.slane %v1186_v12, 4 }
 0x34e   : > { %v1211_v19 = vadd.s32 %v1210_v14, %v1209_v11 }
 0x34f   : > { %v1188_v20 = vadd.s32 %v1187_v18, %v1186_v12  ;;  %v1249_v21 = vpop.xlane.xlu1 %1248  ;;  %v1274_v22 = vpop.xlane.xlu0 %1273 }
 0x350   : > { %v1252_v24 = vcvt.f32.s32 %v1249_v21  ;;  %v1226_v25 = vpop.xlane.xlu2 %1225  ;;  %v1212_v26 = vrot.slane %v1211_v19, 2  ;;  %v1276_v35 = vcvt.f32.s32 %v1274_v22 }
 0x351   : > { %v1229_v28 = vcvt.f32.s32 %v1226_v25  ;;  %v1189_v29 = vrot.slane %v1188_v20, 2 }
 0x352   : > { %v1255_v30 = vadd.s32 %v1254_v23, %v1252_v24  ;;  %v1213_v31 = vadd.s32 %v1212_v26, %v1211_v19  ;;  %v1277_v49 = vshll.u32 %v1276_v35, 16 }
 0x353   : > { %v1232_v32 = vadd.s32 %v1231_v27, %v1229_v28  ;;  %v1190_v33 = vadd.s32 %v1189_v29, %v1188_v20 }
 0x354   : > { %v1256_v34 = vrot.slane %v1255_v30, 4  ;;  %v1214_v36 = vrot.slane %v1213_v31, 1 }
 0x355   : > { %v1233_v37 = vrot.slane %v1232_v32, 4  ;;  %v1191_v38 = vrot.slane %v1190_v33, 1 }
 0x356   : > { %v1257_v39 = vadd.s32 %v1256_v34, %v1255_v30  ;;  %v1215_v40 = vadd.s32 %v1214_v36, %v1213_v31 }
 0x357   : > { %v1234_v41 = vadd.s32 %v1233_v37, %v1232_v32  ;;  %v1320_v42 = vpop.xlane.xlu1 %1319  ;;  %v1272_v44 = vpop.xlane.xlu0 %1271  ;;  %v1192_v48 = vadd.s32 %v1191_v38, %v1190_v33 }
 0x358   : > { %v1275_v50 = vcvt.f32.s32 %v1272_v44  ;;  %v1297_v51 = vpop.xlane.xlu2 %1296  ;;  %v1258_v52 = vrot.slane %v1257_v39, 2  ;;  %v1322_v57 = vcvt.f32.s32 %v1320_v42 }
 0x359   : > { %2275 = vpush %v1192_v48  ;;  %v1235_v53 = vrot.slane %v1234_v41, 2  ;;  %v1299_v60 = vcvt.f32.s32 %v1297_v51 }
 0x35a   : > { %v1278_v54 = vadd.s32 %v1277_v49, %v1275_v50  ;;  %2277 = vpush %v1215_v40  ;;  %v1259_v55 = vadd.s32 %v1258_v52, %v1257_v39  ;;  %v1323_v3 = vshll.u32 %v1322_v57, 16 }
 0x35b   : > { %v1236_v56 = vadd.s32 %v1235_v53, %v1234_v41  ;;  %v1300_v7 = vshll.u32 %v1299_v60, 16 }
 0x35c   : > { %v1279_v58 = vrot.slane %v1278_v54, 4  ;;  %v1260_v59 = vrot.slane %v1259_v55, 1 }
 0x35d   : > { %v1237_v61 = vrot.slane %v1236_v56, 1 }
 0x35e   : > { %v1280_v62 = vadd.s32 %v1279_v58, %v1278_v54  ;;  %v1261_v63 = vadd.s32 %v1260_v59, %v1259_v55 }
 0x35f   : > { %v1318_v0 = vpop.xlane.xlu1 %1317  ;;  %v1343_v1 = vpop.xlane.xlu0 %1342  ;;  %v1238_v2 = vadd.s32 %v1237_v61, %v1236_v56 }
 0x360   : > { %v1321_v4 = vcvt.f32.s32 %v1318_v0  ;;  %v1295_v5 = vpop.xlane.xlu2 %1294  ;;  %v1281_v6 = vrot.slane %v1280_v62, 2  ;;  %v1345_v13 = vcvt.f32.s32 %v1343_v1 }
 0x361   : > { %v1298_v8 = vcvt.f32.s32 %v1295_v5  ;;  %2279 = vpush %v1238_v2 }
 0x362   : > { %v1324_v9 = vadd.s32 %v1323_v3, %v1321_v4  ;;  %2281 = vpush %v1261_v63  ;;  %v1282_v10 = vadd.s32 %v1281_v6, %v1280_v62  ;;  %v1346_v23 = vshll.u32 %v1345_v13, 16 }
 0x363   : > { %v1301_v11 = vadd.s32 %v1300_v7, %v1298_v8 }
 0x364   : > { %v1325_v12 = vrot.slane %v1324_v9, 4  ;;  %v1283_v14 = vrot.slane %v1282_v10, 1 }
 0x365   : > { %v1302_v16 = vrot.slane %v1301_v11, 4 }
 0x366   : > { %v1326_v18 = vadd.s32 %v1325_v12, %v1324_v9  ;;  %v1284_v19 = vadd.s32 %v1283_v14, %v1282_v10 }
 0x367   : > { %v1303_v20 = vadd.s32 %v1302_v16, %v1301_v11  ;;  %v1389_v21 = vpop.xlane.xlu1 %1388  ;;  %v1341_v22 = vpop.xlane.xlu0 %1340 }
 0x368   : > { %v1344_v24 = vcvt.f32.s32 %v1341_v22  ;;  %v1366_v25 = vpop.xlane.xlu2 %1365  ;;  %2283 = vpush %v1284_v19  ;;  %v1327_v26 = vrot.slane %v1326_v18, 2  ;;  %v1391_v31 = vcvt.f32.s32 %v1389_v21 }
 0x369   : > { %v1304_v27 = vrot.slane %v1303_v20, 2  ;;  %v1368_v34 = vcvt.f32.s32 %v1366_v25 }
 0x36a   : > { %v1347_v28 = vadd.s32 %v1346_v23, %v1344_v24  ;;  %v1328_v29 = vadd.s32 %v1327_v26, %v1326_v18  ;;  %v1392_v41 = vshll.u32 %v1391_v31, 16 }
 0x36b   : > { %v1305_v30 = vadd.s32 %v1304_v27, %v1303_v20  ;;  %v1369_v49 = vshll.u32 %v1368_v34, 16 }
 0x36c   : > { %v1348_v32 = vrot.slane %v1347_v28, 4  ;;  %v1329_v33 = vrot.slane %v1328_v29, 1 }
 0x36d   : > { %v1306_v35 = vrot.slane %v1305_v30, 1 }
 0x36e   : > { %v1349_v36 = vadd.s32 %v1348_v32, %v1347_v28  ;;  %v1330_v37 = vadd.s32 %v1329_v33, %v1328_v29 }
 0x36f   : > { %v1387_v38 = vpop.xlane.xlu1 %1386  ;;  %v1412_v39 = vpop.xlane.xlu0 %1411  ;;  %v1307_v40 = vadd.s32 %v1306_v35, %v1305_v30 }
 0x370   : > { %v1390_v42 = vcvt.f32.s32 %v1387_v38  ;;  %v1364_v44 = vpop.xlane.xlu2 %1363  ;;  %v1350_v48 = vrot.slane %v1349_v36, 2  ;;  %v1414_v55 = vcvt.f32.s32 %v1412_v39 }
 0x371   : > { %v1367_v50 = vcvt.f32.s32 %v1364_v44  ;;  %2285 = vpush %v1307_v40 }
 0x372   : > { %v1393_v51 = vadd.s32 %v1392_v41, %v1390_v42  ;;  %2287 = vpush %v1330_v37  ;;  %v1351_v52 = vadd.s32 %v1350_v48, %v1349_v36  ;;  %v1415_v63 = vshll.u32 %v1414_v55, 16 }
 0x373   : > { %v1370_v53 = vadd.s32 %v1369_v49, %v1367_v50 }
 0x374   : > { %v1394_v54 = vrot.slane %v1393_v51, 4  ;;  %v1352_v56 = vrot.slane %v1351_v52, 1 }
 0x375   : > { %v1371_v57 = vrot.slane %v1370_v53, 4 }
 0x376   : > { %v1395_v58 = vadd.s32 %v1394_v54, %v1393_v51  ;;  %v1353_v59 = vadd.s32 %v1352_v56, %v1351_v52 }
 0x377   : > { %v1372_v60 = vadd.s32 %v1371_v57, %v1370_v53  ;;  %v1458_v61 = vpop.xlane.xlu1 %1457  ;;  %v1410_v62 = vpop.xlane.xlu0 %1409 }
 0x378   : > { %v1413_v0 = vcvt.f32.s32 %v1410_v62  ;;  %v1435_v1 = vpop.xlane.xlu2 %1434  ;;  %2289 = vpush %v1353_v59  ;;  %v1396_v2 = vrot.slane %v1395_v58, 2  ;;  %v1460_v7 = vcvt.f32.s32 %v1458_v61 }
 0x379   : > { %v1373_v3 = vrot.slane %v1372_v60, 2  ;;  %v1437_v10 = vcvt.f32.s32 %v1435_v1 }
 0x37a   : > { %v1416_v4 = vadd.s32 %v1415_v63, %v1413_v0  ;;  %v1397_v5 = vadd.s32 %v1396_v2, %v1395_v58  ;;  %v1461_v19 = vshll.u32 %v1460_v7, 16 }
 0x37b   : > { %v1374_v6 = vadd.s32 %v1373_v3, %v1372_v60  ;;  %v1438_v23 = vshll.u32 %v1437_v10, 16 }
 0x37c   : > { %v1417_v8 = vrot.slane %v1416_v4, 4  ;;  %v1398_v9 = vrot.slane %v1397_v5, 1 }
 0x37d   : > { %v1375_v11 = vrot.slane %v1374_v6, 1 }
 0x37e   : > { %v1418_v12 = vadd.s32 %v1417_v8, %v1416_v4  ;;  %v1399_v13 = vadd.s32 %v1398_v9, %v1397_v5 }
 0x37f   : > { %v1456_v14 = vpop.xlane.xlu1 %1455  ;;  %v1481_v16 = vpop.xlane.xlu0 %1480  ;;  %v1376_v18 = vadd.s32 %v1375_v11, %v1374_v6 }
 0x380   : > { %v1459_v20 = vcvt.f32.s32 %v1456_v14  ;;  %v1433_v21 = vpop.xlane.xlu2 %1432  ;;  %v1419_v22 = vrot.slane %v1418_v12, 2  ;;  %v1483_v29 = vcvt.f32.s32 %v1481_v16 }
 0x381   : > { %v1436_v24 = vcvt.f32.s32 %v1433_v21  ;;  %2291 = vpush %v1376_v18 }
 0x382   : > { %v1462_v25 = vadd.s32 %v1461_v19, %v1459_v20  ;;  %2293 = vpush %v1399_v13  ;;  %v1420_v26 = vadd.s32 %v1419_v22, %v1418_v12  ;;  %v1484_v36 = vshll.u32 %v1483_v29, 16 }
 0x383   : > { %v1439_v27 = vadd.s32 %v1438_v23, %v1436_v24 }
 0x384   : > { %v1463_v28 = vrot.slane %v1462_v25, 4  ;;  %v1421_v30 = vrot.slane %v1420_v26, 1 }
 0x385   : > { %v1440_v31 = vrot.slane %v1439_v27, 4 }
 0x386   : > { %v1464_v32 = vadd.s32 %v1463_v28, %v1462_v25  ;;  %v1422_v33 = vadd.s32 %v1421_v30, %v1420_v26 }
 0x387   : > { %v1441_v34 = vadd.s32 %v1440_v31, %v1439_v27  ;;  %v1479_v35 = vpop.xlane.xlu0 %1478  ;;  %v1502_v37 = vpop.xlane.xlu1 %1501 }
 0x388   : > { %v1482_v38 = vcvt.f32.s32 %v1479_v35  ;;  %v1504_v39 = vpop.xlane.xlu2 %1503  ;;  %2295 = vpush %v1422_v33  ;;  %v1465_v40 = vrot.slane %v1464_v32, 2  ;;  %v1505_v49 = vcvt.f32.s32 %v1502_v37 }
 0x389   : > { %v1506_v41 = vcvt.f32.s32 %v1504_v39  ;;  %v1442_v42 = vrot.slane %v1441_v34, 2 }
 0x38a   : > { %v1485_v44 = vadd.s32 %v1484_v36, %v1482_v38  ;;  %v1466_v48 = vadd.s32 %v1465_v40, %v1464_v32  ;;  %s2276_s16 = spop %2275 }
 0x38b   : > { %v1507_v50 = vshll.u32 %v1506_v41, 16  ;;  %v1443_v51 = vadd.s32 %v1442_v42, %v1441_v34  ;;  %s2278_s15 = spop %2277  ;;  %p1516_p6 = scmp.ge.s32.totalorder %s2276_s16, %s3019_s14 }
 0x38c   : > { %v1486_v52 = vrot.slane %v1485_v44, 4  ;;  %v1467_v53 = vrot.slane %v1466_v48, 1  ;;  %p1518_p13 = scmp.ge.s32.totalorder %s2278_s15, %s3019_s14 }
 0x38d   : > { %v1508_v54 = vadd.s32 %v1507_v50, %v1505_v49  ;;  %v1444_v55 = vrot.slane %v1443_v51, 1  ;;  %s1517_s1 = scalar_select %p1516_p6, 1, 0 }
 0x38e   : > { %v1487_v56 = vadd.s32 %v1486_v52, %v1485_v44  ;;  %v1468_v57 = vadd.s32 %v1467_v53, %v1466_v48  ;;  %s1519_s0 = scalar_select %p1518_p13, 1, 0 }
 0x38f   : > { %v1509_v58 = vrot.slane %v1508_v54, 4  ;;  %v1445_v59 = vadd.s32 %v1444_v55, %v1443_v51 }
 0x390   : > { %v1488_v60 = vrot.slane %v1487_v56, 2  ;;  %s1520_s27 = sadd.s32 %s1519_s0, %s1517_s1 }
 0x391   : > { %v1510_v61 = vadd.s32 %v1509_v58, %v1508_v54  ;;  %2297 = vpush %v1445_v59 }
 0x392   : > { %2299 = vpush %v1468_v57  ;;  %v1489_v62 = vadd.s32 %v1488_v60, %v1487_v56  ;;  %s2280_s7 = spop %2279 }
 0x393   : > { %v1511_v63 = vrot.slane %v1510_v61, 2  ;;  %p1521_p2 = scmp.ge.s32.totalorder %s2280_s7, %s3019_s14  ;;  %s2282_s4 = spop %2281 }
 0x394   : > { %v1490_v0 = vrot.slane %v1489_v62, 1  ;;  %p1524_p3 = scmp.ge.s32.totalorder %s2282_s4, %s3019_s14 }
 0x395   : > { %v1512_v1 = vadd.s32 %v1511_v63, %v1510_v61  ;;  %s1522_s22 = scalar_select %p1521_p2, 1, 0 }
 0x396   : > { %v1491_v2 = vadd.s32 %v1490_v0, %v1489_v62  ;;  %s1525_s3 = scalar_select %p1524_p3, 1, 0 }
 0x397   : > { %v1513_v3 = vrot.slane %v1512_v1, 1  ;;  %s1523_s25 = sadd.s32 %s1522_s22, %s1520_s27 }
 0x398   : > { %2301 = vpush %v1491_v2  ;;  %s1526_s21 = sadd.s32 %s1525_s3, %s1523_s25 }
 0x399   : > { %v1514_v4 = vadd.s32 %v1513_v3, %v1512_v1  ;;  %s2284_s19 = spop %2283 }
 0x39a   : > { %p1527_p4 = scmp.ge.s32.totalorder %s2284_s19, %s3019_s14 }
 0x39b   : > { %2303 = vpush %v1514_v4 }
 0x39c   : > { %s1528_s10 = scalar_select %p1527_p4, 1, 0 }
 0x39e   : > { %s1529_s11 = sadd.s32 %s1528_s10, %s1526_s21 }
 0x3a2   : > { %s2286_s26 = spop %2285 }
 0x3a3   : > { %p1530_p0 = scmp.ge.s32.totalorder %s2286_s26, %s3019_s14  ;;  %s2288_s28 = spop %2287 }
 0x3a4   : > { %p1533_p5 = scmp.ge.s32.totalorder %s2288_s28, %s3019_s14 }
 0x3a5   : > { %s1531_s23 = scalar_select %p1530_p0, 1, 0 }
 0x3a6   : > { %s1534_s9 = scalar_select %p1533_p5, 1, 0 }
 0x3a7   : > { %s1532_s16 = sadd.s32 %s1531_s23, %s1529_s11 }
 0x3a8   : > { %s1535_s7 = sadd.s32 %s1534_s9, %s1532_s16 }
 0x3a9   : > { %s2290_s17 = spop %2289 }
 0x3aa   : > { %p1536_p7 = scmp.ge.s32.totalorder %s2290_s17, %s3019_s14 }
 0x3ac   : > { %s1537_s15 = scalar_select %p1536_p7, 1, 0 }
 0x3ae   : > { %s1538_s22 = sadd.s32 %s1537_s15, %s1535_s7 }
 0x3b2   : > { %s2292_s20 = spop %2291 }
 0x3b3   : > { %s2294_s2 = spop %2293  ;;  %p1539_p8 = scmp.ge.s32.totalorder %s2292_s20, %s3019_s14 }
 0x3b4   : > { %p1542_p10 = scmp.ge.s32.totalorder %s2294_s2, %s3019_s14 }
 0x3b5   : > { %s1540_s4 = scalar_select %p1539_p8, 1, 0 }
 0x3b6   : > { %s1543_s0 = scalar_select %p1542_p10, 1, 0 }
 0x3b7   : > { %s1541_s27 = sadd.s32 %s1540_s4, %s1538_s22 }
 0x3b8   : > { %s1544_s10 = sadd.s32 %s1543_s0, %s1541_s27 }
 0x3b9   : > { %s2296_s1 = spop %2295 }
 0x3ba   : > { %p1545_p1 = scmp.ge.s32.totalorder %s2296_s1, %s3019_s14 }
 0x3bc   : > { %s1546_s3 = scalar_select %p1545_p1, 1, 0 }
 0x3be   : > { %s1547_s17 = sadd.s32 %s1546_s3, %s1544_s10 }
 0x3c2   : > { %s2298_s19 = spop %2297 }
 0x3c3   : > { %p1548_p6 = scmp.ge.s32.totalorder %s2298_s19, %s3019_s14  ;;  %s2300_s26 = spop %2299 }
 0x3c4   : > { %p1551_p13 = scmp.ge.s32.totalorder %s2300_s26, %s3019_s14 }
 0x3c5   : > { %s1549_s25 = scalar_select %p1548_p6, 1, 0 }
 0x3c6   : > { %s1552_s28 = scalar_select %p1551_p13, 1, 0 }
 0x3c7   : > { %s1550_s21 = sadd.s32 %s1549_s25, %s1547_s17 }
 0x3c8   : > { %s1553_s2 = sadd.s32 %s1552_s28, %s1550_s21 }
 0x3c9   : > { %s2302_s23 = spop %2301 }
 0x3ca   : > { %p1554_p2 = scmp.ge.s32.totalorder %s2302_s23, %s3019_s14 }
 0x3cc   : > { %s1555_s20 = scalar_select %p1554_p2, 1, 0 }
 0x3cd   : > { %s2304_s11 = spop %2303 }
 0x3ce   : > { %p1557_p3 = scmp.ge.s32.totalorder %s2304_s11, %s3019_s14  ;;  %s1556_s9 = sadd.s32 %s1555_s20, %s1553_s2 }
 0x3d0   : > { %s1558_s16 = scalar_select %p1557_p3, 1, 0 }
 0x3d2   : > { %s1559_s1 = sadd.s32 %s1558_s16, %s1556_s9 }
 0x3d3   : > { %s2221_s19 = sshll.u32 %s1559_s1, 20 }
 0x3d4   : > { %s3154_s15 = sadd.s32 %s2221_s19, %s3091_s18 }
 0x3d5   : > { %s1608_s7 = sadd.s32 196608, %s3154_s15  ;;  %s1585_s4 = sadd.s32 131072, %s3154_s15 }
 0x3d6   : > { %v1609_v5 = vstv %s1608_s7  ;;  %v1586_v6 = vstv %s1585_s4  ;;  %s1562_s0 = sadd.s32 65536, %s3154_s15  ;;  %s1631_s26 = sadd.s32 262144, %s3154_s15 }
 0x3d7   : > { %vm1610_vm0 = vcmp.ge.s32.totalorder %v3002_v46, %v1609_v5  ;;  %vm1587_vm1 = vcmp.ge.s32.totalorder %v3002_v46, %v1586_v6  ;;  %v1563_v7 = vstv %s1562_s0  ;;  %v1632_v8 = vstv %s1631_s26  ;;  %s1654_s18 = sadd.s32 327680, %s3154_s15  ;;  %s1700_s22 = sadd.s32 458752, %s3154_s15 }
 0x3d8   : > { %v1611_v9 = vsel %vm1610_vm0, 1, %v2703_v47  ;;  %v1588_v10 = vsel %vm1587_vm1, 1, %v2703_v47  ;;  %vm1564_vm2 = vcmp.ge.s32.totalorder %v3002_v46, %v1563_v7  ;;  %vm1633_vm3 = vcmp.ge.s32.totalorder %v3002_v46, %v1632_v8  ;;  %s1677_s27 = sadd.s32 393216, %s3154_s15  ;;  %s1723_s3 = sadd.s32 524288, %s3154_s15 }
 0x3d9   : > { %v1613_v11 = vshrl.u32 %v1611_v9, 16  ;;  %v1590_v12 = vshrl.u32 %v1588_v10, 16  ;;  %v1565_v13 = vsel %vm1564_vm2, 1, %v2703_v47  ;;  %v1634_v20 = vsel %vm1633_vm3, 1, %v2703_v47  ;;  %s1769_s25 = sadd.s32 655360, %s3154_s15  ;;  %s1746_s28 = sadd.s32 589824, %s3154_s15 }
 0x3da   : > { %v1567_v14 = vshrl.u32 %v1565_v13, 16  ;;  %v1655_v21 = vstv %s1654_s18  ;;  %v1636_v22 = vshrl.u32 %v1634_v20, 16  ;;  %v1589_v23 = vand.u32 65535, %v1588_v10  ;;  %s1792_s10 = sadd.s32 720896, %s3154_s15  ;;  %s1838_s23 = sadd.s32 851968, %s3154_s15 }
 0x3db   : > { %v1615_v16 = vcvt.s32.f32 %v1613_v11  ;;  %v1592_v18 = vcvt.s32.f32 %v1590_v12  ;;  %v1566_v24 = vand.u32 65535, %v1565_v13  ;;  %vm1656_vm5 = vcmp.ge.s32.totalorder %v3002_v46, %v1655_v21  ;;  %s1815_s17 = sadd.s32 786432, %s3154_s15  ;;  %s1861_s21 = sadd.s32 917504, %s3154_s15 }
 0x3dc   : > { %v1569_v19 = vcvt.s32.f32 %v1567_v14  ;;  %v1638_v25 = vcvt.s32.f32 %v1636_v22  ;;  %v1591_v26 = vcvt.s32.f32 %v1589_v23  ;;  %v1657_v28 = vsel %vm1656_vm5, 1, %v2703_v47  ;;  %s1884_s20 = sadd.s32 983040, %s3154_s15 }
 0x3dd   : > { %1618 = vadd.xlane.f32.xlu1 %v1615_v16  ;;  %1595 = vadd.xlane.f32.xlu0 %v1592_v18  ;;  %v1568_v27 = vcvt.s32.f32 %v1566_v24  ;;  %v1701_v29 = vstv %s1700_s22  ;;  %v1635_v30 = vand.u32 65535, %v1634_v20  ;;  %v1659_v31 = vshrl.u32 %v1657_v28, 16 }
 0x3de   : > { %1572 = vadd.xlane.f32.xlu2 %v1569_v19  ;;  %v1678_v32 = vstv %s1677_s27  ;;  %v1612_v33 = vand.u32 65535, %v1611_v9  ;;  %vm1702_vm6 = vcmp.ge.s32.totalorder %v3002_v46, %v1701_v29  ;;  %v1724_v39 = vstv %s1723_s3 }
 0x3df   : > { %vm1679_vm7 = vcmp.ge.s32.totalorder %v3002_v46, %v1678_v32  ;;  %v1637_v34 = vcvt.s32.f32 %v1635_v30  ;;  %v1661_v35 = vcvt.s32.f32 %v1659_v31  ;;  %v1703_v37 = vsel %vm1702_vm6, 1, %v2703_v47 }
 0x3e0   : > { %v1614_v36 = vcvt.s32.f32 %v1612_v33  ;;  %v1680_v38 = vsel %vm1679_vm7, 1, %v2703_v47  ;;  %v1705_v40 = vshrl.u32 %v1703_v37, 16  ;;  %v1658_v41 = vand.u32 65535, %v1657_v28 }
 0x3e1   : > { %v1682_v42 = vshrl.u32 %v1680_v38, 16  ;;  %vm1725_vm8 = vcmp.ge.s32.totalorder %v3002_v46, %v1724_v39  ;;  %v1770_v51 = vstv %s1769_s25  ;;  %v1704_v52 = vand.u32 65535, %v1703_v37 }
 0x3e2   : > { %v1707_v44 = vcvt.s32.f32 %v1705_v40  ;;  %v1660_v48 = vcvt.s32.f32 %v1658_v41  ;;  %v1726_v50 = vsel %vm1725_vm8, 1, %v2703_v47  ;;  %v1747_v54 = vstv %s1746_s28 }
 0x3e3   : > { %v1684_v49 = vcvt.s32.f32 %v1682_v42  ;;  %v1728_v53 = vshrl.u32 %v1726_v50, 16  ;;  %v1681_v55 = vand.u32 65535, %v1680_v38  ;;  %vm1771_vm9 = vcmp.ge.s32.totalorder %v3002_v46, %v1770_v51 }
 0x3e4   : > { %vm1748_vm10 = vcmp.ge.s32.totalorder %v3002_v46, %v1747_v54  ;;  %v1706_v56 = vcvt.s32.f32 %v1704_v52  ;;  %v1772_v59 = vsel %vm1771_vm9, 1, %v2703_v47  ;;  %v1793_v61 = vstv %s1792_s10 }
 0x3e5   : > { %1641 = vadd.xlane.f32.xlu1 %v1638_v25  ;;  %1593 = vadd.xlane.f32.xlu0 %v1591_v26  ;;  %v1730_v57 = vcvt.s32.f32 %v1728_v53  ;;  %v1683_v58 = vcvt.s32.f32 %v1681_v55  ;;  %v1749_v60 = vsel %vm1748_vm10, 1, %v2703_v47  ;;  %v1774_v62 = vshrl.u32 %v1772_v59, 16 }
 0x3e6   : > { %1570 = vadd.xlane.f32.xlu2 %v1568_v27  ;;  %v1727_v63 = vand.u32 65535, %v1726_v50  ;;  %v1751_v0 = vshrl.u32 %v1749_v60, 16  ;;  %vm1794_vm11 = vcmp.ge.s32.totalorder %v3002_v46, %v1793_v61  ;;  %v1839_v5 = vstv %s1838_s23 }
 0x3e7   : > { %v1776_v1 = vcvt.s32.f32 %v1774_v62  ;;  %v1795_v4 = vsel %vm1794_vm11, 1, %v2703_v47  ;;  %v1773_v6 = vand.u32 65535, %v1772_v59  ;;  %v1816_v8 = vstv %s1815_s17 }
 0x3e8   : > { %v1729_v2 = vcvt.s32.f32 %v1727_v63  ;;  %v1753_v3 = vcvt.s32.f32 %v1751_v0  ;;  %v1797_v7 = vshrl.u32 %v1795_v4, 16  ;;  %v1750_v9 = vand.u32 65535, %v1749_v60 }
 0x3e9   : > { %vm1840_vm12 = vcmp.ge.s32.totalorder %v3002_v46, %v1839_v5  ;;  %vm1817_vm13 = vcmp.ge.s32.totalorder %v3002_v46, %v1816_v8  ;;  %v1775_v10 = vcvt.s32.f32 %v1773_v6  ;;  %v1862_v16 = vstv %s1861_s21  ;;  %s3345_s21 = scalar_lea.vmem [#allocation10], %s2967_s24 }
 0x3ea   : > { %v1799_v11 = vcvt.s32.f32 %v1797_v7  ;;  %v1752_v12 = vcvt.s32.f32 %v1750_v9  ;;  %v1841_v13 = vsel %vm1840_vm12, 1, %v2703_v47  ;;  %v1818_v14 = vsel %vm1817_vm13, 1, %v2703_v47 }
 0x3eb   : > { %v1843_v18 = vshrl.u32 %v1841_v13, 16  ;;  %v1796_v19 = vand.u32 65535, %v1795_v4  ;;  %v1820_v20 = vshrl.u32 %v1818_v14, 16  ;;  %vm1863_vm14 = vcmp.ge.s32.totalorder %v3002_v46, %v1862_v16 }
 0x3ec   : > { %v1864_v24 = vsel %vm1863_vm14, 1, %v2703_v47  ;;  %v1885_v25 = vstv %s1884_s20  ;;  %v1842_v26 = vand.u32 65535, %v1841_v13  ;;  %v1819_v28 = vand.u32 65535, %v1818_v14  ;;  %s3346_s20 = scalar_lea.vmem [#allocation12], %s2967_s24 }
 0x3ed   : > { %1639 = vadd.xlane.f32.xlu1 %v1637_v34  ;;  %1664 = vadd.xlane.f32.xlu0 %v1661_v35  ;;  %v1845_v21 = vcvt.s32.f32 %v1843_v18  ;;  %v1798_v22 = vcvt.s32.f32 %v1796_v19  ;;  %v1822_v23 = vcvt.s32.f32 %v1820_v20  ;;  %v1866_v27 = vshrl.u32 %v1864_v24, 16 }
 0x3ee   : > { %1616 = vadd.xlane.f32.xlu2 %v1614_v36  ;;  %vm1886_vm15 = vcmp.ge.s32.totalorder %v3002_v46, %v1885_v25  ;;  %v1844_v29 = vcvt.s32.f32 %v1842_v26  ;;  %v1821_v31 = vcvt.s32.f32 %v1819_v28  ;;  %v1865_v34 = vand.u32 65535, %v1864_v24 }
 0x3ef   : > { %v1868_v30 = vcvt.s32.f32 %v1866_v27  ;;  %v1887_v32 = vsel %vm1886_vm15, 1, %v2703_v47  ;;  %vm1980_vm3 = vcmask 1040384   ;;  %vm1982_vm5 = vcmask 1041408  }
 0x3f0   : > { %v1888_v33 = vand.u32 65535, %v1887_v32  ;;  %v1889_v35 = vshrl.u32 %v1887_v32, 16  ;;  %v1867_v37 = vcvt.s32.f32 %v1865_v34  ;;  %vm1984_vm6 = vcmask 1042432  }
 0x3f1   : > { %vm1986_vm7 = vcmask 1043456   ;;  %vm1988_vm8 = vcmask 1044480  }
 0x3f2   : > { %v1890_v36 = vcvt.s32.f32 %v1888_v33  ;;  %v1891_v38 = vcvt.s32.f32 %v1889_v35 }
 0x3f5   : > { %1710 = vadd.xlane.f32.xlu1 %v1707_v44  ;;  %1662 = vadd.xlane.f32.xlu0 %v1660_v48 }
 0x3f6   : > { %1687 = vadd.xlane.f32.xlu2 %v1684_v49 }
 0x3fd   : > { %1708 = vadd.xlane.f32.xlu1 %v1706_v56  ;;  %1733 = vadd.xlane.f32.xlu0 %v1730_v57 }
 0x3fe   : > { %1685 = vadd.xlane.f32.xlu2 %v1683_v58 }
 0x405   : > { %1779 = vadd.xlane.f32.xlu1 %v1776_v1  ;;  %1731 = vadd.xlane.f32.xlu0 %v1729_v2 }
 0x406   : > { %1756 = vadd.xlane.f32.xlu2 %v1753_v3 }
 0x40d   : > { %1777 = vadd.xlane.f32.xlu1 %v1775_v10  ;;  %1802 = vadd.xlane.f32.xlu0 %v1799_v11 }
 0x40e   : > { %1754 = vadd.xlane.f32.xlu2 %v1752_v12 }
 0x415   : > { %1848 = vadd.xlane.f32.xlu1 %v1845_v21  ;;  %1800 = vadd.xlane.f32.xlu0 %v1798_v22 }
 0x416   : > { %1825 = vadd.xlane.f32.xlu2 %v1822_v23 }
 0x41d   : > { %1846 = vadd.xlane.f32.xlu1 %v1844_v29  ;;  %1871 = vadd.xlane.f32.xlu0 %v1868_v30 }
 0x41e   : > { %1823 = vadd.xlane.f32.xlu2 %v1821_v31 }
 0x425   : > { %1892 = vadd.xlane.f32.xlu1 %v1890_v36  ;;  %1869 = vadd.xlane.f32.xlu0 %v1867_v37 }
 0x426   : > { %1894 = vadd.xlane.f32.xlu2 %v1891_v38 }
 0x450   : > { %v1619_v39 = vpop.xlane.xlu1 %1618  ;;  %v1596_v40 = vpop.xlane.xlu0 %1595 }
 0x451   : > { %v1573_v41 = vpop.xlane.xlu2 %1572  ;;  %v1598_v42 = vcvt.f32.s32 %v1596_v40  ;;  %v1621_v58 = vcvt.f32.s32 %v1619_v39 }
 0x452   : > { %v1575_v44 = vcvt.f32.s32 %v1573_v41 }
 0x453   : > { %v1599_v47 = vshll.u32 %v1598_v42, 16  ;;  %v1622_v4 = vshll.u32 %v1621_v58, 16 }
 0x454   : > { %v1576_v52 = vshll.u32 %v1575_v44, 16 }
 0x458   : > { %v1642_v48 = vpop.xlane.xlu1 %1641  ;;  %v1594_v49 = vpop.xlane.xlu0 %1593 }
 0x459   : > { %v1597_v50 = vcvt.f32.s32 %v1594_v49  ;;  %v1571_v51 = vpop.xlane.xlu2 %1570  ;;  %v1644_v56 = vcvt.f32.s32 %v1642_v48 }
 0x45a   : > { %v1574_v53 = vcvt.f32.s32 %v1571_v51 }
 0x45b   : > { %v1600_v54 = vadd.s32 %v1599_v47, %v1597_v50  ;;  %v1645_v0 = vshll.u32 %v1644_v56, 16 }
 0x45c   : > { %v1577_v55 = vadd.s32 %v1576_v52, %v1574_v53 }
 0x45d   : > { %v1601_v57 = vrot.slane %v1600_v54, 4 }
 0x45e   : > { %v1578_v59 = vrot.slane %v1577_v55, 4 }
 0x45f   : > { %v1602_v60 = vadd.s32 %v1601_v57, %v1600_v54 }
 0x460   : > { %v1579_v61 = vadd.s32 %v1578_v59, %v1577_v55  ;;  %v1640_v62 = vpop.xlane.xlu1 %1639  ;;  %v1665_v63 = vpop.xlane.xlu0 %1664 }
 0x461   : > { %v1643_v1 = vcvt.f32.s32 %v1640_v62  ;;  %v1617_v2 = vpop.xlane.xlu2 %1616  ;;  %v1603_v3 = vrot.slane %v1602_v60, 2  ;;  %v1667_v12 = vcvt.f32.s32 %v1665_v63 }
 0x462   : > { %v1620_v5 = vcvt.f32.s32 %v1617_v2  ;;  %v1580_v6 = vrot.slane %v1579_v61, 2 }
 0x463   : > { %v1646_v7 = vadd.s32 %v1645_v0, %v1643_v1  ;;  %v1604_v8 = vadd.s32 %v1603_v3, %v1602_v60  ;;  %v1668_v24 = vshll.u32 %v1667_v12, 16 }
 0x464   : > { %v1623_v9 = vadd.s32 %v1622_v4, %v1620_v5  ;;  %v1581_v10 = vadd.s32 %v1580_v6, %v1579_v61 }
 0x465   : > { %v1647_v11 = vrot.slane %v1646_v7, 4  ;;  %v1605_v13 = vrot.slane %v1604_v8, 1 }
 0x466   : > { %v1624_v14 = vrot.slane %v1623_v9, 4  ;;  %v1582_v16 = vrot.slane %v1581_v10, 1 }
 0x467   : > { %v1648_v18 = vadd.s32 %v1647_v11, %v1646_v7  ;;  %v1606_v19 = vadd.s32 %v1605_v13, %v1604_v8 }
 0x468   : > { %v1625_v20 = vadd.s32 %v1624_v14, %v1623_v9  ;;  %v1711_v21 = vpop.xlane.xlu1 %1710  ;;  %v1663_v22 = vpop.xlane.xlu0 %1662  ;;  %v1583_v23 = vadd.s32 %v1582_v16, %v1581_v10 }
 0x469   : > { %v1666_v25 = vcvt.f32.s32 %v1663_v22  ;;  %v1688_v26 = vpop.xlane.xlu2 %1687  ;;  %v1649_v27 = vrot.slane %v1648_v18, 2  ;;  %v1713_v32 = vcvt.f32.s32 %v1711_v21 }
 0x46a   : > { %2305 = vpush %v1583_v23  ;;  %v1626_v28 = vrot.slane %v1625_v20, 2  ;;  %v1690_v35 = vcvt.f32.s32 %v1688_v26 }
 0x46b   : > { %v1669_v29 = vadd.s32 %v1668_v24, %v1666_v25  ;;  %2307 = vpush %v1606_v19  ;;  %v1650_v30 = vadd.s32 %v1649_v27, %v1648_v18  ;;  %v1714_v42 = vshll.u32 %v1713_v32, 16 }
 0x46c   : > { %v1627_v31 = vadd.s32 %v1626_v28, %v1625_v20  ;;  %v1691_v47 = vshll.u32 %v1690_v35, 16 }
 0x46d   : > { %v1670_v33 = vrot.slane %v1669_v29, 4  ;;  %v1651_v34 = vrot.slane %v1650_v30, 1 }
 0x46e   : > { %v1628_v36 = vrot.slane %v1627_v31, 1 }
 0x46f   : > { %v1671_v37 = vadd.s32 %v1670_v33, %v1669_v29  ;;  %v1652_v38 = vadd.s32 %v1651_v34, %v1650_v30 }
 0x470   : > { %v1709_v39 = vpop.xlane.xlu1 %1708  ;;  %v1734_v40 = vpop.xlane.xlu0 %1733  ;;  %v1629_v41 = vadd.s32 %v1628_v36, %v1627_v31 }
 0x471   : > { %v1712_v44 = vcvt.f32.s32 %v1709_v39  ;;  %v1686_v48 = vpop.xlane.xlu2 %1685  ;;  %v1672_v49 = vrot.slane %v1671_v37, 2  ;;  %v1736_v55 = vcvt.f32.s32 %v1734_v40 }
 0x472   : > { %v1689_v50 = vcvt.f32.s32 %v1686_v48  ;;  %2309 = vpush %v1629_v41 }
 0x473   : > { %v1715_v51 = vadd.s32 %v1714_v42, %v1712_v44  ;;  %2311 = vpush %v1652_v38  ;;  %v1673_v52 = vadd.s32 %v1672_v49, %v1671_v37  ;;  %v1737_v63 = vshll.u32 %v1736_v55, 16 }
 0x474   : > { %v1692_v53 = vadd.s32 %v1691_v47, %v1689_v50 }
 0x475   : > { %v1716_v54 = vrot.slane %v1715_v51, 4  ;;  %v1674_v56 = vrot.slane %v1673_v52, 1 }
 0x476   : > { %v1693_v57 = vrot.slane %v1692_v53, 4 }
 0x477   : > { %v1717_v58 = vadd.s32 %v1716_v54, %v1715_v51  ;;  %v1675_v59 = vadd.s32 %v1674_v56, %v1673_v52 }
 0x478   : > { %v1694_v60 = vadd.s32 %v1693_v57, %v1692_v53  ;;  %v1780_v61 = vpop.xlane.xlu1 %1779  ;;  %v1732_v62 = vpop.xlane.xlu0 %1731 }
 0x479   : > { %v1735_v0 = vcvt.f32.s32 %v1732_v62  ;;  %v1757_v1 = vpop.xlane.xlu2 %1756  ;;  %2313 = vpush %v1675_v59  ;;  %v1718_v2 = vrot.slane %v1717_v58, 2  ;;  %v1782_v7 = vcvt.f32.s32 %v1780_v61 }
 0x47a   : > { %v1695_v3 = vrot.slane %v1694_v60, 2  ;;  %v1759_v10 = vcvt.f32.s32 %v1757_v1 }
 0x47b   : > { %v1738_v4 = vadd.s32 %v1737_v63, %v1735_v0  ;;  %v1719_v5 = vadd.s32 %v1718_v2, %v1717_v58  ;;  %v1783_v19 = vshll.u32 %v1782_v7, 16 }
 0x47c   : > { %v1696_v6 = vadd.s32 %v1695_v3, %v1694_v60  ;;  %v1760_v23 = vshll.u32 %v1759_v10, 16 }
 0x47d   : > { %v1739_v8 = vrot.slane %v1738_v4, 4  ;;  %v1720_v9 = vrot.slane %v1719_v5, 1 }
 0x47e   : > { %v1697_v11 = vrot.slane %v1696_v6, 1 }
 0x47f   : > { %v1740_v12 = vadd.s32 %v1739_v8, %v1738_v4  ;;  %v1721_v13 = vadd.s32 %v1720_v9, %v1719_v5 }
 0x480   : > { %v1778_v14 = vpop.xlane.xlu1 %1777  ;;  %v1803_v16 = vpop.xlane.xlu0 %1802  ;;  %v1698_v18 = vadd.s32 %v1697_v11, %v1696_v6 }
 0x481   : > { %v1781_v20 = vcvt.f32.s32 %v1778_v14  ;;  %v1755_v21 = vpop.xlane.xlu2 %1754  ;;  %v1741_v22 = vrot.slane %v1740_v12, 2  ;;  %v1805_v29 = vcvt.f32.s32 %v1803_v16 }
 0x482   : > { %v1758_v24 = vcvt.f32.s32 %v1755_v21  ;;  %2315 = vpush %v1698_v18 }
 0x483   : > { %v1784_v25 = vadd.s32 %v1783_v19, %v1781_v20  ;;  %2317 = vpush %v1721_v13  ;;  %v1742_v26 = vadd.s32 %v1741_v22, %v1740_v12  ;;  %v1806_v37 = vshll.u32 %v1805_v29, 16 }
 0x484   : > { %v1761_v27 = vadd.s32 %v1760_v23, %v1758_v24 }
 0x485   : > { %v1785_v28 = vrot.slane %v1784_v25, 4  ;;  %v1743_v30 = vrot.slane %v1742_v26, 1 }
 0x486   : > { %v1762_v31 = vrot.slane %v1761_v27, 4 }
 0x487   : > { %v1786_v32 = vadd.s32 %v1785_v28, %v1784_v25  ;;  %v1744_v33 = vadd.s32 %v1743_v30, %v1742_v26 }
 0x488   : > { %v1763_v34 = vadd.s32 %v1762_v31, %v1761_v27  ;;  %v1849_v35 = vpop.xlane.xlu1 %1848  ;;  %v1801_v36 = vpop.xlane.xlu0 %1800 }
 0x489   : > { %v1804_v38 = vcvt.f32.s32 %v1801_v36  ;;  %v1826_v39 = vpop.xlane.xlu2 %1825  ;;  %2319 = vpush %v1744_v33  ;;  %v1787_v40 = vrot.slane %v1786_v32, 2  ;;  %v1851_v49 = vcvt.f32.s32 %v1849_v35 }
 0x48a   : > { %v1764_v41 = vrot.slane %v1763_v34, 2  ;;  %v1828_v51 = vcvt.f32.s32 %v1826_v39 }
 0x48b   : > { %v1807_v42 = vadd.s32 %v1806_v37, %v1804_v38  ;;  %v1788_v44 = vadd.s32 %v1787_v40, %v1786_v32  ;;  %v1852_v58 = vshll.u32 %v1851_v49, 16  ;;  %v483_v49 = vld [vmem:[%s2960_s12 + $0x18] sm:$0xff] }
 0x48c   : > { %v1765_v48 = vadd.s32 %v1764_v41, %v1763_v34  ;;  %v1829_v62 = vshll.u32 %v1828_v51, 16  ;;  %v486_v51 = vld [vmem:[%s2969_s30 + $0x10] sm:$0xff] }
 0x48d   : > { %v1808_v47 = vrot.slane %v1807_v42, 4  ;;  %v1789_v50 = vrot.slane %v1788_v44, 1 }
 0x48e   : > { %v1766_v52 = vrot.slane %v1765_v48, 1 }
 0x48f   : > { %v1809_v53 = vadd.s32 %v1808_v47, %v1807_v42  ;;  %v1790_v54 = vadd.s32 %v1789_v50, %v1788_v44  ;;  %v480_v42 = vld [vmem:[%s2960_s12] sm:$0xff]  ;;  %v481_v44 = vld [vmem:[%s2960_s12 + $0x8] sm:$0xff] }
 0x490   : > { %v1847_v55 = vpop.xlane.xlu1 %1846  ;;  %v1872_v56 = vpop.xlane.xlu0 %1871  ;;  %v1767_v57 = vadd.s32 %v1766_v52, %v1765_v48  ;;  %v482_v48 = vld [vmem:[%s2960_s12 + $0x10] sm:$0xff]  ;;  %v484_v47 = vld [vmem:[%s2969_s30] sm:$0xff]  ;;  %v485_v50 = vld [vmem:[%s2969_s30 + $0x8] sm:$0xff] }
 0x491   : > { %v1850_v59 = vcvt.f32.s32 %v1847_v55  ;;  %v1824_v60 = vpop.xlane.xlu2 %1823  ;;  %v1810_v61 = vrot.slane %v1809_v53, 2  ;;  %v1874_v4 = vcvt.f32.s32 %v1872_v56  ;;  %v487_v52 = vld [vmem:[%s2969_s30 + $0x18] sm:$0xff]  ;;  %v504_v55 = vmax.f32 %v480_v42, %v484_v47 }
 0x492   : > { %v1827_v63 = vcvt.f32.s32 %v1824_v60  ;;  %2321 = vpush %v1767_v57  ;;  %v505_v56 = vmax.f32 %v481_v44, %v485_v50  ;;  %v506_v57 = vmin.f32 %v482_v48, %v486_v51 }
 0x493   : > { %v1853_v0 = vadd.s32 %v1852_v58, %v1850_v59  ;;  %2323 = vpush %v1790_v54  ;;  %v1811_v1 = vadd.s32 %v1810_v61, %v1809_v53  ;;  %v1875_v11 = vshll.u32 %v1874_v4, 16  ;;  %v502_v53 = vmin.f32 %v480_v42, %v484_v47 }
 0x494   : > { %v1830_v2 = vadd.s32 %v1829_v62, %v1827_v63  ;;  %v503_v54 = vmin.f32 %v481_v44, %v485_v50  ;;  %v507_v58 = vmin.f32 %v483_v49, %v487_v52  ;;  %v527_v59 = vsub.f32 %v482_v48, %v480_v42 }
 0x495   : > { %v1854_v3 = vrot.slane %v1853_v0, 4  ;;  %v1812_v5 = vrot.slane %v1811_v1, 1  ;;  %v519_v60 = vsub.f32 %v504_v55, %v502_v53  ;;  %v528_v61 = vsub.f32 %v483_v49, %v481_v44 }
 0x496   : > { %v1831_v6 = vrot.slane %v1830_v2, 4  ;;  %v530_v62 = vsub.f32 %v486_v51, %v484_v47  ;;  %v531_v63 = vsub.f32 %v487_v52, %v485_v50  ;;  %v512_v4 = vsub.f32 %v506_v57, %v502_v53 }
 0x497   : > { %v1855_v7 = vadd.s32 %v1854_v3, %v1853_v0  ;;  %v1813_v8 = vadd.s32 %v1812_v5, %v1811_v1  ;;  %v508_v0 = vmin.f32 %v504_v55, %v506_v57  ;;  %v509_v1 = vmin.f32 %v505_v56, %v507_v58 }
 0x498   : > { %v1832_v9 = vadd.s32 %v1831_v6, %v1830_v2  ;;  %v1870_v10 = vpop.xlane.xlu0 %1869  ;;  %v1893_v12 = vpop.xlane.xlu1 %1892  ;;  %v510_v2 = vmax.f32 %v504_v55, %v506_v57  ;;  %v511_v3 = vmax.f32 %v505_v56, %v507_v58  ;;  %v513_v5 = vsub.f32 %v507_v58, %v503_v54 }
 0x499   : > { %v1873_v13 = vcvt.f32.s32 %v1870_v10  ;;  %v1895_v14 = vpop.xlane.xlu2 %1894  ;;  %2325 = vpush %v1813_v8  ;;  %v1856_v16 = vrot.slane %v1855_v7, 2  ;;  %v1896_v22 = vcvt.f32.s32 %v1893_v12  ;;  %v524_v6 = vsub.f32 %v505_v56, %v503_v54 }
 0x49a   : > { %v1897_v18 = vcvt.f32.s32 %v1895_v14  ;;  %v1833_v19 = vrot.slane %v1832_v9, 2  ;;  %v516_v8 = vsub.f32 %v509_v1, %v503_v54  ;;  %v523_v10 = vsub.f32 %v510_v2, %v502_v53 }
 0x49b   : > { %v1876_v20 = vadd.s32 %v1875_v11, %v1873_v13  ;;  %v1857_v21 = vadd.s32 %v1856_v16, %v1855_v7  ;;  %s2306_s11 = spop %2305  ;;  %v515_v7 = vsub.f32 %v508_v0, %v502_v53  ;;  %v514_v11 = vmul.f32 %v513_v5, %v512_v4 }
 0x49c   : > { %v1898_v23 = vshll.u32 %v1897_v18, 16  ;;  %v1834_v24 = vadd.s32 %v1833_v19, %v1832_v9  ;;  %s2308_s2 = spop %2307  ;;  %p1907_p4 = scmp.ge.s32.totalorder %s2306_s11, %s3019_s14  ;;  %v520_v9 = vsub.f32 %v511_v3, %v503_v54  ;;  %v529_v14 = vmul.f32 %v528_v61, %v527_v59 }
 0x49d   : > { %v1877_v25 = vrot.slane %v1876_v20, 4  ;;  %v1858_v26 = vrot.slane %v1857_v21, 1  ;;  %p1909_p0 = scmp.ge.s32.totalorder %s2308_s2, %s3019_s14  ;;  %v517_v12 = vmul.f32 %v516_v8, %v515_v7  ;;  %v532_v16 = vmul.f32 %v531_v63, %v530_v62 }
 0x49e   : > { %v1899_v27 = vadd.s32 %v1898_v23, %v1896_v22  ;;  %v1835_v28 = vrot.slane %v1834_v24, 1  ;;  %s3203_s16 = scalar_select %p1907_p4, 1, 0  ;;  %v521_v13 = vmul.f32 %v520_v9, %v519_v60  ;;  %v525_v19 = vmul.f32 %v524_v6, %v523_v10  ;;  %v488_v22 = vld [vmem:[%s3345_s21] sm:$0xff]  ;;  %v489_v23 = vld [vmem:[%s3346_s20] sm:$0xff] }
 0x49f   : > { %v1878_v29 = vadd.s32 %v1877_v25, %v1876_v20  ;;  %v1859_v30 = vadd.s32 %v1858_v26, %v1857_v21  ;;  %s3211_s19 = scalar_select %p1909_p0, 1, 0  ;;  %v518_v18 = vadd.f32 %v517_v12, %v514_v11  ;;  %v533_v21 = vadd.f32 %v532_v16, %v529_v14 }
 0x4a0   : > { %v1900_v31 = vrot.slane %v1899_v27, 4  ;;  %v1836_v32 = vadd.s32 %v1835_v28, %v1834_v24  ;;  %v551_v26 = vsub.f32 %v488_v22, %v489_v23 }
 0x4a1   : > { %v1879_v33 = vrot.slane %v1878_v29, 2  ;;  %s1911_s30 = sadd.s32 %s3211_s19, %s3203_s16  ;;  %v522_v20 = vsub.f32 %v518_v18, %v521_v13 }
 0x4a2   : > { %v1901_v34 = vadd.s32 %v1900_v31, %v1899_v27  ;;  %2327 = vpush %v1836_v32  ;;  %v552_v28 = vand.u32 2147483647, %v551_v26 }
 0x4a3   : > { %2329 = vpush %v1859_v30  ;;  %v1880_v35 = vadd.s32 %v1879_v33, %v1878_v29  ;;  %s2310_s9 = spop %2309  ;;  %v526_v24 = vsub.f32 %v522_v20, %v525_v19  ;;  %v554_v29 = vmul.f32 0.5, %v551_v26 }
 0x4a4   : > { %v1902_v36 = vrot.slane %v1901_v34, 2  ;;  %p1912_p5 = scmp.ge.s32.totalorder %s2310_s9, %s3019_s14  ;;  %s3206_s1 = spop %2311  ;;  %v2214_v31 = vadd.f32 -0.5, %v552_v28  ;;  %vm553_vm0 = vcmp.lt.f32.partialorder %v552_v28, 1.0 }
 0x4a5   : > { %v1881_v37 = vrot.slane %v1880_v35, 1  ;;  %p1915_p7 = scmp.ge.s32.totalorder %s3206_s1, %s3019_s14  ;;  %v534_v25 = vsub.f32 %v533_v21, %v526_v24  ;;  %v555_v30 = vmul.f32 %v554_v29, %v551_v26 }
 0x4a6   : > { %v1903_v38 = vadd.s32 %v1902_v36, %v1901_v34  ;;  %s1913_s12 = scalar_select %p1912_p5, 1, 0  ;;  %v2212_v36 = vsel %vm499_vm4, 1.0, %v2701_v17 }
 0x4a7   : > { %v1882_v39 = vadd.s32 %v1881_v37, %v1880_v35  ;;  %s1916_s0 = scalar_select %p1915_p7, 1, 0  ;;  %v535_v27 = vadd.f32 1e-07, %v534_v25  ;;  %v557_v35 = vsel %vm553_vm0, %v555_v30, %v2214_v31  ;;  %v1971_v50 = vmul.f32 %v2212_v36, %v2996_v43 }
 0x4a8   : > { %v1904_v40 = vrot.slane %v1903_v38, 1  ;;  %s1914_s26 = sadd.s32 %s1913_s12, %s1911_s30 }
 0x4a9   : > { %2331 = vpush %v1882_v39  ;;  %s1917_s25 = sadd.s32 %s1916_s0, %s1914_s26  ;;  %2422 = vrcp.f32 %v535_v27  ;;  %v558_v39 = vmul.f32 %v2212_v36, %v557_v35 }
 0x4aa   : > { %v1905_v41 = vadd.s32 %v1904_v40, %v1903_v38  ;;  %s3216_s7 = spop %2313 }
 0x4ab   : > { %p1918_p8 = scmp.ge.s32.totalorder %s3216_s7, %s3019_s14  ;;  %v559_v44 = vrot.slane %v558_v39, 4 }
 0x4ac   : > { %2333 = vpush %v1905_v41 }
 0x4ad   : > { %s1919_s22 = scalar_select %p1918_p8, 1, 0  ;;  %v560_v49 = vadd.f32 %v559_v44, %v558_v39 }
 0x4af   : > { %s1920_s10 = sadd.s32 %s1919_s22, %s1917_s25  ;;  %v2423_v32 = vpop.eup %2422  ;;  %v561_v57 = vrot.slane %v560_v49, 2 }
 0x4b0   : > { %v537_v33 = vmul.f32 %v2423_v32, %v526_v24 }
 0x4b1   : > { %v562_v0 = vadd.f32 %v561_v57, %v560_v49 }
 0x4b2   : > { %v538_v34 = vsub.f32 1.0, %v537_v33 }
 0x4b3   : > { %s3222_s4 = spop %2315  ;;  %v563_v4 = vrot.slane %v562_v0, 1 }
 0x4b4   : > { %p1921_p10 = scmp.ge.s32.totalorder %s3222_s4, %s3019_s14  ;;  %s2318_s18 = spop %2317  ;;  %v540_v37 = vmul.f32 2.5, %v538_v34  ;;  %vm539_vm1 = vcmp.lt.f32.partialorder %v538_v34, 0.2  ;;  %v2213_v38 = vadd.f32 -0.1, %v538_v34 }
 0x4b5   : > { %p1924_p1 = scmp.ge.s32.totalorder %s2318_s18, %s3019_s14  ;;  %v564_v9 = vadd.f32 %v563_v4, %v562_v0 }
 0x4b6   : > { %s1922_s27 = scalar_select %p1921_p10, 1, 0  ;;  %v541_v40 = vmul.f32 %v540_v37, %v538_v34 }
 0x4b7   : > { %s1925_s17 = scalar_select %p1924_p1, 1, 0 }
 0x4b8   : > { %s1923_s11 = sadd.s32 %s1922_s27, %s1920_s10  ;;  %v543_v41 = vsel %vm539_vm1, %v541_v40, %v2213_v38 }
 0x4b9   : > { %s1926_s9 = sadd.s32 %s1925_s17, %s1923_s11  ;;  %v544_v42 = vmul.f32 %v2212_v36, %v543_v41 }
 0x4ba   : > { %s2320_s3 = spop %2319 }
 0x4bb   : > { %p1927_p6 = scmp.ge.s32.totalorder %s2320_s3, %s3019_s14  ;;  %v545_v48 = vrot.slane %v544_v42, 4 }
 0x4bd   : > { %s1928_s2 = scalar_select %p1927_p6, 1, 0  ;;  %v546_v15 = vadd.f32 %v545_v48, %v544_v42 }
 0x4bf   : > { %s1929_s12 = sadd.s32 %s1928_s2, %s1926_s9  ;;  %v547_v53 = vrot.slane %v546_v15, 2 }
 0x4c1   : > { %v548_v61 = vadd.f32 %v547_v53, %v546_v15 }
 0x4c3   : > { %s2322_s28 = spop %2321  ;;  %v549_v2 = vrot.slane %v548_v61, 1 }
 0x4c4   : > { %s2324_s23 = spop %2323  ;;  %p1930_p13 = scmp.ge.s32.totalorder %s2322_s28, %s3019_s14 }
 0x4c5   : > { %p1933_p2 = scmp.ge.s32.totalorder %s2324_s23, %s3019_s14  ;;  %v550_v7 = vadd.f32 %v549_v2, %v548_v61 }
 0x4c6   : > { %s1931_s1 = scalar_select %p1930_p13, 1, 0 }
 0x4c7   : > { %s1934_s19 = scalar_select %p1933_p2, 1, 0 }
 0x4c8   : > { %s1932_s30 = sadd.s32 %s1931_s1, %s1929_s12  ;;  %s1992_s12 = scalar_lea.sflag [#allocation6], %s2951_s13 }
 0x4c9   : > { %s1935_s22 = sadd.s32 %s1934_s19, %s1932_s30  ;;  %s475_s19 = scalar_lea.vmem [#allocation15], %s2967_s24 }
 0x4ca   : > { %s2326_s16 = spop %2325 }
 0x4cb   : > { %p1936_p3 = scmp.ge.s32.totalorder %s2326_s16, %s3019_s14  ;;  %s3347_s16 = sld [smem:[#allocation33_spill]] }
 0x4cd   : > { %s1937_s0 = scalar_select %p1936_p3, 1, 0 }
 0x4cf   : > { %s1938_s3 = sadd.s32 %s1937_s0, %s1935_s22 }
 0x4d3   : > { %s2328_s7 = spop %2327 }
 0x4d4   : > { %p1939_p4 = scmp.ge.s32.totalorder %s2328_s7, %s3019_s14  ;;  %s2330_s4 = spop %2329 }
 0x4d5   : > { %p1942_p0 = scmp.ge.s32.totalorder %s2330_s4, %s3019_s14  ;;  %s2004_s7 = sshll.u32 %s475_s19, 4  ;;  %s2005_s7 = int_to_ptr.vmem [resolvable:$true] %s2004_s7 }
 0x4d6   : > { %s1940_s26 = scalar_select %p1939_p4, 1, 0 }
 0x4d7   : > { %s1943_s18 = scalar_select %p1942_p0, 1, 0 }
 0x4d8   : > { %s1941_s25 = sadd.s32 %s1940_s26, %s1938_s3 }
 0x4d9   : > { %s1944_s23 = sadd.s32 %s1943_s18, %s1941_s25  ;;  %s2636_s18 = scalar_lea.hbm %s3347_s16, 16 }
 0x4da   : > { %s2332_s27 = spop %2331 }
 0x4db   : > { %p1945_p5 = scmp.ge.s32.totalorder %s2332_s27, %s3019_s14 }
 0x4dd   : > { %s1946_s28 = scalar_select %p1945_p5, 1, 0 }
 0x4de   : > { %s2334_s10 = spop %2333 }
 0x4df   : > { %p1948_p7 = scmp.ge.s32.totalorder %s2334_s10, %s3019_s14  ;;  %s1947_s17 = sadd.s32 %s1946_s28, %s1944_s23 }
 0x4e0   : > { %s2225_s14 = sshll.u32 %s2768_s8, 3 }
 0x4e1   : > { %s1949_s21 = scalar_select %p1948_p7, 1, 0 }
 0x4e2   : > { %s2002_s1 = scalar_lea.hbm %s3347_s16, %s2225_s14 }
 0x4e3   : > { %s1950_s20 = sadd.s32 %s1949_s21, %s1947_s17  ;;  %s2006_s4 = sshll.u32 %s2002_s1, 4  ;;  %s2007_s4 = int_to_ptr.hbm [resolvable:$true] %s2006_s4 }
 0x4e4   : > { %s2222_s11 = sshll.u32 %s1950_s20, 16  ;;  %s2630_s30 = sshra.s32 %s2007_s4, 4  ;;  %s2631_s30 = int_to_ptr.hbm [resolvable:$true] %s2630_s30 }
 0x4e5   : > { %s1952_s2 = sadd.s32 %s2222_s11, %s3154_s15  ;;  %s2632_s0 = scalar_lea.hbm %s2631_s30, 8 }
 0x4e6   : > { %v1953_v47 = vstv %s1952_s2  ;;  %p2633_p8 = scmp.ne.s32.totalorder %s2631_s30, %s2632_s0  ;;  %p2637_p6 = scmp.lt.s32.totalorder %s2631_s30, %s3347_s16 }
 0x4e7   : > { %vm1954_vm4 = vcmp.gt.s32.totalorder %v3002_v46, %v1953_v47  ;;  %vm1957_vm2 = vcmp.eq.s32.totalorder %v3002_v46, %v1953_v47  ;;  %p2638_p13 = scmp.lt.s32.totalorder %s2636_s18, %s2632_s0 }
 0x4e8   : > { %v2223_v51 = vsel %vm1954_vm4, 1.0, %v2701_v17  ;;  %v1958_v52 = vsel %vm1957_vm2, %v2999_v45, 0.0  ;;  %p2634_p10 = pnand %p2633_p8, %p2793_p11 }
 0x4e9   : > { %v1959_v54 = vrot.slane %v1958_v52, 4  ;;  %v1965_v55 = vrot.slane %v2223_v51, 4  ;;  %v1972_v56 = vmul.f32 %v2223_v51, %v2999_v45  ;;  %p2639_p2 = por %p2638_p13, %p2637_p6 }
 0x4ea   : > { %p2635_p1 = pneg %p2634_p10 }
 0x4eb   : > { %v1960_v58 = vmax.f32 %v1958_v52, %v1959_v54  ;;  %v1966_v59 = vadd.f32 %v2223_v51, %v1965_v55  ;;  %v1973_v60 = vadd.f32 %v1972_v56, %v1971_v50 }
 0x4ec   : > { %p2640_p3 = pnand %p2639_p2, %p2635_p1 }
 0x4ed   : > { %v1967_v62 = vrot.slane %v1966_v59, 2  ;;  %v1974_v63 = vrot.slane %v1973_v60, 4  ;;  %v1961_v46 = vrot.slane %v1960_v58, 2 }
 0x4ef   : > { %v1975_v43 = vadd.f32 %v1974_v63, %v1973_v60  ;;  %v1968_v1 = vadd.f32 %v1967_v62, %v1966_v59  ;;  %v1962_v3 = vmax.f32 %v1960_v58, %v1961_v46 }
 0x4f1   : > { %v1976_v17 = vrot.slane %v1975_v43, 2  ;;  %v1969_v45 = vrot.slane %v1968_v1, 1  ;;  %v1963_v8 = vrot.slane %v1962_v3, 1 }
 0x4f3   : > { %v1977_v5 = vadd.f32 %v1976_v17, %v1975_v43  ;;  %v1970_v11 = vadd.f32 %v1969_v45, %v1968_v1  ;;  %v1964_v13 = vmax.f32 %v1962_v3, %v1963_v8 }
 0x4f5   : > { %v1978_v6 = vrot.slane %v1977_v5, 1 }
 0x4f7   : > { %v1979_v10 = vadd.f32 %v1978_v6, %v1977_v5 }
 0x4f9   : > { %v1981_v12 = vsel %vm1980_vm3, %v550_v7, %v1979_v10 }
 0x4fa   : > { %v1983_v14 = vsel %vm1982_vm5, %v1981_v12, %v564_v9 }
 0x4fb   : > { %v1985_v16 = vsel %vm1984_vm6, %v1983_v14, %v1970_v11 }
 0x4fc   : > { %v1987_v18 = vsel %vm1986_vm7, %v1985_v16, %v1964_v13 }
 0x4fd   : > { %v1989_v19 = vsel %vm1988_vm8, %v1987_v18, 0.0 }
 0x4fe   : > { %1990 = vst [vmem:[%s475_s19] sm:$0xff] %v1989_v19 }
 0x4ff   : > { %2643 = shalt.err (!%p2640_p3)
}
 0x500   : > { %2347 = dma.vmem_to_hbm [thread:$0]  (%p2793_p11), %s2005_s7, 128, %s2007_s4, %s1992_s12  }
 0x501 PF: > { %s3349_s13 = sld [smem:[#allocation22_spill]]  ;;  %p2369_p4 = pnand %p2188_p9, %p2797_p12 }
 0x503   : > { %p2370_p0 = pneg %p2369_p4 }
 0x507   : > { %s2018_s28 = sand.u32 1, %s3349_s13  }
 0x508   : > { %s2019_s10 = scalar_lea.sflag [#allocation6], %s2018_s28 }
 0x509   : > { %2679 = dma.done.wait (%p2370_p0), %s2019_s10, 128  }
 0x50a   : > { %2681 = vsyncadd (%p2370_p0), %s2019_s10, 4294967168  ;;  %s3352_s30 = sld [smem:[#allocation25_spill]]  ;;  %s3355_s28 = smov %s2688_s29 }
 0x50b   : > { %s3353_s23 = sld [smem:[#allocation23_spill]] }
 0x50c   : > { %s3354_s0 = sld [smem:[#allocation26_spill]] }
 0x510   : > { %p37_p5 = scmp.ge.s32.totalorder %s3352_s30, 4  }
 0x511   : > { %s3356_s29 = smov %s3353_s23 }
 0x512   :  { %39 = sbr.rel (!%p37_p5) target bundleno = 21 (0x15), region = 150 }
 0x517   :  { %2025 = vsyncpa [#allocation5], 1 }
 0x518   :  { %2027 = vsyncpa [#allocation5 + $0x1], 1 }
 0x519   :  { %2028 = vsyncpa [#allocation8], 1 }
 0x51a   :  { %2030 = vsyncpa [#allocation8 + $0x1], 1 }
 0x51b   :  { %2031 = vsyncpa [#allocation11], 1 }
 0x51c   :  { %2033 = vsyncpa [#allocation11 + $0x1], 1 }
 0x51d   :  { %2034 = vsyncpa [#allocation14], 1 }
 0x51e   :  { %2036 = vsyncpa [#allocation14 + $0x1], 1 }
 0x51f   :  { %2037 = vsyncpa [#allocation6], 1 }
 0x520   :  { %2039 = vsyncpa [#allocation6 + $0x1], 1 }

</bundles_post_ra>
